<compile_context>
chip_gen: v5e
topology: v5e:2x2
jax: 0.10.0
libtpu: 0.0.40
codegen_flags: <defaults>
</compile_context>

<pallas_src>
import functools

import jax
import jax.numpy as jnp
from jax.experimental import pallas as pl
from jax.experimental.pallas import tpu as pltpu


# --------------------------- generation tuning -----------------------------

def _tpu_tuning():
    """Tile targets / scoped-VMEM limit chosen from the local TPU generation."""
    vmem_cap = None
    try:
        vmem_cap = pltpu.get_tpu_info().vmem_capacity_bytes
    except Exception:
        vmem_cap = None
    if vmem_cap is not None and vmem_cap > 96 * 1024 * 1024:
        # v5e / v6e class (128 MiB VMEM): big M tiles so each streamed weight
        # tile is reused by many rows (arithmetic intensity ~ m_tile FLOP/B).
        return {"m_tile": 768, "n_tile": 512, "k_tile": 512,
                "vmem_limit": 80 * 1024 * 1024}
    # v7x class (64 MiB VMEM / TC) or undetected backend: stay conservative.
    return {"m_tile": 512, "n_tile": 512, "k_tile": 512,
            "vmem_limit": 40 * 1024 * 1024}


_TUNE = _tpu_tuning()


def _mosaic(*sems):
    return pltpu.CompilerParams(dimension_semantics=sems,
                                vmem_limit_bytes=_TUNE["vmem_limit"])


def _pick_tile(dim, target, align):
    """Return (tile, padded_dim).

    Whole dim if it is small; otherwise prefer a divisor of dim that is a
    multiple of `align` and close to `target` (no padding); fall back to
    padding up to a multiple of `target` only if no such divisor exists."""
    if dim <= target:
        return dim, dim
    best = None
    cand = align
    limit = min(dim, 2 * target)
    while cand <= limit:
        if dim % cand == 0:
            if best is None or abs(cand - target) <= abs(best - target):
                best = cand
        cand += align
    if best is not None:
        return best, dim
    return target, ((dim + target - 1) // target) * target


def _div_tile(dim, target, align):
    """Divisor-or-full tile (never pads)."""
    tile, padded = _pick_tile(dim, target, align)
    return tile if padded == dim else dim


def _seq_tile(length, target):
    """Query/sequence tile: divisor of length, or the full length."""
    if length <= target:
        return length
    return _div_tile(length, target, 8)


# ------------------------------ in-kernel math ------------------------------

def _gelu_erf(x):
    # Exact-erf GELU via Abramowitz & Stegun 7.1.26 (|erf err| <= 1.5e-7);
    # exp rides the EUP, the polynomial rides the VPU under the matmul.
    z = x * 0.7071067811865476
    a = jnp.abs(z)
    t = 1.0 / (1.0 + 0.3275911 * a)
    poly = t * (0.254829592 + t * (-0.284496736 + t * (1.421413741
              + t * (-1.453152027 + t * 1.061405429))))
    erf_abs = 1.0 - poly * jnp.exp(-a * a)
    erf = jnp.where(z >= 0, erf_abs, -erf_abs)
    return x * 0.5 * (1.0 + erf)


# ----------------------------- generic matmuls ------------------------------

def _linear_kernel(*refs, apply_gelu, has_residual):
    if has_residual:
        x_ref, w_ref, b_ref, res_ref, o_ref, acc_ref = refs
    else:
        x_ref, w_ref, b_ref, o_ref, acc_ref = refs
        res_ref = None

    @pl.when(pl.program_id(2) == 0)
    def _():
        acc_ref[...] = jnp.zeros_like(acc_ref)

    x = x_ref[...]
    if apply_gelu:                               # fused activation prologue
        x = _gelu_erf(x.astype(jnp.float32))
    x = x.astype(jnp.bfloat16)                   # bf16 MXU, f32 accumulation
    acc_ref[...] += jnp.dot(x, w_ref[...], preferred_element_type=jnp.float32)

    @pl.when(pl.program_id(2) == pl.num_programs(2) - 1)
    def _():
        out = acc_ref[...] + b_ref[...]
        if has_residual:                         # fused residual add
            out = out + res_ref[...].astype(jnp.float32)
        o_ref[...] = out.astype(o_ref.dtype)


def linear_tiled(x, w, b=None, residual=None, apply_gelu=False, out_dtype=None):
    """(..., K) @ (K, N) (+bias) (+residual) with optional GELU prologue."""
    *lead, K = x.shape
    N = w.shape[1]
    out_dtype = out_dtype or x.dtype
    x2 = x.reshape(-1, K)
    M = x2.shape[0]
    if b is None:
        b = jnp.zeros((N,), jnp.float32)
    b = b.astype(jnp.float32)

    tm, Mp = _pick_tile(M, _TUNE["m_tile"], 8)
    tn, Np = _pick_tile(N, _TUNE["n_tile"], 128)
    tk, Kp = _pick_tile(K, _TUNE["k_tile"], 128)
    # Divisor-aware tiles mean padding only triggers for awkward shapes; GELU(0)=0
    # so padded K columns contribute nothing.
    xp = x2 if (Mp == M and Kp == K) else jnp.pad(x2, ((0, Mp - M), (0, Kp - K)))
    wp = w if (Kp == K and Np == N) else jnp.pad(w, ((0, Kp - K), (0, Np - N)))
    bp = (b if Np == N else jnp.pad(b, (0, Np - N))).reshape(1, Np)

    has_res = residual is not None
    operands = [xp, wp, bp]
    in_specs = [
        pl.BlockSpec((tm, tk), lambda i, j, k: (i, k)),
        pl.BlockSpec((tk, tn), lambda i, j, k: (k, j)),
        pl.BlockSpec((1, tn), lambda i, j, k: (0, j)),
    ]
    if has_res:
        r2 = residual.reshape(-1, N)
        rp = r2 if (Mp == M and Np == N) else jnp.pad(r2, ((0, Mp - M), (0, Np - N)))
        operands.append(rp)
        in_specs.append(pl.BlockSpec((tm, tn), lambda i, j, k: (i, j)))

    out = pl.pallas_call(
        functools.partial(_linear_kernel, apply_gelu=apply_gelu,
                          has_residual=has_res),
        out_shape=jax.ShapeDtypeStruct((Mp, Np), out_dtype),
        grid=(Mp // tm, Np // tn, Kp // tk),
        in_specs=in_specs,
        out_specs=pl.BlockSpec((tm, tn), lambda i, j, k: (i, j)),
        scratch_shapes=[pltpu.VMEM((tm, tn), jnp.float32)],
        compiler_params=_mosaic("parallel", "parallel", "arbitrary"),
    )(*operands)
    if Mp != M or Np != N:
        out = out[:M, :N]
    return out.reshape(*lead, N)


def _ln_linear_kernel(x_ref, g_ref, bln_ref, w_ref, b_ref, o_ref, xn_ref, *, eps):
    # LayerNorm computed once per row tile (j == 0) into a bf16 VMEM scratch,
    # then reused for every N tile.
    @pl.when(pl.program_id(1) == 0)
    def _():
        x = x_ref[...].astype(jnp.float32)
        mu = jnp.mean(x, axis=-1, keepdims=True)
        var = jnp.mean(jnp.square(x - mu), axis=-1, keepdims=True)
        xn = (x - mu) * jax.lax.rsqrt(var + eps)
        xn_ref[...] = (xn * g_ref[...] + bln_ref[...]).astype(xn_ref.dtype)

    acc = jnp.dot(xn_ref[...], w_ref[...], preferred_element_type=jnp.float32)
    o_ref[...] = (acc + b_ref[...]).astype(o_ref.dtype)


def ln_linear(x, g, bln, w, b=None, eps=1e-5, out_dtype=None):
    """Fused LayerNorm + (..., K) @ (K, N) + bias.  K kept whole (LN needs the row)."""
    *lead, K = x.shape
    N = w.shape[1]
    out_dtype = out_dtype or x.dtype
    x2 = x.reshape(-1, K)
    M = x2.shape[0]
    if b is None:
        b = jnp.zeros((N,), jnp.float32)
    b = b.astype(jnp.float32)

    tm, Mp = _pick_tile(M, _TUNE["m_tile"], 8)
    tn, Np = _pick_tile(N, _TUNE["n_tile"], 128)
    xp = x2 if Mp == M else jnp.pad(x2, ((0, Mp - M), (0, 0)))
    wp = w if Np == N else jnp.pad(w, ((0, 0), (0, Np - N)))
    bp = (b if Np == N else jnp.pad(b, (0, Np - N))).reshape(1, Np)

    out = pl.pallas_call(
        functools.partial(_ln_linear_kernel, eps=eps),
        out_shape=jax.ShapeDtypeStruct((Mp, Np), out_dtype),
        grid=(Mp // tm, Np // tn),
        in_specs=[
            pl.BlockSpec((tm, K), lambda i, j: (i, 0)),
            pl.BlockSpec((1, K), lambda i, j: (0, 0)),
            pl.BlockSpec((1, K), lambda i, j: (0, 0)),
            pl.BlockSpec((K, tn), lambda i, j: (0, j)),
            pl.BlockSpec((1, tn), lambda i, j: (0, j)),
        ],
        out_specs=pl.BlockSpec((tm, tn), lambda i, j: (i, j)),
        scratch_shapes=[pltpu.VMEM((tm, K), jnp.bfloat16)],
        # j must be sequential: the normalized-x scratch is written at j == 0.
        compiler_params=_mosaic("parallel", "arbitrary"),
    )(xp, g.reshape(1, K), bln.reshape(1, K), wp, bp)
    if Mp != M or Np != N:
        out = out[:M, :N]
    return out.reshape(*lead, N)


def _layer_norm_kernel(x_ref, g_ref, b_ref, o_ref, *, eps):
    x = x_ref[...].astype(jnp.float32)
    mu = jnp.mean(x, axis=-1, keepdims=True)
    var = jnp.mean(jnp.square(x - mu), axis=-1, keepdims=True)
    y = (x - mu) * jax.lax.rsqrt(var + eps)
    o_ref[...] = (y * g_ref[...] + b_ref[...]).astype(o_ref.dtype)


def layer_norm(x, g, b, eps, out_dtype=None):
    *lead, D = x.shape
    out_dtype = out_dtype or x.dtype
    x2 = x.reshape(-1, D)
    M = x2.shape[0]
    tm, Mp = _pick_tile(M, _TUNE["m_tile"], 8)
    xp = x2 if Mp == M else jnp.pad(x2, ((0, Mp - M), (0, 0)))
    out = pl.pallas_call(
        functools.partial(_layer_norm_kernel, eps=eps),
        out_shape=jax.ShapeDtypeStruct((Mp, D), out_dtype),
        grid=(Mp // tm,),
        in_specs=[
            pl.BlockSpec((tm, D), lambda i: (i, 0)),
            pl.BlockSpec((1, D), lambda i: (0, 0)),
            pl.BlockSpec((1, D), lambda i: (0, 0)),
        ],
        out_specs=pl.BlockSpec((tm, D), lambda i: (i, 0)),
        compiler_params=_mosaic("parallel"),
    )(xp, g.reshape(1, D), b.reshape(1, D))
    if Mp != M:
        out = out[:M]
    return out.reshape(*lead, D).astype(out_dtype)


# ------------------------- ESM attention kernels ----------------------------

def _ln_qkv_kernel(x_ref, g_ref, b_ref, w_ref, bias_ref, q_ref, k_ref, v_ref,
                   xn_ref, *, eps, head_dim):
    # Pre-LN computed once per (batch, row-tile) under h == 0, reused across heads.
    @pl.when(pl.program_id(2) == 0)
    def _():
        x = x_ref[0].astype(jnp.float32)
        mu = jnp.mean(x, axis=-1, keepdims=True)
        var = jnp.mean(jnp.square(x - mu), axis=-1, keepdims=True)
        xn = (x - mu) * jax.lax.rsqrt(var + eps)
        xn_ref[...] = (xn * g_ref[...] + b_ref[...]).astype(xn_ref.dtype)

    qkv = jnp.dot(xn_ref[...], w_ref[0], preferred_element_type=jnp.float32)
    qkv = (qkv + bias_ref[0]).astype(q_ref.dtype)
    # head-major writeback: q/k/v land directly as (B, H, L, Dh) in HBM.
    q_ref[0, 0] = qkv[:, :head_dim]
    k_ref[0, 0] = qkv[:, head_dim:2 * head_dim]
    v_ref[0, 0] = qkv[:, 2 * head_dim:]


def ln_qkv(x, g, b, w_hm, b_hm, eps):
    """Fused pre-LN + QKV projection, emitting head-major q, k, v tensors."""
    B, L, D = x.shape
    H, _, three_dh = w_hm.shape
    Dh = three_dh // 3
    tl = _seq_tile(L, 512)
    out_shape = tuple(jax.ShapeDtypeStruct((B, H, L, Dh), jnp.bfloat16)
                      for _ in range(3))
    return pl.pallas_call(
        functools.partial(_ln_qkv_kernel, eps=eps, head_dim=Dh),
        out_shape=out_shape,
        grid=(B, L // tl, H),
        in_specs=[
            pl.BlockSpec((1, tl, D), lambda bi, li, h: (bi, li, 0)),
            pl.BlockSpec((1, D), lambda bi, li, h: (0, 0)),
            pl.BlockSpec((1, D), lambda bi, li, h: (0, 0)),
            pl.BlockSpec((1, D, three_dh), lambda bi, li, h: (h, 0, 0)),
            pl.BlockSpec((1, 1, three_dh), lambda bi, li, h: (h, 0, 0)),
        ],
        out_specs=[
            pl.BlockSpec((1, 1, tl, Dh), lambda bi, li, h: (bi, h, li, 0)),
            pl.BlockSpec((1, 1, tl, Dh), lambda bi, li, h: (bi, h, li, 0)),
            pl.BlockSpec((1, 1, tl, Dh), lambda bi, li, h: (bi, h, li, 0)),
        ],
        scratch_shapes=[pltpu.VMEM((tl, D), jnp.bfloat16)],
        compiler_params=_mosaic("parallel", "parallel", "arbitrary"),
    )(x, g.reshape(1, D), b.reshape(1, D), w_hm, b_hm)


def _esm_attn_kernel(q_ref, k_ref, v_ref, bias_ref, cosq_ref, sinq_ref,
                     cosk_ref, sink_ref, rot_ref, o_ref, *, scale):
    # One (batch, head, query-tile) per grid step: score tile is (tq, L) f32.
    q = q_ref[0, 0].astype(jnp.float32) * scale
    k = k_ref[0, 0].astype(jnp.float32)
    rot = rot_ref[...]
    # NeoX-style rotary: x*cos + rotate_half(x)*sin.  rotate_half is a tiny
    # constant (Dh, Dh) matmul so it rides the MXU.
    # TODO(synk): could be pltpu.roll + signed sin table to free the MXU pushes.
    q = q * cosq_ref[...] + jnp.dot(q, rot, preferred_element_type=jnp.float32) * sinq_ref[...]
    k = k * cosk_ref[...] + jnp.dot(k, rot, preferred_element_type=jnp.float32) * sink_ref[...]
    s = jax.lax.dot_general(q.astype(jnp.bfloat16), k.astype(jnp.bfloat16),
                            (((1,), (1,)), ((), ())),
                            preferred_element_type=jnp.float32)
    s = s + bias_ref[0]                               # additive extended mask (f32)
    m = jnp.max(s, axis=-1, keepdims=True)
    p = jnp.exp(s - m)
    denom = jnp.sum(p, axis=-1, keepdims=True)        # >= 1, safe for approx recip
    ctx = jnp.dot(p.astype(jnp.bfloat16), v_ref[0, 0],
                  preferred_element_type=jnp.float32)
    o_ref[0, 0] = (ctx * pl.reciprocal(denom, approx=True)).astype(o_ref.dtype)


def esm_attention(q_hm, k_hm, v_hm, bias, cos, sin, rot, scale):
    B, H, L, Dh = q_hm.shape
    tq = _seq_tile(L, 512)
    return pl.pallas_call(
        functools.partial(_esm_attn_kernel, scale=scale),
        out_shape=jax.ShapeDtypeStruct((B, H, L, Dh), q_hm.dtype),
        grid=(B, H, L // tq),
        in_specs=[
            pl.BlockSpec((1, 1, tq, Dh), lambda b, h, qi: (b, h, qi, 0)),
            pl.BlockSpec((1, 1, L, Dh), lambda b, h, qi: (b, h, 0, 0)),
            pl.BlockSpec((1, 1, L, Dh), lambda b, h, qi: (b, h, 0, 0)),
            pl.BlockSpec((1, 1, L), lambda b, h, qi: (b, 0, 0)),
            pl.BlockSpec((tq, Dh), lambda b, h, qi: (qi, 0)),   # cos (query rows)
            pl.BlockSpec((tq, Dh), lambda b, h, qi: (qi, 0)),   # sin (query rows)
            pl.BlockSpec((L, Dh), lambda b, h, qi: (0, 0)),     # cos (all key rows)
            pl.BlockSpec((L, Dh), lambda b, h, qi: (0, 0)),     # sin (all key rows)
            pl.BlockSpec((Dh, Dh), lambda b, h, qi: (0, 0)),
        ],
        out_specs=pl.BlockSpec((1, 1, tq, Dh), lambda b, h, qi: (b, h, qi, 0)),
        compiler_params=_mosaic("parallel", "parallel", "parallel"),
    )(q_hm, k_hm, v_hm, bias, cos, sin, cos, sin, rot)


def _ctx_proj_kernel(ctx_ref, w_ref, b_ref, res_ref, o_ref, acc_ref):
    # Attention output projection: reduce over heads on the grid, fuse the
    # EsmSelfOutput residual add in the finalize branch.
    @pl.when(pl.program_id(2) == 0)
    def _():
        acc_ref[...] = jnp.zeros_like(acc_ref)

    acc_ref[...] += jnp.dot(ctx_ref[0, 0], w_ref[0],
                            preferred_element_type=jnp.float32)

    @pl.when(pl.program_id(2) == pl.num_programs(2) - 1)
    def _():
        out = acc_ref[...] + b_ref[0] + res_ref[0].astype(jnp.float32)
        o_ref[0] = out.astype(o_ref.dtype)


def ctx_projection(ctx_hm, w_hm, bias, residual):
    B, H, L, Dh = ctx_hm.shape
    D = w_hm.shape[2]
    tn = _div_tile(D, _TUNE["n_tile"], 128)
    return pl.pallas_call(
        _ctx_proj_kernel,
        out_shape=jax.ShapeDtypeStruct((B, L, D), residual.dtype),
        grid=(B, D // tn, H),
        in_specs=[
            pl.BlockSpec((1, 1, L, Dh), lambda b, n, h: (b, h, 0, 0)),
            pl.BlockSpec((1, Dh, tn), lambda b, n, h: (h, 0, n)),
            pl.BlockSpec((1, 1, tn), lambda b, n, h: (0, 0, n)),
            pl.BlockSpec((1, L, tn), lambda b, n, h: (b, 0, n)),
        ],
        out_specs=pl.BlockSpec((1, L, tn), lambda b, n, h: (b, 0, n)),
        scratch_shapes=[pltpu.VMEM((L, tn), jnp.float32)],
        compiler_params=_mosaic("parallel", "parallel", "arbitrary"),
    )(ctx_hm, w_hm, bias, residual)


# ----------------------- resampler cross-attention --------------------------

def _resampler_attn_kernel(q_ref, kv_ref, mask_ref, o_ref, *, num_heads, scale):
    q_all = q_ref[0]                                   # (Nq, inner)
    kv = kv_ref[0]                                     # (Nk, 2*inner) packed [K | V]
    inner = q_all.shape[-1]
    Dh = inner // num_heads
    mask = mask_ref[0]                                 # (1, Nk): 1 keep, 0 drop
    outs = []
    for h in range(num_heads):                         # tiny static loop (heads <= 8)
        q = q_all[:, h * Dh:(h + 1) * Dh].astype(jnp.float32) * scale
        k = kv[:, h * Dh:(h + 1) * Dh]
        v = kv[:, inner + h * Dh:inner + (h + 1) * Dh]
        sim = jax.lax.dot_general(q.astype(jnp.bfloat16), k.astype(jnp.bfloat16),
                                  (((1,), (1,)), ((), ())),
                                  preferred_element_type=jnp.float32)
        sim = sim - jnp.max(sim, axis=-1, keepdims=True)   # explicit amax (reference)
        sim = jnp.where(mask > 0.5, sim, -10000.0)          # masked_fill(-10000)
        sim = sim - jnp.max(sim, axis=-1, keepdims=True)   # torch.softmax max-subtract
        p = jnp.exp(sim)
        ctx = jnp.dot(p.astype(jnp.bfloat16), v.astype(jnp.bfloat16),
                      preferred_element_type=jnp.float32)
        ctx = ctx * pl.reciprocal(jnp.sum(p, axis=-1, keepdims=True), approx=True)
        outs.append(ctx)
    # single lane-dense store of all heads
    o_ref[0] = jnp.concatenate(outs, axis=-1).astype(o_ref.dtype)


def resampler_attention(q, kv, mask, num_heads, scale):
    B, Nq, inner = q.shape
    Nk = kv.shape[1]
    return pl.pallas_call(
        functools.partial(_resampler_attn_kernel, num_heads=num_heads, scale=scale),
        out_shape=jax.ShapeDtypeStruct((B, Nq, inner), q.dtype),
        grid=(B,),
        in_specs=[
            pl.BlockSpec((1, Nq, inner), lambda b: (b, 0, 0)),
            pl.BlockSpec((1, Nk, 2 * inner), lambda b: (b, 0, 0)),
            pl.BlockSpec((1, 1, Nk), lambda b: (b, 0, 0)),
        ],
        out_specs=pl.BlockSpec((1, Nq, inner), lambda b: (b, 0, 0)),
        compiler_params=_mosaic("parallel"),
    )(q, kv, mask)


# ------------------------------- JAX glue -----------------------------------

def rotary_tables(seq_len, dim):
    inv_freq = 1.0 / (10000.0 ** (jnp.arange(0, dim, 2, dtype=jnp.float32) / dim))
    t = jnp.arange(seq_len, dtype=jnp.float32)
    freqs = t[:, None] * inv_freq[None, :]
    emb = jnp.concatenate([freqs, freqs], axis=-1)       # (L, dim)
    cos, sin = jnp.cos(emb), jnp.sin(emb)
    # rotate_half(x) == x @ R  (constant (dim, dim) matrix applied in-kernel).
    half = dim // 2
    idx = jnp.arange(half)
    r = jnp.zeros((dim, dim), jnp.float32)
    r = r.at[idx + half, idx].set(-1.0)
    r = r.at[idx, idx + half].set(1.0)
    return cos, sin, r


def esm_embeddings(p, input_ids, attention_mask, mask_token_id, token_dropout):
    # TODO(synk): embedding-table gather + token-dropout rescale stay in plain JAX.
    emb = jnp.take(p["word_emb"], input_ids, axis=0)      # (B, L, D)
    if token_dropout:
        is_mask = input_ids == mask_token_id
        emb = jnp.where(is_mask[..., None], 0.0, emb)
        mask_ratio_train = 0.15 * 0.8
        src_lengths = attention_mask.sum(-1)
        mask_ratio_observed = is_mask.sum(-1).astype(jnp.float32) / src_lengths
        emb = emb * ((1.0 - mask_ratio_train) / (1.0 - mask_ratio_observed))[:, None, None]
    emb = emb * attention_mask[..., None]
    return emb


def esm_layer(lp, h, bias, cos, sin, rot, scale, eps):
    q_hm, k_hm, v_hm = ln_qkv(h, lp["attn_ln_g"], lp["attn_ln_b"],
                              lp["w_qkv"], lp["b_qkv"], eps)
    ctx = esm_attention(q_hm, k_hm, v_hm, bias, cos, sin, rot, scale)
    attn_out = ctx_projection(ctx, lp["wo"], lp["bo"], residual=h)    # EsmSelfOutput
    inter = ln_linear(attn_out, lp["ffn_ln_g"], lp["ffn_ln_b"],
                      lp["wi"], lp["bi"], eps)                        # EsmIntermediate pre-act
    # GELU fused as prologue of the down projection; residual fused in finalize.
    return linear_tiled(inter, lp["wo2"], lp["bo2"], residual=attn_out,
                        apply_gelu=True)


def saprot_encoder(p, input_ids, attention_mask, pe_cfg):
    B, L = input_ids.shape
    D, H = pe_cfg["hidden_size"], pe_cfg["num_heads"]
    eps = pe_cfg["layer_norm_eps"]
    Dh = D // H
    # get_extended_attention_mask: (1 - mask) * finfo(float32).min, kept f32.
    bias = ((1.0 - attention_mask) * jnp.finfo(jnp.float32).min).reshape(B, 1, L)
    h = esm_embeddings(p, input_ids, attention_mask,
                       pe_cfg["mask_token_id"], pe_cfg["token_dropout"])
    h = h.astype(jnp.bfloat16)                            # bf16 activations in the trunk
    cos, sin, rot = rotary_tables(L, Dh)
    scale = Dh ** -0.5
    for lp in p["layers"]:
        h = esm_layer(lp, h, bias, cos, sin, rot, scale, eps)
    return layer_norm(h, p["final_ln_g"], p["final_ln_b"], eps,
                      out_dtype=jnp.float32)              # emb_layer_norm_after


def sequence_compressor_resampler(p, embeds, attention_mask, cfg):
    B, L, D = embeds.shape
    Nl = cfg["resampler_num_latents"]
    H, Dh = cfg["resampler_heads"], cfg["resampler_dim_head"]
    inner = H * Dh
    mask = jnp.concatenate(
        [attention_mask, jnp.ones((B, Nl), attention_mask.dtype)], axis=1)
    mask = mask.reshape(B, 1, L + Nl)
    latents = jnp.broadcast_to(p["latents"][None], (B, Nl, D)).astype(embeds.dtype)
    for lp in p["layers"]:
        # to_q and to_kv of the normed latents fused into one projection; the
        # shared to_kv weights are re-used (sliced) for the media branch, so the
        # math matches to_kv(cat(norm_media(x), norm_latents(latents))).
        q_kvlat = ln_linear(latents, lp["norm_lat_g"], lp["norm_lat_b"],
                            lp["w_q_kv"], eps=1e-5)
        q = q_kvlat[..., :inner]
        kv_lat = q_kvlat[..., inner:]
        kv_x = ln_linear(embeds, lp["norm_media_g"], lp["norm_media_b"],
                         lp["w_q_kv"][:, inner:], eps=1e-5)
        kv = jnp.concatenate([kv_x, kv_lat], axis=1)      # (B, L+Nl, 2*inner)
        attn = resampler_attention(q, kv, mask, H, Dh ** -0.5)
        latents = linear_tiled(attn, lp["wout"], residual=latents)
        ff_in = ln_linear(latents, lp["ff_norm_g"], lp["ff_norm_b"],
                          lp["ff_w1"], eps=1e-5)
        latents = linear_tiled(ff_in, lp["ff_w2"], residual=latents,
                               apply_gelu=True)
    proj = linear_tiled(latents, p["proj_w"], p["proj_b"])  # protein_projector
    return layer_norm(proj, p["final_ln_g"], p["final_ln_b"], 1e-5,
                      out_dtype=jnp.float32)


def evolla_protein_encoder(params, input_ids, attention_mask, cfg):
    last_hidden = saprot_encoder(params["saprot"], input_ids, attention_mask,
                                 cfg["protein_encoder"])
    seq_repr = sequence_compressor_resampler(params["resampler"], last_hidden,
                                             attention_mask, cfg)
    return {"sequence_compressor_output": seq_repr, "last_hidden_state": last_hidden}


# ------------------------------ parameters ----------------------------------

def init_params(key, cfg):
    pe = cfg["protein_encoder"]
    D, I = pe["hidden_size"], pe["intermediate_size"]
    H = pe["num_heads"]
    Dh = D // H
    keys = iter(jax.random.split(key, 512))
    nrm = lambda shape, std=0.02: (std * jax.random.normal(next(keys), shape, jnp.float32))
    bf = lambda shape: nrm(shape).astype(jnp.bfloat16)
    zeros = lambda shape: jnp.zeros(shape, jnp.float32)
    ones = lambda shape: jnp.ones(shape, jnp.float32)

    saprot_layers = []
    for _ in range(pe["num_layers"]):
        saprot_layers.append(dict(
            attn_ln_g=ones((D,)), attn_ln_b=zeros((D,)),
            w_qkv=bf((H, D, 3 * Dh)),        # head-major packed [q | k | v] per head
            b_qkv=zeros((H, 1, 3 * Dh)),
            wo=bf((H, Dh, D)),               # head-major rows of the output projection
            bo=zeros((1, 1, D)),
            ffn_ln_g=ones((D,)), ffn_ln_b=zeros((D,)),
            wi=bf((D, I)), bi=zeros((I,)),
            wo2=bf((I, D)), bo2=zeros((D,)),
        ))
    saprot = dict(
        word_emb=nrm((pe["vocab_size"], D)).at[pe["pad_token_id"]].set(0.0),
        layers=saprot_layers,
        final_ln_g=ones((D,)), final_ln_b=zeros((D,)),
    )

    inner = cfg["resampler_heads"] * cfg["resampler_dim_head"]
    ff_inner = int(D * cfg["resampler_ff_mult"])
    res_layers = []
    for _ in range(cfg["resampler_depth"]):
        res_layers.append(dict(
            norm_media_g=ones((D,)), norm_media_b=zeros((D,)),
            norm_lat_g=ones((D,)), norm_lat_b=zeros((D,)),
            w_q_kv=bf((D, 3 * inner)),       # [to_q | to_k | to_v]; kv part shared
            wout=bf((inner, D)),
            ff_norm_g=ones((D,)), ff_norm_b=zeros((D,)),
            ff_w1=bf((D, ff_inner)), ff_w2=bf((ff_inner, D)),
        ))
    resampler = dict(
        latents=jax.random.normal(next(keys), (cfg["resampler_num_latents"], D),
                                  jnp.float32),
        layers=res_layers,
        proj_w=bf((D, cfg["hidden_size"])), proj_b=zeros((cfg["hidden_size"],)),
        final_ln_g=ones((cfg["hidden_size"],)), final_ln_b=zeros((cfg["hidden_size"],)),
    )
    return {"saprot": saprot, "resampler": resampler}


# --------------------------------- main --------------------------------------

if __name__ == "__main__":
    cfg = {
        "hidden_size": 48,               # Evolla LLM hidden size (projection target)
        "resampler_num_latents": 8,
        "resampler_depth": 2,
        "resampler_dim_head": 16,
        "resampler_heads": 2,
        "resampler_ff_mult": 4,
        "protein_encoder": {             # SaProt/ESM-style config (small)
            "vocab_size": 32,
            "hidden_size": 32,
            "num_layers": 2,
            "num_heads": 4,
            "intermediate_size": 64,
            "pad_token_id": 1,
            "mask_token_id": 3,
            "layer_norm_eps": 1e-12,
            "token_dropout": True,
        },
    }
    key = jax.random.PRNGKey(0)
    pkey, ikey = jax.random.split(key)
    params = init_params(pkey, cfg)

    B, L = 2, 8
    input_ids = jax.random.randint(ikey, (B, L), 4, cfg["protein_encoder"]["vocab_size"],
                                   dtype=jnp.int32)
    attention_mask = jnp.array([[1, 1, 1, 1, 1, 1, 1, 0],
                                [1, 1, 1, 1, 1, 0, 0, 0]], dtype=jnp.float32)
    input_ids = jnp.where(attention_mask > 0, input_ids,
                          cfg["protein_encoder"]["pad_token_id"])

    fwd = jax.jit(lambda p, ids, mask: evolla_protein_encoder(p, ids, mask, cfg))
    out = fwd(params, input_ids, attention_mask)
    out = jax.block_until_ready(out)
    assert out["sequence_compressor_output"].shape == (B, cfg["resampler_num_latents"],
                                                       cfg["hidden_size"])
    assert out["last_hidden_state"].shape == (B, L, cfg["protein_encoder"]["hidden_size"])
    assert jnp.all(jnp.isfinite(out["sequence_compressor_output"]))
    assert jnp.all(jnp.isfinite(out["last_hidden_state"]))
    print("KERNEL_OK")
</pallas_src>

<mosaic_0001>
module attributes {stable_mosaic.version = 11 : i64} {
  func.func @_ln_linear_kernel(%arg0: i32, %arg1: i32, %arg2: memref<16x32xbf16, #tpu.memory_space<vmem>>, %arg3: memref<1x32xf32, #tpu.memory_space<vmem>>, %arg4: memref<1x32xf32, #tpu.memory_space<vmem>>, %arg5: memref<32x64xbf16, #tpu.memory_space<vmem>>, %arg6: memref<1x64xf32, #tpu.memory_space<vmem>>, %arg7: memref<16x64xbf16, #tpu.memory_space<vmem>>, %arg8: memref<16x32xbf16, #tpu.memory_space<vmem>>) attributes {dimension_semantics = [#tpu.dimension_semantics<parallel>, #tpu.dimension_semantics<arbitrary>], iteration_bounds = array<i64: 1, 1>, scalar_prefetch = 0 : i64, scratch_operands = 1 : i64, tpu.core_type = #tpu.core_type<tc>, window_params = [{transform_indices = @transform_0, window_bounds = array<i64: 16, 32>}, {pipeline_mode = #tpu.pipeline_mode<synchronous>, transform_indices = @transform_1, window_bounds = array<i64: 1, 32>}, {pipeline_mode = #tpu.pipeline_mode<synchronous>, transform_indices = @transform_2, window_bounds = array<i64: 1, 32>}, {transform_indices = @transform_3, window_bounds = array<i64: 32, 64>}, {transform_indices = @transform_4, window_bounds = array<i64: 1, 64>}, {transform_indices = @transform_5, window_bounds = array<i64: 16, 64>}]} {
    %c0_i32 = arith.constant 0 : i32
    %0 = arith.cmpi eq, %arg1, %c0_i32 : i32
    %1 = arith.extui %0 : i1 to i32
    %c0_i32_0 = arith.constant 0 : i32
    %2 = arith.cmpi ne, %1, %c0_i32_0 : i32
    scf.if %2 {
      %c0_8 = arith.constant 0 : index
      %c0_9 = arith.constant 0 : index
      %11 = vector.load %arg2[%c0_8, %c0_9] : memref<16x32xbf16, #tpu.memory_space<vmem>>, vector<16x32xbf16>
      %12 = arith.extf %11 : vector<16x32xbf16> to vector<16x32xf32>
      %cst_10 = arith.constant dense<0.000000e+00> : vector<16xf32>
      %13 = vector.multi_reduction <add>, %12, %cst_10 [1] : vector<16x32xf32> to vector<16xf32>
      %14 = vector.shape_cast %13 : vector<16xf32> to vector<16x1xf32>
      %cst_11 = arith.constant 3.200000e+01 : f32
      %15 = vector.broadcast %cst_11 : f32 to vector<16x1xf32>
      %16 = arith.divf %14, %15 : vector<16x1xf32>
      %17 = vector.broadcast %16 : vector<16x1xf32> to vector<16x32xf32>
      %18 = arith.subf %12, %17 : vector<16x32xf32>
      %19 = arith.mulf %18, %18 : vector<16x32xf32>
      %cst_12 = arith.constant dense<0.000000e+00> : vector<16xf32>
      %20 = vector.multi_reduction <add>, %19, %cst_12 [1] : vector<16x32xf32> to vector<16xf32>
      %21 = vector.shape_cast %20 : vector<16xf32> to vector<16x1xf32>
      %cst_13 = arith.constant 3.200000e+01 : f32
      %22 = vector.broadcast %cst_13 : f32 to vector<16x1xf32>
      %23 = arith.divf %21, %22 : vector<16x1xf32>
      %24 = vector.broadcast %16 : vector<16x1xf32> to vector<16x32xf32>
      %25 = arith.subf %12, %24 : vector<16x32xf32>
      %cst_14 = arith.constant 9.99999996E-13 : f32
      %26 = vector.broadcast %cst_14 : f32 to vector<16x1xf32>
      %27 = arith.addf %23, %26 : vector<16x1xf32>
      %28 = math.rsqrt %27 : vector<16x1xf32>
      %29 = vector.broadcast %28 : vector<16x1xf32> to vector<16x32xf32>
      %30 = arith.mulf %25, %29 : vector<16x32xf32>
      %c0_15 = arith.constant 0 : index
      %c0_16 = arith.constant 0 : index
      %31 = vector.load %arg3[%c0_15, %c0_16] : memref<1x32xf32, #tpu.memory_space<vmem>>, vector<1x32xf32>
      %32 = vector.broadcast %31 : vector<1x32xf32> to vector<16x32xf32>
      %33 = arith.mulf %30, %32 : vector<16x32xf32>
      %c0_17 = arith.constant 0 : index
      %c0_18 = arith.constant 0 : index
      %34 = vector.load %arg4[%c0_17, %c0_18] : memref<1x32xf32, #tpu.memory_space<vmem>>, vector<1x32xf32>
      %35 = vector.broadcast %34 : vector<1x32xf32> to vector<16x32xf32>
      %36 = arith.addf %33, %35 : vector<16x32xf32>
      %37 = arith.truncf %36 : vector<16x32xf32> to vector<16x32xbf16>
      %c0_19 = arith.constant 0 : index
      %c0_20 = arith.constant 0 : index
      %38 = vector.load %arg8[%c0_19, %c0_20] : memref<16x32xbf16, #tpu.memory_space<vmem>>, vector<16x32xbf16>
      tpu.vector_store %arg8[%c0_19, %c0_20], %37 {strides = array<i32>} : memref<16x32xbf16, #tpu.memory_space<vmem>>, vector<16x32xbf16>,
    } else {
    }
    %c0 = arith.constant 0 : index
    %c0_1 = arith.constant 0 : index
    %3 = vector.load %arg8[%c0, %c0_1] : memref<16x32xbf16, #tpu.memory_space<vmem>>, vector<16x32xbf16>
    %c0_2 = arith.constant 0 : index
    %c0_3 = arith.constant 0 : index
    %4 = vector.load %arg5[%c0_2, %c0_3] : memref<32x64xbf16, #tpu.memory_space<vmem>>, vector<32x64xbf16>
    %cst = arith.constant dense<0.000000e+00> : vector<16x64xf32>
    %5 = tpu.matmul %3, %4, %cst {dimension_numbers = #tpu.dot_dimension_numbers<[1], [0], [0], [1], [0, 0, 1, 1], [], []>} : vector<16x32xbf16>, vector<32x64xbf16>, vector<16x64xf32> -> vector<16x64xf32>
    %c0_4 = arith.constant 0 : index
    %c0_5 = arith.constant 0 : index
    %6 = vector.load %arg6[%c0_4, %c0_5] : memref<1x64xf32, #tpu.memory_space<vmem>>, vector<1x64xf32>
    %7 = vector.broadcast %6 : vector<1x64xf32> to vector<16x64xf32>
    %8 = arith.addf %5, %7 : vector<16x64xf32>
    %9 = arith.truncf %8 : vector<16x64xf32> to vector<16x64xbf16>
    %c0_6 = arith.constant 0 : index
    %c0_7 = arith.constant 0 : index
    %10 = vector.load %arg7[%c0_6, %c0_7] : memref<16x64xbf16, #tpu.memory_space<vmem>>, vector<16x64xbf16>
    tpu.vector_store %arg7[%c0_6, %c0_7], %9 {strides = array<i32>} : memref<16x64xbf16, #tpu.memory_space<vmem>>, vector<16x64xbf16>,
    return
  }
  func.func @transform_0(%arg0: i32, %arg1: i32) -> (i32, i32) {
    %c0_i32 = arith.constant 0 : i32
    %c0_i32_0 = arith.constant 0 : i32
    return %arg0, %c0_i32 : i32, i32
  }
  func.func @transform_1(%arg0: i32, %arg1: i32) -> (i32, i32) {
    %c0_i32 = arith.constant 0 : i32
    %c0_i32_0 = arith.constant 0 : i32
    %c0_i32_1 = arith.constant 0 : i32
    return %c0_i32, %c0_i32_0 : i32, i32
  }
  func.func @transform_2(%arg0: i32, %arg1: i32) -> (i32, i32) {
    %c0_i32 = arith.constant 0 : i32
    %c0_i32_0 = arith.constant 0 : i32
    %c0_i32_1 = arith.constant 0 : i32
    return %c0_i32, %c0_i32_0 : i32, i32
  }
  func.func @transform_3(%arg0: i32, %arg1: i32) -> (i32, i32) {
    %c0_i32 = arith.constant 0 : i32
    %c0_i32_0 = arith.constant 0 : i32
    return %c0_i32, %arg1 : i32, i32
  }
  func.func @transform_4(%arg0: i32, %arg1: i32) -> (i32, i32) {
    %c0_i32 = arith.constant 0 : i32
    %c0_i32_0 = arith.constant 0 : i32
    return %c0_i32, %arg1 : i32, i32
  }
  func.func @transform_5(%arg0: i32, %arg1: i32) -> (i32, i32) {
    %c0_i32 = arith.constant 0 : i32
    return %arg0, %arg1 : i32, i32
  }
}

module attributes {stable_mosaic.version = 11 : i64} {
  func.func @_ln_qkv_kernel(%arg0: i32, %arg1: i32, %arg2: i32, %arg3: memref<1x8x32xbf16, #tpu.memory_space<vmem>>, %arg4: memref<1x32xf32, #tpu.memory_space<vmem>>, %arg5: memref<1x32xf32, #tpu.memory_space<vmem>>, %arg6: memref<1x32x24xbf16, #tpu.memory_space<vmem>>, %arg7: memref<1x1x24xf32, #tpu.memory_space<vmem>>, %arg8: memref<1x1x8x8xbf16, #tpu.memory_space<vmem>>, %arg9: memref<1x1x8x8xbf16, #tpu.memory_space<vmem>>, %arg10: memref<1x1x8x8xbf16, #tpu.memory_space<vmem>>, %arg11: memref<8x32xbf16, #tpu.memory_space<vmem>>) attributes {dimension_semantics = [#tpu.dimension_semantics<parallel>, #tpu.dimension_semantics<parallel>, #tpu.dimension_semantics<arbitrary>], iteration_bounds = array<i64: 2, 1, 4>, scalar_prefetch = 0 : i64, scratch_operands = 1 : i64, tpu.core_type = #tpu.core_type<tc>, window_params = [{transform_indices = @transform_0, window_bounds = array<i64: 1, 8, 32>}, {pipeline_mode = #tpu.pipeline_mode<synchronous>, transform_indices = @transform_1, window_bounds = array<i64: 1, 32>}, {pipeline_mode = #tpu.pipeline_mode<synchronous>, transform_indices = @transform_2, window_bounds = array<i64: 1, 32>}, {transform_indices = @transform_3, window_bounds = array<i64: 1, 32, 24>}, {transform_indices = @transform_4, window_bounds = array<i64: 1, 1, 24>}, {transform_indices = @transform_5, window_bounds = array<i64: 1, 1, 8, 8>}, {transform_indices = @transform_6, window_bounds = array<i64: 1, 1, 8, 8>}, {transform_indices = @transform_7, window_bounds = array<i64: 1, 1, 8, 8>}]} {
    %c0_i32 = arith.constant 0 : i32
    %0 = arith.cmpi eq, %arg2, %c0_i32 : i32
    %1 = arith.extui %0 : i1 to i32
    %c0_i32_0 = arith.constant 0 : i32
    %2 = arith.cmpi ne, %1, %c0_i32_0 : i32
    scf.if %2 {
      %c0_20 = arith.constant 0 : index
      %c0_21 = arith.constant 0 : index
      %c0_22 = arith.constant 0 : index
      %24 = vector.load %arg3[%c0_20, %c0_21, %c0_22] : memref<1x8x32xbf16, #tpu.memory_space<vmem>>, vector<1x8x32xbf16>
      %25 = vector.shape_cast %24 : vector<1x8x32xbf16> to vector<8x32xbf16>
      %26 = arith.extf %25 : vector<8x32xbf16> to vector<8x32xf32>
      %cst_23 = arith.constant dense<0.000000e+00> : vector<8xf32>
      %27 = vector.multi_reduction <add>, %26, %cst_23 [1] : vector<8x32xf32> to vector<8xf32>
      %28 = vector.shape_cast %27 : vector<8xf32> to vector<8x1xf32>
      %cst_24 = arith.constant 3.200000e+01 : f32
      %29 = vector.broadcast %cst_24 : f32 to vector<8x1xf32>
      %30 = arith.divf %28, %29 : vector<8x1xf32>
      %31 = vector.broadcast %30 : vector<8x1xf32> to vector<8x32xf32>
      %32 = arith.subf %26, %31 : vector<8x32xf32>
      %33 = arith.mulf %32, %32 : vector<8x32xf32>
      %cst_25 = arith.constant dense<0.000000e+00> : vector<8xf32>
      %34 = vector.multi_reduction <add>, %33, %cst_25 [1] : vector<8x32xf32> to vector<8xf32>
      %35 = vector.shape_cast %34 : vector<8xf32> to vector<8x1xf32>
      %cst_26 = arith.constant 3.200000e+01 : f32
      %36 = vector.broadcast %cst_26 : f32 to vector<8x1xf32>
      %37 = arith.divf %35, %36 : vector<8x1xf32>
      %38 = vector.broadcast %30 : vector<8x1xf32> to vector<8x32xf32>
      %39 = arith.subf %26, %38 : vector<8x32xf32>
      %cst_27 = arith.constant 9.99999996E-13 : f32
      %40 = vector.broadcast %cst_27 : f32 to vector<8x1xf32>
      %41 = arith.addf %37, %40 : vector<8x1xf32>
      %42 = math.rsqrt %41 : vector<8x1xf32>
      %43 = vector.broadcast %42 : vector<8x1xf32> to vector<8x32xf32>
      %44 = arith.mulf %39, %43 : vector<8x32xf32>
      %c0_28 = arith.constant 0 : index
      %c0_29 = arith.constant 0 : index
      %45 = vector.load %arg4[%c0_28, %c0_29] : memref<1x32xf32, #tpu.memory_space<vmem>>, vector<1x32xf32>
      %46 = vector.broadcast %45 : vector<1x32xf32> to vector<8x32xf32>
      %47 = arith.mulf %44, %46 : vector<8x32xf32>
      %c0_30 = arith.constant 0 : index
      %c0_31 = arith.constant 0 : index
      %48 = vector.load %arg5[%c0_30, %c0_31] : memref<1x32xf32, #tpu.memory_space<vmem>>, vector<1x32xf32>
      %49 = vector.broadcast %48 : vector<1x32xf32> to vector<8x32xf32>
      %50 = arith.addf %47, %49 : vector<8x32xf32>
      %51 = arith.truncf %50 : vector<8x32xf32> to vector<8x32xbf16>
      %c0_32 = arith.constant 0 : index
      %c0_33 = arith.constant 0 : index
      %52 = vector.load %arg11[%c0_32, %c0_33] : memref<8x32xbf16, #tpu.memory_space<vmem>>, vector<8x32xbf16>
      tpu.vector_store %arg11[%c0_32, %c0_33], %51 {strides = array<i32>} : memref<8x32xbf16, #tpu.memory_space<vmem>>, vector<8x32xbf16>,
    } else {
    }
    %c0 = arith.constant 0 : index
    %c0_1 = arith.constant 0 : index
    %3 = vector.load %arg11[%c0, %c0_1] : memref<8x32xbf16, #tpu.memory_space<vmem>>, vector<8x32xbf16>
    %c0_2 = arith.constant 0 : index
    %c0_3 = arith.constant 0 : index
    %c0_4 = arith.constant 0 : index
    %4 = vector.load %arg6[%c0_2, %c0_3, %c0_4] : memref<1x32x24xbf16, #tpu.memory_space<vmem>>, vector<1x32x24xbf16>
    %5 = vector.shape_cast %4 : vector<1x32x24xbf16> to vector<32x24xbf16>
    %cst = arith.constant dense<0.000000e+00> : vector<8x24xf32>
    %6 = tpu.matmul %3, %5, %cst {dimension_numbers = #tpu.dot_dimension_numbers<[1], [0], [0], [1], [0, 0, 1, 1], [], []>} : vector<8x32xbf16>, vector<32x24xbf16>, vector<8x24xf32> -> vector<8x24xf32>
    %c0_5 = arith.constant 0 : index
    %c0_6 = arith.constant 0 : index
    %c0_7 = arith.constant 0 : index
    %7 = vector.load %arg7[%c0_5, %c0_6, %c0_7] : memref<1x1x24xf32, #tpu.memory_space<vmem>>, vector<1x1x24xf32>
    %8 = vector.shape_cast %7 : vector<1x1x24xf32> to vector<1x24xf32>
    %9 = vector.broadcast %8 : vector<1x24xf32> to vector<8x24xf32>
    %10 = arith.addf %6, %9 : vector<8x24xf32>
    %11 = arith.truncf %10 : vector<8x24xf32> to vector<8x24xbf16>
    %12 = vector.extract_strided_slice %11 {offsets = [0, 0], sizes = [8, 8], strides = [1, 1]} : vector<8x24xbf16> to vector<8x8xbf16>
    %c0_8 = arith.constant 0 : index
    %c0_9 = arith.constant 0 : index
    %c0_10 = arith.constant 0 : index
    %c0_11 = arith.constant 0 : index
    %13 = vector.load %arg8[%c0_8, %c0_9, %c0_10, %c0_11] : memref<1x1x8x8xbf16, #tpu.memory_space<vmem>>, vector<1x1x8x8xbf16>
    %14 = vector.shape_cast %13 : vector<1x1x8x8xbf16> to vector<8x8xbf16>
    %15 = vector.shape_cast %12 : vector<8x8xbf16> to vector<1x1x8x8xbf16>
    tpu.vector_store %arg8[%c0_8, %c0_9, %c0_10, %c0_11], %15 {strides = array<i32>} : memref<1x1x8x8xbf16, #tpu.memory_space<vmem>>, vector<1x1x8x8xbf16>,
    %16 = vector.extract_strided_slice %11 {offsets = [0, 8], sizes = [8, 8], strides = [1, 1]} : vector<8x24xbf16> to vector<8x8xbf16>
    %c0_12 = arith.constant 0 : index
    %c0_13 = arith.constant 0 : index
    %c0_14 = arith.constant 0 : index
    %c0_15 = arith.constant 0 : index
    %17 = vector.load %arg9[%c0_12, %c0_13, %c0_14, %c0_15] : memref<1x1x8x8xbf16, #tpu.memory_space<vmem>>, vector<1x1x8x8xbf16>
    %18 = vector.shape_cast %17 : vector<1x1x8x8xbf16> to vector<8x8xbf16>
    %19 = vector.shape_cast %16 : vector<8x8xbf16> to vector<1x1x8x8xbf16>
    tpu.vector_store %arg9[%c0_12, %c0_13, %c0_14, %c0_15], %19 {strides = array<i32>} : memref<1x1x8x8xbf16, #tpu.memory_space<vmem>>, vector<1x1x8x8xbf16>,
    %20 = vector.extract_strided_slice %11 {offsets = [0, 16], sizes = [8, 8], strides = [1, 1]} : vector<8x24xbf16> to vector<8x8xbf16>
    %c0_16 = arith.constant 0 : index
    %c0_17 = arith.constant 0 : index
    %c0_18 = arith.constant 0 : index
    %c0_19 = arith.constant 0 : index
    %21 = vector.load %arg10[%c0_16, %c0_17, %c0_18, %c0_19] : memref<1x1x8x8xbf16, #tpu.memory_space<vmem>>, vector<1x1x8x8xbf16>
    %22 = vector.shape_cast %21 : vector<1x1x8x8xbf16> to vector<8x8xbf16>
    %23 = vector.shape_cast %20 : vector<8x8xbf16> to vector<1x1x8x8xbf16>
    tpu.vector_store %arg10[%c0_16, %c0_17, %c0_18, %c0_19], %23 {strides = array<i32>} : memref<1x1x8x8xbf16, #tpu.memory_space<vmem>>, vector<1x1x8x8xbf16>,
    return
  }
  func.func @transform_0(%arg0: i32, %arg1: i32, %arg2: i32) -> (i32, i32, i32) {
    %c0_i32 = arith.constant 0 : i32
    %c0_i32_0 = arith.constant 0 : i32
    return %arg0, %arg1, %c0_i32 : i32, i32, i32
  }
  func.func @transform_1(%arg0: i32, %arg1: i32, %arg2: i32) -> (i32, i32) {
    %c0_i32 = arith.constant 0 : i32
    %c0_i32_0 = arith.constant 0 : i32
    %c0_i32_1 = arith.constant 0 : i32
    return %c0_i32, %c0_i32_0 : i32, i32
  }
  func.func @transform_2(%arg0: i32, %arg1: i32, %arg2: i32) -> (i32, i32) {
    %c0_i32 = arith.constant 0 : i32
    %c0_i32_0 = arith.constant 0 : i32
    %c0_i32_1 = arith.constant 0 : i32
    return %c0_i32, %c0_i32_0 : i32, i32
  }
  func.func @transform_3(%arg0: i32, %arg1: i32, %arg2: i32) -> (i32, i32, i32) {
    %c0_i32 = arith.constant 0 : i32
    %c0_i32_0 = arith.constant 0 : i32
    %c0_i32_1 = arith.constant 0 : i32
    return %arg2, %c0_i32, %c0_i32_0 : i32, i32, i32
  }
  func.func @transform_4(%arg0: i32, %arg1: i32, %arg2: i32) -> (i32, i32, i32) {
    %c0_i32 = arith.constant 0 : i32
    %c0_i32_0 = arith.constant 0 : i32
    %c0_i32_1 = arith.constant 0 : i32
    return %arg2, %c0_i32, %c0_i32_0 : i32, i32, i32
  }
  func.func @transform_5(%arg0: i32, %arg1: i32, %arg2: i32) -> (i32, i32, i32, i32) {
    %c0_i32 = arith.constant 0 : i32
    %c0_i32_0 = arith.constant 0 : i32
    return %arg0, %arg2, %arg1, %c0_i32 : i32, i32, i32, i32
  }
  func.func @transform_6(%arg0: i32, %arg1: i32, %arg2: i32) -> (i32, i32, i32, i32) {
    %c0_i32 = arith.constant 0 : i32
    %c0_i32_0 = arith.constant 0 : i32
    return %arg0, %arg2, %arg1, %c0_i32 : i32, i32, i32, i32
  }
  func.func @transform_7(%arg0: i32, %arg1: i32, %arg2: i32) -> (i32, i32, i32, i32) {
    %c0_i32 = arith.constant 0 : i32
    %c0_i32_0 = arith.constant 0 : i32
    return %arg0, %arg2, %arg1, %c0_i32 : i32, i32, i32, i32
  }
}

module attributes {stable_mosaic.version = 11 : i64} {
  func.func @_esm_attn_kernel(%arg0: i32, %arg1: i32, %arg2: i32, %arg3: memref<1x1x8x8xbf16, #tpu.memory_space<vmem>>, %arg4: memref<1x1x8x8xbf16, #tpu.memory_space<vmem>>, %arg5: memref<1x1x8x8xbf16, #tpu.memory_space<vmem>>, %arg6: memref<1x1x8xf32, #tpu.memory_space<vmem>>, %arg7: memref<8x8xf32, #tpu.memory_space<vmem>>, %arg8: memref<8x8xf32, #tpu.memory_space<vmem>>, %arg9: memref<8x8xf32, #tpu.memory_space<vmem>>, %arg10: memref<8x8xf32, #tpu.memory_space<vmem>>, %arg11: memref<8x8xf32, #tpu.memory_space<vmem>>, %arg12: memref<1x1x8x8xbf16, #tpu.memory_space<vmem>>) attributes {dimension_semantics = [#tpu.dimension_semantics<parallel>, #tpu.dimension_semantics<parallel>, #tpu.dimension_semantics<parallel>], iteration_bounds = array<i64: 2, 4, 1>, scalar_prefetch = 0 : i64, scratch_operands = 0 : i64, tpu.core_type = #tpu.core_type<tc>, window_params = [{transform_indices = @transform_0, window_bounds = array<i64: 1, 1, 8, 8>}, {transform_indices = @transform_1, window_bounds = array<i64: 1, 1, 8, 8>}, {transform_indices = @transform_2, window_bounds = array<i64: 1, 1, 8, 8>}, {transform_indices = @transform_3, window_bounds = array<i64: 1, 1, 8>}, {transform_indices = @transform_4, window_bounds = array<i64: 8, 8>}, {transform_indices = @transform_5, window_bounds = array<i64: 8, 8>}, {pipeline_mode = #tpu.pipeline_mode<synchronous>, transform_indices = @transform_6, window_bounds = array<i64: 8, 8>}, {pipeline_mode = #tpu.pipeline_mode<synchronous>, transform_indices = @transform_7, window_bounds = array<i64: 8, 8>}, {pipeline_mode = #tpu.pipeline_mode<synchronous>, transform_indices = @transform_8, window_bounds = array<i64: 8, 8>}, {transform_indices = @transform_9, window_bounds = array<i64: 1, 1, 8, 8>}]} {
    %c0 = arith.constant 0 : index
    %c0_0 = arith.constant 0 : index
    %c0_1 = arith.constant 0 : index
    %c0_2 = arith.constant 0 : index
    %0 = vector.load %arg3[%c0, %c0_0, %c0_1, %c0_2] : memref<1x1x8x8xbf16, #tpu.memory_space<vmem>>, vector<1x1x8x8xbf16>
    %1 = vector.shape_cast %0 : vector<1x1x8x8xbf16> to vector<8x8xbf16>
    %2 = arith.extf %1 : vector<8x8xbf16> to vector<8x8xf32>
    %cst = arith.constant 0.353553385 : f32
    %3 = vector.broadcast %cst : f32 to vector<8x8xf32>
    %4 = arith.mulf %2, %3 : vector<8x8xf32>
    %c0_3 = arith.constant 0 : index
    %c0_4 = arith.constant 0 : index
    %c0_5 = arith.constant 0 : index
    %c0_6 = arith.constant 0 : index
    %5 = vector.load %arg4[%c0_3, %c0_4, %c0_5, %c0_6] : memref<1x1x8x8xbf16, #tpu.memory_space<vmem>>, vector<1x1x8x8xbf16>
    %6 = vector.shape_cast %5 : vector<1x1x8x8xbf16> to vector<8x8xbf16>
    %7 = arith.extf %6 : vector<8x8xbf16> to vector<8x8xf32>
    %c0_7 = arith.constant 0 : index
    %c0_8 = arith.constant 0 : index
    %8 = vector.load %arg11[%c0_7, %c0_8] : memref<8x8xf32, #tpu.memory_space<vmem>>, vector<8x8xf32>
    %c0_9 = arith.constant 0 : index
    %c0_10 = arith.constant 0 : index
    %9 = vector.load %arg7[%c0_9, %c0_10] : memref<8x8xf32, #tpu.memory_space<vmem>>, vector<8x8xf32>
    %10 = arith.mulf %4, %9 : vector<8x8xf32>
    %cst_11 = arith.constant dense<0.000000e+00> : vector<8x8xf32>
    %11 = tpu.matmul %4, %8, %cst_11 {dimension_numbers = #tpu.dot_dimension_numbers<[1], [0], [0], [1], [0, 0, 1, 1], [], []>} : vector<8x8xf32>, vector<8x8xf32>, vector<8x8xf32> -> vector<8x8xf32>
    %c0_12 = arith.constant 0 : index
    %c0_13 = arith.constant 0 : index
    %12 = vector.load %arg8[%c0_12, %c0_13] : memref<8x8xf32, #tpu.memory_space<vmem>>, vector<8x8xf32>
    %13 = arith.mulf %11, %12 : vector<8x8xf32>
    %14 = arith.addf %10, %13 : vector<8x8xf32>
    %c0_14 = arith.constant 0 : index
    %c0_15 = arith.constant 0 : index
    %15 = vector.load %arg9[%c0_14, %c0_15] : memref<8x8xf32, #tpu.memory_space<vmem>>, vector<8x8xf32>
    %16 = arith.mulf %7, %15 : vector<8x8xf32>
    %cst_16 = arith.constant dense<0.000000e+00> : vector<8x8xf32>
    %17 = tpu.matmul %7, %8, %cst_16 {dimension_numbers = #tpu.dot_dimension_numbers<[1], [0], [0], [1], [0, 0, 1, 1], [], []>} : vector<8x8xf32>, vector<8x8xf32>, vector<8x8xf32> -> vector<8x8xf32>
    %c0_17 = arith.constant 0 : index
    %c0_18 = arith.constant 0 : index
    %18 = vector.load %arg10[%c0_17, %c0_18] : memref<8x8xf32, #tpu.memory_space<vmem>>, vector<8x8xf32>
    %19 = arith.mulf %17, %18 : vector<8x8xf32>
    %20 = arith.addf %16, %19 : vector<8x8xf32>
    %21 = arith.truncf %14 : vector<8x8xf32> to vector<8x8xbf16>
    %22 = arith.truncf %20 : vector<8x8xf32> to vector<8x8xbf16>
    %cst_19 = arith.constant dense<0.000000e+00> : vector<8x8xf32>
    %23 = tpu.matmul %21, %22, %cst_19 {dimension_numbers = #tpu.dot_dimension_numbers<[1], [1], [0], [0], [0, 0, 1, 0], [], []>} : vector<8x8xbf16>, vector<8x8xbf16>, vector<8x8xf32> -> vector<8x8xf32>
    %c0_20 = arith.constant 0 : index
    %c0_21 = arith.constant 0 : index
    %c0_22 = arith.constant 0 : index
    %24 = vector.load %arg6[%c0_20, %c0_21, %c0_22] : memref<1x1x8xf32, #tpu.memory_space<vmem>>, vector<1x1x8xf32>
    %25 = vector.shape_cast %24 : vector<1x1x8xf32> to vector<1x8xf32>
    %26 = vector.broadcast %25 : vector<1x8xf32> to vector<8x8xf32>
    %27 = arith.addf %23, %26 : vector<8x8xf32>
    %cst_23 = arith.constant dense<0xFF800000> : vector<8xf32>
    %28 = vector.multi_reduction <maximumf>, %27, %cst_23 [1] : vector<8x8xf32> to vector<8xf32>
    %29 = vector.shape_cast %28 : vector<8xf32> to vector<8x1xf32>
    %30 = vector.broadcast %29 : vector<8x1xf32> to vector<8x8xf32>
    %31 = arith.subf %27, %30 : vector<8x8xf32>
    %32 = math.exp %31 : vector<8x8xf32>
    %cst_24 = arith.constant dense<0.000000e+00> : vector<8xf32>
    %33 = vector.multi_reduction <add>, %32, %cst_24 [1] : vector<8x8xf32> to vector<8xf32>
    %34 = vector.shape_cast %33 : vector<8xf32> to vector<8x1xf32>
    %35 = arith.truncf %32 : vector<8x8xf32> to vector<8x8xbf16>
    %c0_25 = arith.constant 0 : index
    %c0_26 = arith.constant 0 : index
    %c0_27 = arith.constant 0 : index
    %c0_28 = arith.constant 0 : index
    %36 = vector.load %arg5[%c0_25, %c0_26, %c0_27, %c0_28] : memref<1x1x8x8xbf16, #tpu.memory_space<vmem>>, vector<1x1x8x8xbf16>
    %37 = vector.shape_cast %36 : vector<1x1x8x8xbf16> to vector<8x8xbf16>
    %cst_29 = arith.constant dense<0.000000e+00> : vector<8x8xf32>
    %38 = tpu.matmul %35, %37, %cst_29 {dimension_numbers = #tpu.dot_dimension_numbers<[1], [0], [0], [1], [0, 0, 1, 1], [], []>} : vector<8x8xbf16>, vector<8x8xbf16>, vector<8x8xf32> -> vector<8x8xf32>
    %39 = tpu.reciprocal %34 {approx = true} : vector<8x1xf32> -> vector<8x1xf32>
    %40 = vector.broadcast %39 : vector<8x1xf32> to vector<8x8xf32>
    %41 = arith.mulf %38, %40 : vector<8x8xf32>
    %42 = arith.truncf %41 : vector<8x8xf32> to vector<8x8xbf16>
    %c0_30 = arith.constant 0 : index
    %c0_31 = arith.constant 0 : index
    %c0_32 = arith.constant 0 : index
    %c0_33 = arith.constant 0 : index
    %43 = vector.load %arg12[%c0_30, %c0_31, %c0_32, %c0_33] : memref<1x1x8x8xbf16, #tpu.memory_space<vmem>>, vector<1x1x8x8xbf16>
    %44 = vector.shape_cast %43 : vector<1x1x8x8xbf16> to vector<8x8xbf16>
    %45 = vector.shape_cast %42 : vector<8x8xbf16> to vector<1x1x8x8xbf16>
    tpu.vector_store %arg12[%c0_30, %c0_31, %c0_32, %c0_33], %45 {strides = array<i32>} : memref<1x1x8x8xbf16, #tpu.memory_space<vmem>>, vector<1x1x8x8xbf16>,
    return
  }
  func.func @transform_0(%arg0: i32, %arg1: i32, %arg2: i32) -> (i32, i32, i32, i32) {
    %c0_i32 = arith.constant 0 : i32
    %c0_i32_0 = arith.constant 0 : i32
    return %arg0, %arg1, %arg2, %c0_i32 : i32, i32, i32, i32
  }
  func.func @transform_1(%arg0: i32, %arg1: i32, %arg2: i32) -> (i32, i32, i32, i32) {
    %c0_i32 = arith.constant 0 : i32
    %c0_i32_0 = arith.constant 0 : i32
    %c0_i32_1 = arith.constant 0 : i32
    return %arg0, %arg1, %c0_i32, %c0_i32_0 : i32, i32, i32, i32
  }
  func.func @transform_2(%arg0: i32, %arg1: i32, %arg2: i32) -> (i32, i32, i32, i32) {
    %c0_i32 = arith.constant 0 : i32
    %c0_i32_0 = arith.constant 0 : i32
    %c0_i32_1 = arith.constant 0 : i32
    return %arg0, %arg1, %c0_i32, %c0_i32_0 : i32, i32, i32, i32
  }
  func.func @transform_3(%arg0: i32, %arg1: i32, %arg2: i32) -> (i32, i32, i32) {
    %c0_i32 = arith.constant 0 : i32
    %c0_i32_0 = arith.constant 0 : i32
    %c0_i32_1 = arith.constant 0 : i32
    return %arg0, %c0_i32, %c0_i32_0 : i32, i32, i32
  }
  func.func @transform_4(%arg0: i32, %arg1: i32, %arg2: i32) -> (i32, i32) {
    %c0_i32 = arith.constant 0 : i32
    %c0_i32_0 = arith.constant 0 : i32
    return %arg2, %c0_i32 : i32, i32
  }
  func.func @transform_5(%arg0: i32, %arg1: i32, %arg2: i32) -> (i32, i32) {
    %c0_i32 = arith.constant 0 : i32
    %c0_i32_0 = arith.constant 0 : i32
    return %arg2, %c0_i32 : i32, i32
  }
  func.func @transform_6(%arg0: i32, %arg1: i32, %arg2: i32) -> (i32, i32) {
    %c0_i32 = arith.constant 0 : i32
    %c0_i32_0 = arith.constant 0 : i32
    %c0_i32_1 = arith.constant 0 : i32
    return %c0_i32, %c0_i32_0 : i32, i32
  }
  func.func @transform_7(%arg0: i32, %arg1: i32, %arg2: i32) -> (i32, i32) {
    %c0_i32 = arith.constant 0 : i32
    %c0_i32_0 = arith.constant 0 : i32
    %c0_i32_1 = arith.constant 0 : i32
    return %c0_i32, %c0_i32_0 : i32, i32
  }
  func.func @transform_8(%arg0: i32, %arg1: i32, %arg2: i32) -> (i32, i32) {
    %c0_i32 = arith.constant 0 : i32
    %c0_i32_0 = arith.constant 0 : i32
    %c0_i32_1 = arith.constant 0 : i32
    return %c0_i32, %c0_i32_0 : i32, i32
  }
  func.func @transform_9(%arg0: i32, %arg1: i32, %arg2: i32) -> (i32, i32, i32, i32) {
    %c0_i32 = arith.constant 0 : i32
    %c0_i32_0 = arith.constant 0 : i32
    return %arg0, %arg1, %arg2, %c0_i32 : i32, i32, i32, i32
  }
}

module attributes {stable_mosaic.version = 11 : i64} {
  func.func @_ctx_proj_kernel(%arg0: i32, %arg1: i32, %arg2: i32, %arg3: memref<1x1x8x8xbf16, #tpu.memory_space<vmem>>, %arg4: memref<1x8x32xbf16, #tpu.memory_space<vmem>>, %arg5: memref<1x1x32xf32, #tpu.memory_space<vmem>>, %arg6: memref<1x8x32xbf16, #tpu.memory_space<vmem>>, %arg7: memref<1x8x32xbf16, #tpu.memory_space<vmem>>, %arg8: memref<8x32xf32, #tpu.memory_space<vmem>>) attributes {dimension_semantics = [#tpu.dimension_semantics<parallel>, #tpu.dimension_semantics<parallel>, #tpu.dimension_semantics<arbitrary>], iteration_bounds = array<i64: 2, 1, 4>, scalar_prefetch = 0 : i64, scratch_operands = 1 : i64, tpu.core_type = #tpu.core_type<tc>, window_params = [{transform_indices = @transform_0, window_bounds = array<i64: 1, 1, 8, 8>}, {transform_indices = @transform_1, window_bounds = array<i64: 1, 8, 32>}, {transform_indices = @transform_2, window_bounds = array<i64: 1, 1, 32>}, {transform_indices = @transform_3, window_bounds = array<i64: 1, 8, 32>}, {transform_indices = @transform_4, window_bounds = array<i64: 1, 8, 32>}]} {
    %c0_i32 = arith.constant 0 : i32
    %0 = arith.cmpi eq, %arg2, %c0_i32 : i32
    %1 = arith.extui %0 : i1 to i32
    %c0_i32_0 = arith.constant 0 : i32
    %2 = arith.cmpi ne, %1, %c0_i32_0 : i32
    scf.if %2 {
      %cst_12 = arith.constant 0.000000e+00 : f32
      %14 = vector.broadcast %cst_12 : f32 to vector<8x32xf32>
      %c0_13 = arith.constant 0 : index
      %c0_14 = arith.constant 0 : index
      %15 = vector.load %arg8[%c0_13, %c0_14] : memref<8x32xf32, #tpu.memory_space<vmem>>, vector<8x32xf32>
      tpu.vector_store %arg8[%c0_13, %c0_14], %14 {strides = array<i32>} : memref<8x32xf32, #tpu.memory_space<vmem>>, vector<8x32xf32>,
    } else {
    }
    %c0 = arith.constant 0 : index
    %c0_1 = arith.constant 0 : index
    %3 = vector.load %arg8[%c0, %c0_1] : memref<8x32xf32, #tpu.memory_space<vmem>>, vector<8x32xf32>
    %c0_2 = arith.constant 0 : index
    %c0_3 = arith.constant 0 : index
    %c0_4 = arith.constant 0 : index
    %c0_5 = arith.constant 0 : index
    %4 = vector.load %arg3[%c0_2, %c0_3, %c0_4, %c0_5] : memref<1x1x8x8xbf16, #tpu.memory_space<vmem>>, vector<1x1x8x8xbf16>
    %5 = vector.shape_cast %4 : vector<1x1x8x8xbf16> to vector<8x8xbf16>
    %c0_6 = arith.constant 0 : index
    %c0_7 = arith.constant 0 : index
    %c0_8 = arith.constant 0 : index
    %6 = vector.load %arg4[%c0_6, %c0_7, %c0_8] : memref<1x8x32xbf16, #tpu.memory_space<vmem>>, vector<1x8x32xbf16>
    %7 = vector.shape_cast %6 : vector<1x8x32xbf16> to vector<8x32xbf16>
    %cst = arith.constant dense<0.000000e+00> : vector<8x32xf32>
    %8 = tpu.matmul %5, %7, %cst {dimension_numbers = #tpu.dot_dimension_numbers<[1], [0], [0], [1], [0, 0, 1, 1], [], []>} : vector<8x8xbf16>, vector<8x32xbf16>, vector<8x32xf32> -> vector<8x32xf32>
    %9 = arith.addf %3, %8 : vector<8x32xf32>
    %c0_9 = arith.constant 0 : index
    %c0_10 = arith.constant 0 : index
    %10 = vector.load %arg8[%c0_9, %c0_10] : memref<8x32xf32, #tpu.memory_space<vmem>>, vector<8x32xf32>
    tpu.vector_store %arg8[%c0_9, %c0_10], %9 {strides = array<i32>} : memref<8x32xf32, #tpu.memory_space<vmem>>, vector<8x32xf32>,
    %c3_i32 = arith.constant 3 : i32
    %11 = arith.cmpi eq, %arg2, %c3_i32 : i32
    %12 = arith.extui %11 : i1 to i32
    %c0_i32_11 = arith.constant 0 : i32
    %13 = arith.cmpi ne, %12, %c0_i32_11 : i32
    scf.if %13 {
      %c0_12 = arith.constant 0 : index
      %c0_13 = arith.constant 0 : index
      %14 = vector.load %arg8[%c0_12, %c0_13] : memref<8x32xf32, #tpu.memory_space<vmem>>, vector<8x32xf32>
      %c0_14 = arith.constant 0 : index
      %c0_15 = arith.constant 0 : index
      %c0_16 = arith.constant 0 : index
      %15 = vector.load %arg5[%c0_14, %c0_15, %c0_16] : memref<1x1x32xf32, #tpu.memory_space<vmem>>, vector<1x1x32xf32>
      %16 = vector.shape_cast %15 : vector<1x1x32xf32> to vector<1x32xf32>
      %17 = vector.broadcast %16 : vector<1x32xf32> to vector<8x32xf32>
      %18 = arith.addf %14, %17 : vector<8x32xf32>
      %c0_17 = arith.constant 0 : index
      %c0_18 = arith.constant 0 : index
      %c0_19 = arith.constant 0 : index
      %19 = vector.load %arg6[%c0_17, %c0_18, %c0_19] : memref<1x8x32xbf16, #tpu.memory_space<vmem>>, vector<1x8x32xbf16>
      %20 = vector.shape_cast %19 : vector<1x8x32xbf16> to vector<8x32xbf16>
      %21 = arith.extf %20 : vector<8x32xbf16> to vector<8x32xf32>
      %22 = arith.addf %18, %21 : vector<8x32xf32>
      %23 = arith.truncf %22 : vector<8x32xf32> to vector<8x32xbf16>
      %c0_20 = arith.constant 0 : index
      %c0_21 = arith.constant 0 : index
      %c0_22 = arith.constant 0 : index
      %24 = vector.load %arg7[%c0_20, %c0_21, %c0_22] : memref<1x8x32xbf16, #tpu.memory_space<vmem>>, vector<1x8x32xbf16>
      %25 = vector.shape_cast %24 : vector<1x8x32xbf16> to vector<8x32xbf16>
      %26 = vector.shape_cast %23 : vector<8x32xbf16> to vector<1x8x32xbf16>
      tpu.vector_store %arg7[%c0_20, %c0_21, %c0_22], %26 {strides = array<i32>} : memref<1x8x32xbf16, #tpu.memory_space<vmem>>, vector<1x8x32xbf16>,
    } else {
    }
    return
  }
  func.func @transform_0(%arg0: i32, %arg1: i32, %arg2: i32) -> (i32, i32, i32, i32) {
    %c0_i32 = arith.constant 0 : i32
    %c0_i32_0 = arith.constant 0 : i32
    %c0_i32_1 = arith.constant 0 : i32
    return %arg0, %arg2, %c0_i32, %c0_i32_0 : i32, i32, i32, i32
  }
  func.func @transform_1(%arg0: i32, %arg1: i32, %arg2: i32) -> (i32, i32, i32) {
    %c0_i32 = arith.constant 0 : i32
    %c0_i32_0 = arith.constant 0 : i32
    return %arg2, %c0_i32, %arg1 : i32, i32, i32
  }
  func.func @transform_2(%arg0: i32, %arg1: i32, %arg2: i32) -> (i32, i32, i32) {
    %c0_i32 = arith.constant 0 : i32
    %c0_i32_0 = arith.constant 0 : i32
    %c0_i32_1 = arith.constant 0 : i32
    return %c0_i32, %c0_i32_0, %arg1 : i32, i32, i32
  }
  func.func @transform_3(%arg0: i32, %arg1: i32, %arg2: i32) -> (i32, i32, i32) {
    %c0_i32 = arith.constant 0 : i32
    %c0_i32_0 = arith.constant 0 : i32
    return %arg0, %c0_i32, %arg1 : i32, i32, i32
  }
  func.func @transform_4(%arg0: i32, %arg1: i32, %arg2: i32) -> (i32, i32, i32) {
    %c0_i32 = arith.constant 0 : i32
    %c0_i32_0 = arith.constant 0 : i32
    return %arg0, %c0_i32, %arg1 : i32, i32, i32
  }
}

module attributes {stable_mosaic.version = 11 : i64} {
  func.func @_linear_kernel(%arg0: i32, %arg1: i32, %arg2: i32, %arg3: memref<16x64xbf16, #tpu.memory_space<vmem>>, %arg4: memref<64x32xbf16, #tpu.memory_space<vmem>>, %arg5: memref<1x32xf32, #tpu.memory_space<vmem>>, %arg6: memref<16x32xbf16, #tpu.memory_space<vmem>>, %arg7: memref<16x32xbf16, #tpu.memory_space<vmem>>, %arg8: memref<16x32xf32, #tpu.memory_space<vmem>>) attributes {dimension_semantics = [#tpu.dimension_semantics<parallel>, #tpu.dimension_semantics<parallel>, #tpu.dimension_semantics<arbitrary>], iteration_bounds = array<i64: 1, 1, 1>, scalar_prefetch = 0 : i64, scratch_operands = 1 : i64, tpu.core_type = #tpu.core_type<tc>, window_params = [{transform_indices = @transform_0, window_bounds = array<i64: 16, 64>}, {transform_indices = @transform_1, window_bounds = array<i64: 64, 32>}, {transform_indices = @transform_2, window_bounds = array<i64: 1, 32>}, {transform_indices = @transform_3, window_bounds = array<i64: 16, 32>}, {transform_indices = @transform_4, window_bounds = array<i64: 16, 32>}]} {
    %c0_i32 = arith.constant 0 : i32
    %0 = arith.cmpi eq, %arg2, %c0_i32 : i32
    %1 = arith.extui %0 : i1 to i32
    %c0_i32_0 = arith.constant 0 : i32
    %2 = arith.cmpi ne, %1, %c0_i32_0 : i32
    scf.if %2 {
      %cst_25 = arith.constant 0.000000e+00 : f32
      %54 = vector.broadcast %cst_25 : f32 to vector<16x32xf32>
      %c0_26 = arith.constant 0 : index
      %c0_27 = arith.constant 0 : index
      %55 = vector.load %arg8[%c0_26, %c0_27] : memref<16x32xf32, #tpu.memory_space<vmem>>, vector<16x32xf32>
      tpu.vector_store %arg8[%c0_26, %c0_27], %54 {strides = array<i32>} : memref<16x32xf32, #tpu.memory_space<vmem>>, vector<16x32xf32>,
    } else {
    }
    %c0 = arith.constant 0 : index
    %c0_1 = arith.constant 0 : index
    %3 = vector.load %arg3[%c0, %c0_1] : memref<16x64xbf16, #tpu.memory_space<vmem>>, vector<16x64xbf16>
    %4 = arith.extf %3 : vector<16x64xbf16> to vector<16x64xf32>
    %cst = arith.constant 0.707106769 : f32
    %5 = vector.broadcast %cst : f32 to vector<16x64xf32>
    %6 = arith.mulf %4, %5 : vector<16x64xf32>
    %7 = math.absf %6 : vector<16x64xf32>
    %cst_2 = arith.constant 0.327591091 : f32
    %8 = vector.broadcast %cst_2 : f32 to vector<16x64xf32>
    %9 = arith.mulf %8, %7 : vector<16x64xf32>
    %cst_3 = arith.constant 1.000000e+00 : f32
    %10 = vector.broadcast %cst_3 : f32 to vector<16x64xf32>
    %11 = arith.addf %10, %9 : vector<16x64xf32>
    %cst_4 = arith.constant 1.000000e+00 : f32
    %12 = vector.broadcast %cst_4 : f32 to vector<16x64xf32>
    %13 = arith.divf %12, %11 : vector<16x64xf32>
    %cst_5 = arith.constant 1.06140542 : f32
    %14 = vector.broadcast %cst_5 : f32 to vector<16x64xf32>
    %15 = arith.mulf %13, %14 : vector<16x64xf32>
    %cst_6 = arith.constant -1.45315206 : f32
    %16 = vector.broadcast %cst_6 : f32 to vector<16x64xf32>
    %17 = arith.addf %16, %15 : vector<16x64xf32>
    %18 = arith.mulf %13, %17 : vector<16x64xf32>
    %cst_7 = arith.constant 1.42141378 : f32
    %19 = vector.broadcast %cst_7 : f32 to vector<16x64xf32>
    %20 = arith.addf %19, %18 : vector<16x64xf32>
    %21 = arith.mulf %13, %20 : vector<16x64xf32>
    %cst_8 = arith.constant -0.284496725 : f32
    %22 = vector.broadcast %cst_8 : f32 to vector<16x64xf32>
    %23 = arith.addf %22, %21 : vector<16x64xf32>
    %24 = arith.mulf %13, %23 : vector<16x64xf32>
    %cst_9 = arith.constant 0.254829586 : f32
    %25 = vector.broadcast %cst_9 : f32 to vector<16x64xf32>
    %26 = arith.addf %25, %24 : vector<16x64xf32>
    %27 = arith.mulf %13, %26 : vector<16x64xf32>
    %cst_10 = arith.constant 0.000000e+00 : f32
    %28 = vector.broadcast %cst_10 : f32 to vector<16x64xf32>
    %29 = arith.subf %28, %7 : vector<16x64xf32>
    %30 = arith.mulf %29, %7 : vector<16x64xf32>
    %31 = math.exp %30 : vector<16x64xf32>
    %32 = arith.mulf %27, %31 : vector<16x64xf32>
    %cst_11 = arith.constant 1.000000e+00 : f32
    %33 = vector.broadcast %cst_11 : f32 to vector<16x64xf32>
    %34 = arith.subf %33, %32 : vector<16x64xf32>
    %cst_12 = arith.constant 0.000000e+00 : f32
    %35 = vector.broadcast %cst_12 : f32 to vector<16x64xf32>
    %36 = arith.cmpf oge, %6, %35 : vector<16x64xf32>
    %cst_13 = arith.constant 0.000000e+00 : f32
    %37 = vector.broadcast %cst_13 : f32 to vector<16x64xf32>
    %38 = arith.subf %37, %34 : vector<16x64xf32>
    %39 = arith.select %36, %34, %38 : vector<16x64xi1>, vector<16x64xf32>
    %cst_14 = arith.constant 5.000000e-01 : f32
    %40 = vector.broadcast %cst_14 : f32 to vector<16x64xf32>
    %41 = arith.mulf %4, %40 : vector<16x64xf32>
    %cst_15 = arith.constant 1.000000e+00 : f32
    %42 = vector.broadcast %cst_15 : f32 to vector<16x64xf32>
    %43 = arith.addf %42, %39 : vector<16x64xf32>
    %44 = arith.mulf %41, %43 : vector<16x64xf32>
    %45 = arith.truncf %44 : vector<16x64xf32> to vector<16x64xbf16>
    %c0_16 = arith.constant 0 : index
    %c0_17 = arith.constant 0 : index
    %46 = vector.load %arg8[%c0_16, %c0_17] : memref<16x32xf32, #tpu.memory_space<vmem>>, vector<16x32xf32>
    %c0_18 = arith.constant 0 : index
    %c0_19 = arith.constant 0 : index
    %47 = vector.load %arg4[%c0_18, %c0_19] : memref<64x32xbf16, #tpu.memory_space<vmem>>, vector<64x32xbf16>
    %cst_20 = arith.constant dense<0.000000e+00> : vector<16x32xf32>
    %48 = tpu.matmul %45, %47, %cst_20 {dimension_numbers = #tpu.dot_dimension_numbers<[1], [0], [0], [1], [0, 0, 1, 1], [], []>} : vector<16x64xbf16>, vector<64x32xbf16>, vector<16x32xf32> -> vector<16x32xf32>
    %49 = arith.addf %46, %48 : vector<16x32xf32>
    %c0_21 = arith.constant 0 : index
    %c0_22 = arith.constant 0 : index
    %50 = vector.load %arg8[%c0_21, %c0_22] : memref<16x32xf32, #tpu.memory_space<vmem>>, vector<16x32xf32>
    tpu.vector_store %arg8[%c0_21, %c0_22], %49 {strides = array<i32>} : memref<16x32xf32, #tpu.memory_space<vmem>>, vector<16x32xf32>,
    %c0_i32_23 = arith.constant 0 : i32
    %51 = arith.cmpi eq, %arg2, %c0_i32_23 : i32
    %52 = arith.extui %51 : i1 to i32
    %c0_i32_24 = arith.constant 0 : i32
    %53 = arith.cmpi ne, %52, %c0_i32_24 : i32
    scf.if %53 {
      %c0_25 = arith.constant 0 : index
      %c0_26 = arith.constant 0 : index
      %54 = vector.load %arg8[%c0_25, %c0_26] : memref<16x32xf32, #tpu.memory_space<vmem>>, vector<16x32xf32>
      %c0_27 = arith.constant 0 : index
      %c0_28 = arith.constant 0 : index
      %55 = vector.load %arg5[%c0_27, %c0_28] : memref<1x32xf32, #tpu.memory_space<vmem>>, vector<1x32xf32>
      %56 = vector.broadcast %55 : vector<1x32xf32> to vector<16x32xf32>
      %57 = arith.addf %54, %56 : vector<16x32xf32>
      %c0_29 = arith.constant 0 : index
      %c0_30 = arith.constant 0 : index
      %58 = vector.load %arg6[%c0_29, %c0_30] : memref<16x32xbf16, #tpu.memory_space<vmem>>, vector<16x32xbf16>
      %59 = arith.extf %58 : vector<16x32xbf16> to vector<16x32xf32>
      %60 = arith.addf %57, %59 : vector<16x32xf32>
      %61 = arith.truncf %60 : vector<16x32xf32> to vector<16x32xbf16>
      %c0_31 = arith.constant 0 : index
      %c0_32 = arith.constant 0 : index
      %62 = vector.load %arg7[%c0_31, %c0_32] : memref<16x32xbf16, #tpu.memory_space<vmem>>, vector<16x32xbf16>
      tpu.vector_store %arg7[%c0_31, %c0_32], %61 {strides = array<i32>} : memref<16x32xbf16, #tpu.memory_space<vmem>>, vector<16x32xbf16>,
    } else {
    }
    return
  }
  func.func @transform_0(%arg0: i32, %arg1: i32, %arg2: i32) -> (i32, i32) {
    %c0_i32 = arith.constant 0 : i32
    return %arg0, %arg2 : i32, i32
  }
  func.func @transform_1(%arg0: i32, %arg1: i32, %arg2: i32) -> (i32, i32) {
    %c0_i32 = arith.constant 0 : i32
    return %arg2, %arg1 : i32, i32
  }
  func.func @transform_2(%arg0: i32, %arg1: i32, %arg2: i32) -> (i32, i32) {
    %c0_i32 = arith.constant 0 : i32
    %c0_i32_0 = arith.constant 0 : i32
    return %c0_i32, %arg1 : i32, i32
  }
  func.func @transform_3(%arg0: i32, %arg1: i32, %arg2: i32) -> (i32, i32) {
    %c0_i32 = arith.constant 0 : i32
    return %arg0, %arg1 : i32, i32
  }
  func.func @transform_4(%arg0: i32, %arg1: i32, %arg2: i32) -> (i32, i32) {
    %c0_i32 = arith.constant 0 : i32
    return %arg0, %arg1 : i32, i32
  }
}

module attributes {stable_mosaic.version = 11 : i64} {
  func.func @_layer_norm_kernel(%arg0: i32, %arg1: memref<16x32xbf16, #tpu.memory_space<vmem>>, %arg2: memref<1x32xf32, #tpu.memory_space<vmem>>, %arg3: memref<1x32xf32, #tpu.memory_space<vmem>>, %arg4: memref<16x32xf32, #tpu.memory_space<vmem>>) attributes {dimension_semantics = [#tpu.dimension_semantics<parallel>], iteration_bounds = array<i64: 1>, scalar_prefetch = 0 : i64, scratch_operands = 0 : i64, tpu.core_type = #tpu.core_type<tc>, window_params = [{transform_indices = @transform_0, window_bounds = array<i64: 16, 32>}, {pipeline_mode = #tpu.pipeline_mode<synchronous>, transform_indices = @transform_1, window_bounds = array<i64: 1, 32>}, {pipeline_mode = #tpu.pipeline_mode<synchronous>, transform_indices = @transform_2, window_bounds = array<i64: 1, 32>}, {transform_indices = @transform_3, window_bounds = array<i64: 16, 32>}]} {
    %c0 = arith.constant 0 : index
    %c0_0 = arith.constant 0 : index
    %0 = vector.load %arg1[%c0, %c0_0] : memref<16x32xbf16, #tpu.memory_space<vmem>>, vector<16x32xbf16>
    %1 = arith.extf %0 : vector<16x32xbf16> to vector<16x32xf32>
    %cst = arith.constant dense<0.000000e+00> : vector<16xf32>
    %2 = vector.multi_reduction <add>, %1, %cst [1] : vector<16x32xf32> to vector<16xf32>
    %3 = vector.shape_cast %2 : vector<16xf32> to vector<16x1xf32>
    %cst_1 = arith.constant 3.200000e+01 : f32
    %4 = vector.broadcast %cst_1 : f32 to vector<16x1xf32>
    %5 = arith.divf %3, %4 : vector<16x1xf32>
    %6 = vector.broadcast %5 : vector<16x1xf32> to vector<16x32xf32>
    %7 = arith.subf %1, %6 : vector<16x32xf32>
    %8 = arith.mulf %7, %7 : vector<16x32xf32>
    %cst_2 = arith.constant dense<0.000000e+00> : vector<16xf32>
    %9 = vector.multi_reduction <add>, %8, %cst_2 [1] : vector<16x32xf32> to vector<16xf32>
    %10 = vector.shape_cast %9 : vector<16xf32> to vector<16x1xf32>
    %cst_3 = arith.constant 3.200000e+01 : f32
    %11 = vector.broadcast %cst_3 : f32 to vector<16x1xf32>
    %12 = arith.divf %10, %11 : vector<16x1xf32>
    %13 = vector.broadcast %5 : vector<16x1xf32> to vector<16x32xf32>
    %14 = arith.subf %1, %13 : vector<16x32xf32>
    %cst_4 = arith.constant 9.99999996E-13 : f32
    %15 = vector.broadcast %cst_4 : f32 to vector<16x1xf32>
    %16 = arith.addf %12, %15 : vector<16x1xf32>
    %17 = math.rsqrt %16 : vector<16x1xf32>
    %18 = vector.broadcast %17 : vector<16x1xf32> to vector<16x32xf32>
    %19 = arith.mulf %14, %18 : vector<16x32xf32>
    %c0_5 = arith.constant 0 : index
    %c0_6 = arith.constant 0 : index
    %20 = vector.load %arg2[%c0_5, %c0_6] : memref<1x32xf32, #tpu.memory_space<vmem>>, vector<1x32xf32>
    %21 = vector.broadcast %20 : vector<1x32xf32> to vector<16x32xf32>
    %22 = arith.mulf %19, %21 : vector<16x32xf32>
    %c0_7 = arith.constant 0 : index
    %c0_8 = arith.constant 0 : index
    %23 = vector.load %arg3[%c0_7, %c0_8] : memref<1x32xf32, #tpu.memory_space<vmem>>, vector<1x32xf32>
    %24 = vector.broadcast %23 : vector<1x32xf32> to vector<16x32xf32>
    %25 = arith.addf %22, %24 : vector<16x32xf32>
    %c0_9 = arith.constant 0 : index
    %c0_10 = arith.constant 0 : index
    %26 = vector.load %arg4[%c0_9, %c0_10] : memref<16x32xf32, #tpu.memory_space<vmem>>, vector<16x32xf32>
    tpu.vector_store %arg4[%c0_9, %c0_10], %25 {strides = array<i32>} : memref<16x32xf32, #tpu.memory_space<vmem>>, vector<16x32xf32>,
    return
  }
  func.func @transform_0(%arg0: i32) -> (i32, i32) {
    %c0_i32 = arith.constant 0 : i32
    %c0_i32_0 = arith.constant 0 : i32
    return %arg0, %c0_i32 : i32, i32
  }
  func.func @transform_1(%arg0: i32) -> (i32, i32) {
    %c0_i32 = arith.constant 0 : i32
    %c0_i32_0 = arith.constant 0 : i32
    %c0_i32_1 = arith.constant 0 : i32
    return %c0_i32, %c0_i32_0 : i32, i32
  }
  func.func @transform_2(%arg0: i32) -> (i32, i32) {
    %c0_i32 = arith.constant 0 : i32
    %c0_i32_0 = arith.constant 0 : i32
    %c0_i32_1 = arith.constant 0 : i32
    return %c0_i32, %c0_i32_0 : i32, i32
  }
  func.func @transform_3(%arg0: i32) -> (i32, i32) {
    %c0_i32 = arith.constant 0 : i32
    %c0_i32_0 = arith.constant 0 : i32
    return %arg0, %c0_i32 : i32, i32
  }
}

module attributes {stable_mosaic.version = 11 : i64} {
  func.func @_ln_linear_kernel(%arg0: i32, %arg1: i32, %arg2: memref<16x32xf32, #tpu.memory_space<vmem>>, %arg3: memref<1x32xf32, #tpu.memory_space<vmem>>, %arg4: memref<1x32xf32, #tpu.memory_space<vmem>>, %arg5: memref<32x64xbf16, #tpu.memory_space<vmem>>, %arg6: memref<1x64xf32, #tpu.memory_space<vmem>>, %arg7: memref<16x64xf32, #tpu.memory_space<vmem>>, %arg8: memref<16x32xbf16, #tpu.memory_space<vmem>>) attributes {dimension_semantics = [#tpu.dimension_semantics<parallel>, #tpu.dimension_semantics<arbitrary>], iteration_bounds = array<i64: 1, 1>, scalar_prefetch = 0 : i64, scratch_operands = 1 : i64, tpu.core_type = #tpu.core_type<tc>, window_params = [{transform_indices = @transform_0, window_bounds = array<i64: 16, 32>}, {pipeline_mode = #tpu.pipeline_mode<synchronous>, transform_indices = @transform_1, window_bounds = array<i64: 1, 32>}, {pipeline_mode = #tpu.pipeline_mode<synchronous>, transform_indices = @transform_2, window_bounds = array<i64: 1, 32>}, {transform_indices = @transform_3, window_bounds = array<i64: 32, 64>}, {transform_indices = @transform_4, window_bounds = array<i64: 1, 64>}, {transform_indices = @transform_5, window_bounds = array<i64: 16, 64>}]} {
    %c0_i32 = arith.constant 0 : i32
    %0 = arith.cmpi eq, %arg1, %c0_i32 : i32
    %1 = arith.extui %0 : i1 to i32
    %c0_i32_0 = arith.constant 0 : i32
    %2 = arith.cmpi ne, %1, %c0_i32_0 : i32
    scf.if %2 {
      %c0_8 = arith.constant 0 : index
      %c0_9 = arith.constant 0 : index
      %10 = vector.load %arg2[%c0_8, %c0_9] : memref<16x32xf32, #tpu.memory_space<vmem>>, vector<16x32xf32>
      %cst_10 = arith.constant dense<0.000000e+00> : vector<16xf32>
      %11 = vector.multi_reduction <add>, %10, %cst_10 [1] : vector<16x32xf32> to vector<16xf32>
      %12 = vector.shape_cast %11 : vector<16xf32> to vector<16x1xf32>
      %cst_11 = arith.constant 3.200000e+01 : f32
      %13 = vector.broadcast %cst_11 : f32 to vector<16x1xf32>
      %14 = arith.divf %12, %13 : vector<16x1xf32>
      %15 = vector.broadcast %14 : vector<16x1xf32> to vector<16x32xf32>
      %16 = arith.subf %10, %15 : vector<16x32xf32>
      %17 = arith.mulf %16, %16 : vector<16x32xf32>
      %cst_12 = arith.constant dense<0.000000e+00> : vector<16xf32>
      %18 = vector.multi_reduction <add>, %17, %cst_12 [1] : vector<16x32xf32> to vector<16xf32>
      %19 = vector.shape_cast %18 : vector<16xf32> to vector<16x1xf32>
      %cst_13 = arith.constant 3.200000e+01 : f32
      %20 = vector.broadcast %cst_13 : f32 to vector<16x1xf32>
      %21 = arith.divf %19, %20 : vector<16x1xf32>
      %22 = vector.broadcast %14 : vector<16x1xf32> to vector<16x32xf32>
      %23 = arith.subf %10, %22 : vector<16x32xf32>
      %cst_14 = arith.constant 9.99999974E-6 : f32
      %24 = vector.broadcast %cst_14 : f32 to vector<16x1xf32>
      %25 = arith.addf %21, %24 : vector<16x1xf32>
      %26 = math.rsqrt %25 : vector<16x1xf32>
      %27 = vector.broadcast %26 : vector<16x1xf32> to vector<16x32xf32>
      %28 = arith.mulf %23, %27 : vector<16x32xf32>
      %c0_15 = arith.constant 0 : index
      %c0_16 = arith.constant 0 : index
      %29 = vector.load %arg3[%c0_15, %c0_16] : memref<1x32xf32, #tpu.memory_space<vmem>>, vector<1x32xf32>
      %30 = vector.broadcast %29 : vector<1x32xf32> to vector<16x32xf32>
      %31 = arith.mulf %28, %30 : vector<16x32xf32>
      %c0_17 = arith.constant 0 : index
      %c0_18 = arith.constant 0 : index
      %32 = vector.load %arg4[%c0_17, %c0_18] : memref<1x32xf32, #tpu.memory_space<vmem>>, vector<1x32xf32>
      %33 = vector.broadcast %32 : vector<1x32xf32> to vector<16x32xf32>
      %34 = arith.addf %31, %33 : vector<16x32xf32>
      %35 = arith.truncf %34 : vector<16x32xf32> to vector<16x32xbf16>
      %c0_19 = arith.constant 0 : index
      %c0_20 = arith.constant 0 : index
      %36 = vector.load %arg8[%c0_19, %c0_20] : memref<16x32xbf16, #tpu.memory_space<vmem>>, vector<16x32xbf16>
      tpu.vector_store %arg8[%c0_19, %c0_20], %35 {strides = array<i32>} : memref<16x32xbf16, #tpu.memory_space<vmem>>, vector<16x32xbf16>,
    } else {
    }
    %c0 = arith.constant 0 : index
    %c0_1 = arith.constant 0 : index
    %3 = vector.load %arg8[%c0, %c0_1] : memref<16x32xbf16, #tpu.memory_space<vmem>>, vector<16x32xbf16>
    %c0_2 = arith.constant 0 : index
    %c0_3 = arith.constant 0 : index
    %4 = vector.load %arg5[%c0_2, %c0_3] : memref<32x64xbf16, #tpu.memory_space<vmem>>, vector<32x64xbf16>
    %cst = arith.constant dense<0.000000e+00> : vector<16x64xf32>
    %5 = tpu.matmul %3, %4, %cst {dimension_numbers = #tpu.dot_dimension_numbers<[1], [0], [0], [1], [0, 0, 1, 1], [], []>} : vector<16x32xbf16>, vector<32x64xbf16>, vector<16x64xf32> -> vector<16x64xf32>
    %c0_4 = arith.constant 0 : index
    %c0_5 = arith.constant 0 : index
    %6 = vector.load %arg6[%c0_4, %c0_5] : memref<1x64xf32, #tpu.memory_space<vmem>>, vector<1x64xf32>
    %7 = vector.broadcast %6 : vector<1x64xf32> to vector<16x64xf32>
    %8 = arith.addf %5, %7 : vector<16x64xf32>
    %c0_6 = arith.constant 0 : index
    %c0_7 = arith.constant 0 : index
    %9 = vector.load %arg7[%c0_6, %c0_7] : memref<16x64xf32, #tpu.memory_space<vmem>>, vector<16x64xf32>
    tpu.vector_store %arg7[%c0_6, %c0_7], %8 {strides = array<i32>} : memref<16x64xf32, #tpu.memory_space<vmem>>, vector<16x64xf32>,
    return
  }
  func.func @transform_0(%arg0: i32, %arg1: i32) -> (i32, i32) {
    %c0_i32 = arith.constant 0 : i32
    %c0_i32_0 = arith.constant 0 : i32
    return %arg0, %c0_i32 : i32, i32
  }
  func.func @transform_1(%arg0: i32, %arg1: i32) -> (i32, i32) {
    %c0_i32 = arith.constant 0 : i32
    %c0_i32_0 = arith.constant 0 : i32
    %c0_i32_1 = arith.constant 0 : i32
    return %c0_i32, %c0_i32_0 : i32, i32
  }
  func.func @transform_2(%arg0: i32, %arg1: i32) -> (i32, i32) {
    %c0_i32 = arith.constant 0 : i32
    %c0_i32_0 = arith.constant 0 : i32
    %c0_i32_1 = arith.constant 0 : i32
    return %c0_i32, %c0_i32_0 : i32, i32
  }
  func.func @transform_3(%arg0: i32, %arg1: i32) -> (i32, i32) {
    %c0_i32 = arith.constant 0 : i32
    %c0_i32_0 = arith.constant 0 : i32
    return %c0_i32, %arg1 : i32, i32
  }
  func.func @transform_4(%arg0: i32, %arg1: i32) -> (i32, i32) {
    %c0_i32 = arith.constant 0 : i32
    %c0_i32_0 = arith.constant 0 : i32
    return %c0_i32, %arg1 : i32, i32
  }
  func.func @transform_5(%arg0: i32, %arg1: i32) -> (i32, i32) {
    %c0_i32 = arith.constant 0 : i32
    return %arg0, %arg1 : i32, i32
  }
}

module attributes {stable_mosaic.version = 11 : i64} {
  func.func @_ln_linear_kernel(%arg0: i32, %arg1: i32, %arg2: memref<16x32xf32, #tpu.memory_space<vmem>>, %arg3: memref<1x32xf32, #tpu.memory_space<vmem>>, %arg4: memref<1x32xf32, #tpu.memory_space<vmem>>, %arg5: memref<32x96xbf16, #tpu.memory_space<vmem>>, %arg6: memref<1x96xf32, #tpu.memory_space<vmem>>, %arg7: memref<16x96xf32, #tpu.memory_space<vmem>>, %arg8: memref<16x32xbf16, #tpu.memory_space<vmem>>) attributes {dimension_semantics = [#tpu.dimension_semantics<parallel>, #tpu.dimension_semantics<arbitrary>], iteration_bounds = array<i64: 1, 1>, scalar_prefetch = 0 : i64, scratch_operands = 1 : i64, tpu.core_type = #tpu.core_type<tc>, window_params = [{transform_indices = @transform_0, window_bounds = array<i64: 16, 32>}, {pipeline_mode = #tpu.pipeline_mode<synchronous>, transform_indices = @transform_1, window_bounds = array<i64: 1, 32>}, {pipeline_mode = #tpu.pipeline_mode<synchronous>, transform_indices = @transform_2, window_bounds = array<i64: 1, 32>}, {transform_indices = @transform_3, window_bounds = array<i64: 32, 96>}, {transform_indices = @transform_4, window_bounds = array<i64: 1, 96>}, {transform_indices = @transform_5, window_bounds = array<i64: 16, 96>}]} {
    %c0_i32 = arith.constant 0 : i32
    %0 = arith.cmpi eq, %arg1, %c0_i32 : i32
    %1 = arith.extui %0 : i1 to i32
    %c0_i32_0 = arith.constant 0 : i32
    %2 = arith.cmpi ne, %1, %c0_i32_0 : i32
    scf.if %2 {
      %c0_8 = arith.constant 0 : index
      %c0_9 = arith.constant 0 : index
      %10 = vector.load %arg2[%c0_8, %c0_9] : memref<16x32xf32, #tpu.memory_space<vmem>>, vector<16x32xf32>
      %cst_10 = arith.constant dense<0.000000e+00> : vector<16xf32>
      %11 = vector.multi_reduction <add>, %10, %cst_10 [1] : vector<16x32xf32> to vector<16xf32>
      %12 = vector.shape_cast %11 : vector<16xf32> to vector<16x1xf32>
      %cst_11 = arith.constant 3.200000e+01 : f32
      %13 = vector.broadcast %cst_11 : f32 to vector<16x1xf32>
      %14 = arith.divf %12, %13 : vector<16x1xf32>
      %15 = vector.broadcast %14 : vector<16x1xf32> to vector<16x32xf32>
      %16 = arith.subf %10, %15 : vector<16x32xf32>
      %17 = arith.mulf %16, %16 : vector<16x32xf32>
      %cst_12 = arith.constant dense<0.000000e+00> : vector<16xf32>
      %18 = vector.multi_reduction <add>, %17, %cst_12 [1] : vector<16x32xf32> to vector<16xf32>
      %19 = vector.shape_cast %18 : vector<16xf32> to vector<16x1xf32>
      %cst_13 = arith.constant 3.200000e+01 : f32
      %20 = vector.broadcast %cst_13 : f32 to vector<16x1xf32>
      %21 = arith.divf %19, %20 : vector<16x1xf32>
      %22 = vector.broadcast %14 : vector<16x1xf32> to vector<16x32xf32>
      %23 = arith.subf %10, %22 : vector<16x32xf32>
      %cst_14 = arith.constant 9.99999974E-6 : f32
      %24 = vector.broadcast %cst_14 : f32 to vector<16x1xf32>
      %25 = arith.addf %21, %24 : vector<16x1xf32>
      %26 = math.rsqrt %25 : vector<16x1xf32>
      %27 = vector.broadcast %26 : vector<16x1xf32> to vector<16x32xf32>
      %28 = arith.mulf %23, %27 : vector<16x32xf32>
      %c0_15 = arith.constant 0 : index
      %c0_16 = arith.constant 0 : index
      %29 = vector.load %arg3[%c0_15, %c0_16] : memref<1x32xf32, #tpu.memory_space<vmem>>, vector<1x32xf32>
      %30 = vector.broadcast %29 : vector<1x32xf32> to vector<16x32xf32>
      %31 = arith.mulf %28, %30 : vector<16x32xf32>
      %c0_17 = arith.constant 0 : index
      %c0_18 = arith.constant 0 : index
      %32 = vector.load %arg4[%c0_17, %c0_18] : memref<1x32xf32, #tpu.memory_space<vmem>>, vector<1x32xf32>
      %33 = vector.broadcast %32 : vector<1x32xf32> to vector<16x32xf32>
      %34 = arith.addf %31, %33 : vector<16x32xf32>
      %35 = arith.truncf %34 : vector<16x32xf32> to vector<16x32xbf16>
      %c0_19 = arith.constant 0 : index
      %c0_20 = arith.constant 0 : index
      %36 = vector.load %arg8[%c0_19, %c0_20] : memref<16x32xbf16, #tpu.memory_space<vmem>>, vector<16x32xbf16>
      tpu.vector_store %arg8[%c0_19, %c0_20], %35 {strides = array<i32>} : memref<16x32xbf16, #tpu.memory_space<vmem>>, vector<16x32xbf16>,
    } else {
    }
    %c0 = arith.constant 0 : index
    %c0_1 = arith.constant 0 : index
    %3 = vector.load %arg8[%c0, %c0_1] : memref<16x32xbf16, #tpu.memory_space<vmem>>, vector<16x32xbf16>
    %c0_2 = arith.constant 0 : index
    %c0_3 = arith.constant 0 : index
    %4 = vector.load %arg5[%c0_2, %c0_3] : memref<32x96xbf16, #tpu.memory_space<vmem>>, vector<32x96xbf16>
    %cst = arith.constant dense<0.000000e+00> : vector<16x96xf32>
    %5 = tpu.matmul %3, %4, %cst {dimension_numbers = #tpu.dot_dimension_numbers<[1], [0], [0], [1], [0, 0, 1, 1], [], []>} : vector<16x32xbf16>, vector<32x96xbf16>, vector<16x96xf32> -> vector<16x96xf32>
    %c0_4 = arith.constant 0 : index
    %c0_5 = arith.constant 0 : index
    %6 = vector.load %arg6[%c0_4, %c0_5] : memref<1x96xf32, #tpu.memory_space<vmem>>, vector<1x96xf32>
    %7 = vector.broadcast %6 : vector<1x96xf32> to vector<16x96xf32>
    %8 = arith.addf %5, %7 : vector<16x96xf32>
    %c0_6 = arith.constant 0 : index
    %c0_7 = arith.constant 0 : index
    %9 = vector.load %arg7[%c0_6, %c0_7] : memref<16x96xf32, #tpu.memory_space<vmem>>, vector<16x96xf32>
    tpu.vector_store %arg7[%c0_6, %c0_7], %8 {strides = array<i32>} : memref<16x96xf32, #tpu.memory_space<vmem>>, vector<16x96xf32>,
    return
  }
  func.func @transform_0(%arg0: i32, %arg1: i32) -> (i32, i32) {
    %c0_i32 = arith.constant 0 : i32
    %c0_i32_0 = arith.constant 0 : i32
    return %arg0, %c0_i32 : i32, i32
  }
  func.func @transform_1(%arg0: i32, %arg1: i32) -> (i32, i32) {
    %c0_i32 = arith.constant 0 : i32
    %c0_i32_0 = arith.constant 0 : i32
    %c0_i32_1 = arith.constant 0 : i32
    return %c0_i32, %c0_i32_0 : i32, i32
  }
  func.func @transform_2(%arg0: i32, %arg1: i32) -> (i32, i32) {
    %c0_i32 = arith.constant 0 : i32
    %c0_i32_0 = arith.constant 0 : i32
    %c0_i32_1 = arith.constant 0 : i32
    return %c0_i32, %c0_i32_0 : i32, i32
  }
  func.func @transform_3(%arg0: i32, %arg1: i32) -> (i32, i32) {
    %c0_i32 = arith.constant 0 : i32
    %c0_i32_0 = arith.constant 0 : i32
    return %c0_i32, %arg1 : i32, i32
  }
  func.func @transform_4(%arg0: i32, %arg1: i32) -> (i32, i32) {
    %c0_i32 = arith.constant 0 : i32
    %c0_i32_0 = arith.constant 0 : i32
    return %c0_i32, %arg1 : i32, i32
  }
  func.func @transform_5(%arg0: i32, %arg1: i32) -> (i32, i32) {
    %c0_i32 = arith.constant 0 : i32
    return %arg0, %arg1 : i32, i32
  }
}

module attributes {stable_mosaic.version = 11 : i64} {
  func.func @_linear_kernel(%arg0: i32, %arg1: i32, %arg2: i32, %arg3: memref<16x32xf32, #tpu.memory_space<vmem>>, %arg4: memref<32x32xbf16, #tpu.memory_space<vmem>>, %arg5: memref<1x32xf32, #tpu.memory_space<vmem>>, %arg6: memref<16x32xf32, #tpu.memory_space<vmem>>, %arg7: memref<16x32xf32, #tpu.memory_space<vmem>>, %arg8: memref<16x32xf32, #tpu.memory_space<vmem>>) attributes {dimension_semantics = [#tpu.dimension_semantics<parallel>, #tpu.dimension_semantics<parallel>, #tpu.dimension_semantics<arbitrary>], iteration_bounds = array<i64: 1, 1, 1>, scalar_prefetch = 0 : i64, scratch_operands = 1 : i64, tpu.core_type = #tpu.core_type<tc>, window_params = [{transform_indices = @transform_0, window_bounds = array<i64: 16, 32>}, {transform_indices = @transform_1, window_bounds = array<i64: 32, 32>}, {transform_indices = @transform_2, window_bounds = array<i64: 1, 32>}, {transform_indices = @transform_3, window_bounds = array<i64: 16, 32>}, {transform_indices = @transform_4, window_bounds = array<i64: 16, 32>}]} {
    %c0_i32 = arith.constant 0 : i32
    %0 = arith.cmpi eq, %arg2, %c0_i32 : i32
    %1 = arith.extui %0 : i1 to i32
    %c0_i32_0 = arith.constant 0 : i32
    %2 = arith.cmpi ne, %1, %c0_i32_0 : i32
    scf.if %2 {
      %cst_10 = arith.constant 0.000000e+00 : f32
      %13 = vector.broadcast %cst_10 : f32 to vector<16x32xf32>
      %c0_11 = arith.constant 0 : index
      %c0_12 = arith.constant 0 : index
      %14 = vector.load %arg8[%c0_11, %c0_12] : memref<16x32xf32, #tpu.memory_space<vmem>>, vector<16x32xf32>
      tpu.vector_store %arg8[%c0_11, %c0_12], %13 {strides = array<i32>} : memref<16x32xf32, #tpu.memory_space<vmem>>, vector<16x32xf32>,
    } else {
    }
    %c0 = arith.constant 0 : index
    %c0_1 = arith.constant 0 : index
    %3 = vector.load %arg3[%c0, %c0_1] : memref<16x32xf32, #tpu.memory_space<vmem>>, vector<16x32xf32>
    %4 = arith.truncf %3 : vector<16x32xf32> to vector<16x32xbf16>
    %c0_2 = arith.constant 0 : index
    %c0_3 = arith.constant 0 : index
    %5 = vector.load %arg8[%c0_2, %c0_3] : memref<16x32xf32, #tpu.memory_space<vmem>>, vector<16x32xf32>
    %c0_4 = arith.constant 0 : index
    %c0_5 = arith.constant 0 : index
    %6 = vector.load %arg4[%c0_4, %c0_5] : memref<32x32xbf16, #tpu.memory_space<vmem>>, vector<32x32xbf16>
    %cst = arith.constant dense<0.000000e+00> : vector<16x32xf32>
    %7 = tpu.matmul %4, %6, %cst {dimension_numbers = #tpu.dot_dimension_numbers<[1], [0], [0], [1], [0, 0, 1, 1], [], []>} : vector<16x32xbf16>, vector<32x32xbf16>, vector<16x32xf32> -> vector<16x32xf32>
    %8 = arith.addf %5, %7 : vector<16x32xf32>
    %c0_6 = arith.constant 0 : index
    %c0_7 = arith.constant 0 : index
    %9 = vector.load %arg8[%c0_6, %c0_7] : memref<16x32xf32, #tpu.memory_space<vmem>>, vector<16x32xf32>
    tpu.vector_store %arg8[%c0_6, %c0_7], %8 {strides = array<i32>} : memref<16x32xf32, #tpu.memory_space<vmem>>, vector<16x32xf32>,
    %c0_i32_8 = arith.constant 0 : i32
    %10 = arith.cmpi eq, %arg2, %c0_i32_8 : i32
    %11 = arith.extui %10 : i1 to i32
    %c0_i32_9 = arith.constant 0 : i32
    %12 = arith.cmpi ne, %11, %c0_i32_9 : i32
    scf.if %12 {
      %c0_10 = arith.constant 0 : index
      %c0_11 = arith.constant 0 : index
      %13 = vector.load %arg8[%c0_10, %c0_11] : memref<16x32xf32, #tpu.memory_space<vmem>>, vector<16x32xf32>
      %c0_12 = arith.constant 0 : index
      %c0_13 = arith.constant 0 : index
      %14 = vector.load %arg5[%c0_12, %c0_13] : memref<1x32xf32, #tpu.memory_space<vmem>>, vector<1x32xf32>
      %15 = vector.broadcast %14 : vector<1x32xf32> to vector<16x32xf32>
      %16 = arith.addf %13, %15 : vector<16x32xf32>
      %c0_14 = arith.constant 0 : index
      %c0_15 = arith.constant 0 : index
      %17 = vector.load %arg6[%c0_14, %c0_15] : memref<16x32xf32, #tpu.memory_space<vmem>>, vector<16x32xf32>
      %18 = arith.addf %16, %17 : vector<16x32xf32>
      %c0_16 = arith.constant 0 : index
      %c0_17 = arith.constant 0 : index
      %19 = vector.load %arg7[%c0_16, %c0_17] : memref<16x32xf32, #tpu.memory_space<vmem>>, vector<16x32xf32>
      tpu.vector_store %arg7[%c0_16, %c0_17], %18 {strides = array<i32>} : memref<16x32xf32, #tpu.memory_space<vmem>>, vector<16x32xf32>,
    } else {
    }
    return
  }
  func.func @transform_0(%arg0: i32, %arg1: i32, %arg2: i32) -> (i32, i32) {
    %c0_i32 = arith.constant 0 : i32
    return %arg0, %arg2 : i32, i32
  }
  func.func @transform_1(%arg0: i32, %arg1: i32, %arg2: i32) -> (i32, i32) {
    %c0_i32 = arith.constant 0 : i32
    return %arg2, %arg1 : i32, i32
  }
  func.func @transform_2(%arg0: i32, %arg1: i32, %arg2: i32) -> (i32, i32) {
    %c0_i32 = arith.constant 0 : i32
    %c0_i32_0 = arith.constant 0 : i32
    return %c0_i32, %arg1 : i32, i32
  }
  func.func @transform_3(%arg0: i32, %arg1: i32, %arg2: i32) -> (i32, i32) {
    %c0_i32 = arith.constant 0 : i32
    return %arg0, %arg1 : i32, i32
  }
  func.func @transform_4(%arg0: i32, %arg1: i32, %arg2: i32) -> (i32, i32) {
    %c0_i32 = arith.constant 0 : i32
    return %arg0, %arg1 : i32, i32
  }
}

module attributes {stable_mosaic.version = 11 : i64} {
  func.func @_resampler_attn_kernel(%arg0: i32, %arg1: memref<1x8x32xf32, #tpu.memory_space<vmem>>, %arg2: memref<1x16x64xf32, #tpu.memory_space<vmem>>, %arg3: memref<1x1x16xf32, #tpu.memory_space<vmem>>, %arg4: memref<1x8x32xf32, #tpu.memory_space<vmem>>) attributes {dimension_semantics = [#tpu.dimension_semantics<parallel>], iteration_bounds = array<i64: 2>, scalar_prefetch = 0 : i64, scratch_operands = 0 : i64, tpu.core_type = #tpu.core_type<tc>, window_params = [{transform_indices = @transform_0, window_bounds = array<i64: 1, 8, 32>}, {transform_indices = @transform_1, window_bounds = array<i64: 1, 16, 64>}, {transform_indices = @transform_2, window_bounds = array<i64: 1, 1, 16>}, {transform_indices = @transform_3, window_bounds = array<i64: 1, 8, 32>}]} {
    %c0 = arith.constant 0 : index
    %c0_0 = arith.constant 0 : index
    %c0_1 = arith.constant 0 : index
    %0 = vector.load %arg1[%c0, %c0_0, %c0_1] : memref<1x8x32xf32, #tpu.memory_space<vmem>>, vector<1x8x32xf32>
    %1 = vector.shape_cast %0 : vector<1x8x32xf32> to vector<8x32xf32>
    %c0_2 = arith.constant 0 : index
    %c0_3 = arith.constant 0 : index
    %c0_4 = arith.constant 0 : index
    %2 = vector.load %arg2[%c0_2, %c0_3, %c0_4] : memref<1x16x64xf32, #tpu.memory_space<vmem>>, vector<1x16x64xf32>
    %3 = vector.shape_cast %2 : vector<1x16x64xf32> to vector<16x64xf32>
    %c0_5 = arith.constant 0 : index
    %c0_6 = arith.constant 0 : index
    %c0_7 = arith.constant 0 : index
    %4 = vector.load %arg3[%c0_5, %c0_6, %c0_7] : memref<1x1x16xf32, #tpu.memory_space<vmem>>, vector<1x1x16xf32>
    %5 = vector.shape_cast %4 : vector<1x1x16xf32> to vector<1x16xf32>
    %6 = vector.extract_strided_slice %1 {offsets = [0, 0], sizes = [8, 16], strides = [1, 1]} : vector<8x32xf32> to vector<8x16xf32>
    %cst = arith.constant 2.500000e-01 : f32
    %7 = vector.broadcast %cst : f32 to vector<8x16xf32>
    %8 = arith.mulf %6, %7 : vector<8x16xf32>
    %9 = vector.extract_strided_slice %3 {offsets = [0, 0], sizes = [16, 16], strides = [1, 1]} : vector<16x64xf32> to vector<16x16xf32>
    %10 = vector.extract_strided_slice %3 {offsets = [0, 32], sizes = [16, 16], strides = [1, 1]} : vector<16x64xf32> to vector<16x16xf32>
    %11 = arith.truncf %8 : vector<8x16xf32> to vector<8x16xbf16>
    %12 = arith.truncf %9 : vector<16x16xf32> to vector<16x16xbf16>
    %cst_8 = arith.constant dense<0.000000e+00> : vector<8x16xf32>
    %13 = tpu.matmul %11, %12, %cst_8 {dimension_numbers = #tpu.dot_dimension_numbers<[1], [1], [0], [0], [0, 0, 1, 0], [], []>} : vector<8x16xbf16>, vector<16x16xbf16>, vector<8x16xf32> -> vector<8x16xf32>
    %cst_9 = arith.constant dense<0xFF800000> : vector<8xf32>
    %14 = vector.multi_reduction <maximumf>, %13, %cst_9 [1] : vector<8x16xf32> to vector<8xf32>
    %15 = vector.shape_cast %14 : vector<8xf32> to vector<8x1xf32>
    %16 = vector.broadcast %15 : vector<8x1xf32> to vector<8x16xf32>
    %17 = arith.subf %13, %16 : vector<8x16xf32>
    %cst_10 = arith.constant 5.000000e-01 : f32
    %18 = vector.broadcast %cst_10 : f32 to vector<1x16xf32>
    %19 = arith.cmpf ogt, %5, %18 : vector<1x16xf32>
    %cst_11 = arith.constant -1.000000e+04 : f32
    %20 = vector.shape_cast %19 : vector<1x16xi1> to vector<1x16xi1>
    %21 = vector.broadcast %20 : vector<1x16xi1> to vector<8x16xi1>
    %22 = vector.broadcast %cst_11 : f32 to vector<8x16xf32>
    %23 = arith.select %21, %17, %22 : vector<8x16xi1>, vector<8x16xf32>
    %cst_12 = arith.constant dense<0xFF800000> : vector<8xf32>
    %24 = vector.multi_reduction <maximumf>, %23, %cst_12 [1] : vector<8x16xf32> to vector<8xf32>
    %25 = vector.shape_cast %24 : vector<8xf32> to vector<8x1xf32>
    %26 = vector.broadcast %25 : vector<8x1xf32> to vector<8x16xf32>
    %27 = arith.subf %23, %26 : vector<8x16xf32>
    %28 = math.exp %27 : vector<8x16xf32>
    %29 = arith.truncf %28 : vector<8x16xf32> to vector<8x16xbf16>
    %30 = arith.truncf %10 : vector<16x16xf32> to vector<16x16xbf16>
    %cst_13 = arith.constant dense<0.000000e+00> : vector<8x16xf32>
    %31 = tpu.matmul %29, %30, %cst_13 {dimension_numbers = #tpu.dot_dimension_numbers<[1], [0], [0], [1], [0, 0, 1, 1], [], []>} : vector<8x16xbf16>, vector<16x16xbf16>, vector<8x16xf32> -> vector<8x16xf32>
    %cst_14 = arith.constant dense<0.000000e+00> : vector<8xf32>
    %32 = vector.multi_reduction <add>, %28, %cst_14 [1] : vector<8x16xf32> to vector<8xf32>
    %33 = vector.shape_cast %32 : vector<8xf32> to vector<8x1xf32>
    %34 = tpu.reciprocal %33 {approx = true} : vector<8x1xf32> -> vector<8x1xf32>
    %35 = vector.broadcast %34 : vector<8x1xf32> to vector<8x16xf32>
    %36 = arith.mulf %31, %35 : vector<8x16xf32>
    %37 = vector.extract_strided_slice %1 {offsets = [0, 16], sizes = [8, 16], strides = [1, 1]} : vector<8x32xf32> to vector<8x16xf32>
    %cst_15 = arith.constant 2.500000e-01 : f32
    %38 = vector.broadcast %cst_15 : f32 to vector<8x16xf32>
    %39 = arith.mulf %37, %38 : vector<8x16xf32>
    %40 = vector.extract_strided_slice %3 {offsets = [0, 16], sizes = [16, 16], strides = [1, 1]} : vector<16x64xf32> to vector<16x16xf32>
    %41 = vector.extract_strided_slice %3 {offsets = [0, 48], sizes = [16, 16], strides = [1, 1]} : vector<16x64xf32> to vector<16x16xf32>
    %42 = arith.truncf %39 : vector<8x16xf32> to vector<8x16xbf16>
    %43 = arith.truncf %40 : vector<16x16xf32> to vector<16x16xbf16>
    %cst_16 = arith.constant dense<0.000000e+00> : vector<8x16xf32>
    %44 = tpu.matmul %42, %43, %cst_16 {dimension_numbers = #tpu.dot_dimension_numbers<[1], [1], [0], [0], [0, 0, 1, 0], [], []>} : vector<8x16xbf16>, vector<16x16xbf16>, vector<8x16xf32> -> vector<8x16xf32>
    %cst_17 = arith.constant dense<0xFF800000> : vector<8xf32>
    %45 = vector.multi_reduction <maximumf>, %44, %cst_17 [1] : vector<8x16xf32> to vector<8xf32>
    %46 = vector.shape_cast %45 : vector<8xf32> to vector<8x1xf32>
    %47 = vector.broadcast %46 : vector<8x1xf32> to vector<8x16xf32>
    %48 = arith.subf %44, %47 : vector<8x16xf32>
    %cst_18 = arith.constant 5.000000e-01 : f32
    %49 = vector.broadcast %cst_18 : f32 to vector<1x16xf32>
    %50 = arith.cmpf ogt, %5, %49 : vector<1x16xf32>
    %cst_19 = arith.constant -1.000000e+04 : f32
    %51 = vector.shape_cast %50 : vector<1x16xi1> to vector<1x16xi1>
    %52 = vector.broadcast %51 : vector<1x16xi1> to vector<8x16xi1>
    %53 = vector.broadcast %cst_19 : f32 to vector<8x16xf32>
    %54 = arith.select %52, %48, %53 : vector<8x16xi1>, vector<8x16xf32>
    %cst_20 = arith.constant dense<0xFF800000> : vector<8xf32>
    %55 = vector.multi_reduction <maximumf>, %54, %cst_20 [1] : vector<8x16xf32> to vector<8xf32>
    %56 = vector.shape_cast %55 : vector<8xf32> to vector<8x1xf32>
    %57 = vector.broadcast %56 : vector<8x1xf32> to vector<8x16xf32>
    %58 = arith.subf %54, %57 : vector<8x16xf32>
    %59 = math.exp %58 : vector<8x16xf32>
    %60 = arith.truncf %59 : vector<8x16xf32> to vector<8x16xbf16>
    %61 = arith.truncf %41 : vector<16x16xf32> to vector<16x16xbf16>
    %cst_21 = arith.constant dense<0.000000e+00> : vector<8x16xf32>
    %62 = tpu.matmul %60, %61, %cst_21 {dimension_numbers = #tpu.dot_dimension_numbers<[1], [0], [0], [1], [0, 0, 1, 1], [], []>} : vector<8x16xbf16>, vector<16x16xbf16>, vector<8x16xf32> -> vector<8x16xf32>
    %cst_22 = arith.constant dense<0.000000e+00> : vector<8xf32>
    %63 = vector.multi_reduction <add>, %59, %cst_22 [1] : vector<8x16xf32> to vector<8xf32>
    %64 = vector.shape_cast %63 : vector<8xf32> to vector<8x1xf32>
    %65 = tpu.reciprocal %64 {approx = true} : vector<8x1xf32> -> vector<8x1xf32>
    %66 = vector.broadcast %65 : vector<8x1xf32> to vector<8x16xf32>
    %67 = arith.mulf %62, %66 : vector<8x16xf32>
    %68 = tpu.concatenate %36, %67 in 1 : vector<8x16xf32>, vector<8x16xf32> -> vector<8x32xf32>
    %c0_23 = arith.constant 0 : index
    %c0_24 = arith.constant 0 : index
    %c0_25 = arith.constant 0 : index
    %69 = vector.load %arg4[%c0_23, %c0_24, %c0_25] : memref<1x8x32xf32, #tpu.memory_space<vmem>>, vector<1x8x32xf32>
    %70 = vector.shape_cast %69 : vector<1x8x32xf32> to vector<8x32xf32>
    %71 = vector.shape_cast %68 : vector<8x32xf32> to vector<1x8x32xf32>
    tpu.vector_store %arg4[%c0_23, %c0_24, %c0_25], %71 {strides = array<i32>} : memref<1x8x32xf32, #tpu.memory_space<vmem>>, vector<1x8x32xf32>,
    return
  }
  func.func @transform_0(%arg0: i32) -> (i32, i32, i32) {
    %c0_i32 = arith.constant 0 : i32
    %c0_i32_0 = arith.constant 0 : i32
    %c0_i32_1 = arith.constant 0 : i32
    return %arg0, %c0_i32, %c0_i32_0 : i32, i32, i32
  }
  func.func @transform_1(%arg0: i32) -> (i32, i32, i32) {
    %c0_i32 = arith.constant 0 : i32
    %c0_i32_0 = arith.constant 0 : i32
    %c0_i32_1 = arith.constant 0 : i32
    return %arg0, %c0_i32, %c0_i32_0 : i32, i32, i32
  }
  func.func @transform_2(%arg0: i32) -> (i32, i32, i32) {
    %c0_i32 = arith.constant 0 : i32
    %c0_i32_0 = arith.constant 0 : i32
    %c0_i32_1 = arith.constant 0 : i32
    return %arg0, %c0_i32, %c0_i32_0 : i32, i32, i32
  }
  func.func @transform_3(%arg0: i32) -> (i32, i32, i32) {
    %c0_i32 = arith.constant 0 : i32
    %c0_i32_0 = arith.constant 0 : i32
    %c0_i32_1 = arith.constant 0 : i32
    return %arg0, %c0_i32, %c0_i32_0 : i32, i32, i32
  }
}

module attributes {stable_mosaic.version = 11 : i64} {
  func.func @_ln_linear_kernel(%arg0: i32, %arg1: i32, %arg2: memref<16x32xf32, #tpu.memory_space<vmem>>, %arg3: memref<1x32xf32, #tpu.memory_space<vmem>>, %arg4: memref<1x32xf32, #tpu.memory_space<vmem>>, %arg5: memref<32x128xbf16, #tpu.memory_space<vmem>>, %arg6: memref<1x128xf32, #tpu.memory_space<vmem>>, %arg7: memref<16x128xf32, #tpu.memory_space<vmem>>, %arg8: memref<16x32xbf16, #tpu.memory_space<vmem>>) attributes {dimension_semantics = [#tpu.dimension_semantics<parallel>, #tpu.dimension_semantics<arbitrary>], iteration_bounds = array<i64: 1, 1>, scalar_prefetch = 0 : i64, scratch_operands = 1 : i64, tpu.core_type = #tpu.core_type<tc>, window_params = [{transform_indices = @transform_0, window_bounds = array<i64: 16, 32>}, {pipeline_mode = #tpu.pipeline_mode<synchronous>, transform_indices = @transform_1, window_bounds = array<i64: 1, 32>}, {pipeline_mode = #tpu.pipeline_mode<synchronous>, transform_indices = @transform_2, window_bounds = array<i64: 1, 32>}, {transform_indices = @transform_3, window_bounds = array<i64: 32, 128>}, {transform_indices = @transform_4, window_bounds = array<i64: 1, 128>}, {transform_indices = @transform_5, window_bounds = array<i64: 16, 128>}]} {
    %c0_i32 = arith.constant 0 : i32
    %0 = arith.cmpi eq, %arg1, %c0_i32 : i32
    %1 = arith.extui %0 : i1 to i32
    %c0_i32_0 = arith.constant 0 : i32
    %2 = arith.cmpi ne, %1, %c0_i32_0 : i32
    scf.if %2 {
      %c0_8 = arith.constant 0 : index
      %c0_9 = arith.constant 0 : index
      %10 = vector.load %arg2[%c0_8, %c0_9] : memref<16x32xf32, #tpu.memory_space<vmem>>, vector<16x32xf32>
      %cst_10 = arith.constant dense<0.000000e+00> : vector<16xf32>
      %11 = vector.multi_reduction <add>, %10, %cst_10 [1] : vector<16x32xf32> to vector<16xf32>
      %12 = vector.shape_cast %11 : vector<16xf32> to vector<16x1xf32>
      %cst_11 = arith.constant 3.200000e+01 : f32
      %13 = vector.broadcast %cst_11 : f32 to vector<16x1xf32>
      %14 = arith.divf %12, %13 : vector<16x1xf32>
      %15 = vector.broadcast %14 : vector<16x1xf32> to vector<16x32xf32>
      %16 = arith.subf %10, %15 : vector<16x32xf32>
      %17 = arith.mulf %16, %16 : vector<16x32xf32>
      %cst_12 = arith.constant dense<0.000000e+00> : vector<16xf32>
      %18 = vector.multi_reduction <add>, %17, %cst_12 [1] : vector<16x32xf32> to vector<16xf32>
      %19 = vector.shape_cast %18 : vector<16xf32> to vector<16x1xf32>
      %cst_13 = arith.constant 3.200000e+01 : f32
      %20 = vector.broadcast %cst_13 : f32 to vector<16x1xf32>
      %21 = arith.divf %19, %20 : vector<16x1xf32>
      %22 = vector.broadcast %14 : vector<16x1xf32> to vector<16x32xf32>
      %23 = arith.subf %10, %22 : vector<16x32xf32>
      %cst_14 = arith.constant 9.99999974E-6 : f32
      %24 = vector.broadcast %cst_14 : f32 to vector<16x1xf32>
      %25 = arith.addf %21, %24 : vector<16x1xf32>
      %26 = math.rsqrt %25 : vector<16x1xf32>
      %27 = vector.broadcast %26 : vector<16x1xf32> to vector<16x32xf32>
      %28 = arith.mulf %23, %27 : vector<16x32xf32>
      %c0_15 = arith.constant 0 : index
      %c0_16 = arith.constant 0 : index
      %29 = vector.load %arg3[%c0_15, %c0_16] : memref<1x32xf32, #tpu.memory_space<vmem>>, vector<1x32xf32>
      %30 = vector.broadcast %29 : vector<1x32xf32> to vector<16x32xf32>
      %31 = arith.mulf %28, %30 : vector<16x32xf32>
      %c0_17 = arith.constant 0 : index
      %c0_18 = arith.constant 0 : index
      %32 = vector.load %arg4[%c0_17, %c0_18] : memref<1x32xf32, #tpu.memory_space<vmem>>, vector<1x32xf32>
      %33 = vector.broadcast %32 : vector<1x32xf32> to vector<16x32xf32>
      %34 = arith.addf %31, %33 : vector<16x32xf32>
      %35 = arith.truncf %34 : vector<16x32xf32> to vector<16x32xbf16>
      %c0_19 = arith.constant 0 : index
      %c0_20 = arith.constant 0 : index
      %36 = vector.load %arg8[%c0_19, %c0_20] : memref<16x32xbf16, #tpu.memory_space<vmem>>, vector<16x32xbf16>
      tpu.vector_store %arg8[%c0_19, %c0_20], %35 {strides = array<i32>} : memref<16x32xbf16, #tpu.memory_space<vmem>>, vector<16x32xbf16>,
    } else {
    }
    %c0 = arith.constant 0 : index
    %c0_1 = arith.constant 0 : index
    %3 = vector.load %arg8[%c0, %c0_1] : memref<16x32xbf16, #tpu.memory_space<vmem>>, vector<16x32xbf16>
    %c0_2 = arith.constant 0 : index
    %c0_3 = arith.constant 0 : index
    %4 = vector.load %arg5[%c0_2, %c0_3] : memref<32x128xbf16, #tpu.memory_space<vmem>>, vector<32x128xbf16>
    %cst = arith.constant dense<0.000000e+00> : vector<16x128xf32>
    %5 = tpu.matmul %3, %4, %cst {dimension_numbers = #tpu.dot_dimension_numbers<[1], [0], [0], [1], [0, 0, 1, 1], [], []>} : vector<16x32xbf16>, vector<32x128xbf16>, vector<16x128xf32> -> vector<16x128xf32>
    %c0_4 = arith.constant 0 : index
    %c0_5 = arith.constant 0 : index
    %6 = vector.load %arg6[%c0_4, %c0_5] : memref<1x128xf32, #tpu.memory_space<vmem>>, vector<1x128xf32>
    %7 = vector.broadcast %6 : vector<1x128xf32> to vector<16x128xf32>
    %8 = arith.addf %5, %7 : vector<16x128xf32>
    %c0_6 = arith.constant 0 : index
    %c0_7 = arith.constant 0 : index
    %9 = vector.load %arg7[%c0_6, %c0_7] : memref<16x128xf32, #tpu.memory_space<vmem>>, vector<16x128xf32>
    tpu.vector_store %arg7[%c0_6, %c0_7], %8 {strides = array<i32>} : memref<16x128xf32, #tpu.memory_space<vmem>>, vector<16x128xf32>,
    return
  }
  func.func @transform_0(%arg0: i32, %arg1: i32) -> (i32, i32) {
    %c0_i32 = arith.constant 0 : i32
    %c0_i32_0 = arith.constant 0 : i32
    return %arg0, %c0_i32 : i32, i32
  }
  func.func @transform_1(%arg0: i32, %arg1: i32) -> (i32, i32) {
    %c0_i32 = arith.constant 0 : i32
    %c0_i32_0 = arith.constant 0 : i32
    %c0_i32_1 = arith.constant 0 : i32
    return %c0_i32, %c0_i32_0 : i32, i32
  }
  func.func @transform_2(%arg0: i32, %arg1: i32) -> (i32, i32) {
    %c0_i32 = arith.constant 0 : i32
    %c0_i32_0 = arith.constant 0 : i32
    %c0_i32_1 = arith.constant 0 : i32
    return %c0_i32, %c0_i32_0 : i32, i32
  }
  func.func @transform_3(%arg0: i32, %arg1: i32) -> (i32, i32) {
    %c0_i32 = arith.constant 0 : i32
    %c0_i32_0 = arith.constant 0 : i32
    return %c0_i32, %arg1 : i32, i32
  }
  func.func @transform_4(%arg0: i32, %arg1: i32) -> (i32, i32) {
    %c0_i32 = arith.constant 0 : i32
    %c0_i32_0 = arith.constant 0 : i32
    return %c0_i32, %arg1 : i32, i32
  }
  func.func @transform_5(%arg0: i32, %arg1: i32) -> (i32, i32) {
    %c0_i32 = arith.constant 0 : i32
    return %arg0, %arg1 : i32, i32
  }
}

module attributes {stable_mosaic.version = 11 : i64} {
  func.func @_linear_kernel(%arg0: i32, %arg1: i32, %arg2: i32, %arg3: memref<16x128xf32, #tpu.memory_space<vmem>>, %arg4: memref<128x32xbf16, #tpu.memory_space<vmem>>, %arg5: memref<1x32xf32, #tpu.memory_space<vmem>>, %arg6: memref<16x32xf32, #tpu.memory_space<vmem>>, %arg7: memref<16x32xf32, #tpu.memory_space<vmem>>, %arg8: memref<16x32xf32, #tpu.memory_space<vmem>>) attributes {dimension_semantics = [#tpu.dimension_semantics<parallel>, #tpu.dimension_semantics<parallel>, #tpu.dimension_semantics<arbitrary>], iteration_bounds = array<i64: 1, 1, 1>, scalar_prefetch = 0 : i64, scratch_operands = 1 : i64, tpu.core_type = #tpu.core_type<tc>, window_params = [{transform_indices = @transform_0, window_bounds = array<i64: 16, 128>}, {transform_indices = @transform_1, window_bounds = array<i64: 128, 32>}, {transform_indices = @transform_2, window_bounds = array<i64: 1, 32>}, {transform_indices = @transform_3, window_bounds = array<i64: 16, 32>}, {transform_indices = @transform_4, window_bounds = array<i64: 16, 32>}]} {
    %c0_i32 = arith.constant 0 : i32
    %0 = arith.cmpi eq, %arg2, %c0_i32 : i32
    %1 = arith.extui %0 : i1 to i32
    %c0_i32_0 = arith.constant 0 : i32
    %2 = arith.cmpi ne, %1, %c0_i32_0 : i32
    scf.if %2 {
      %cst_25 = arith.constant 0.000000e+00 : f32
      %53 = vector.broadcast %cst_25 : f32 to vector<16x32xf32>
      %c0_26 = arith.constant 0 : index
      %c0_27 = arith.constant 0 : index
      %54 = vector.load %arg8[%c0_26, %c0_27] : memref<16x32xf32, #tpu.memory_space<vmem>>, vector<16x32xf32>
      tpu.vector_store %arg8[%c0_26, %c0_27], %53 {strides = array<i32>} : memref<16x32xf32, #tpu.memory_space<vmem>>, vector<16x32xf32>,
    } else {
    }
    %c0 = arith.constant 0 : index
    %c0_1 = arith.constant 0 : index
    %3 = vector.load %arg3[%c0, %c0_1] : memref<16x128xf32, #tpu.memory_space<vmem>>, vector<16x128xf32>
    %cst = arith.constant 0.707106769 : f32
    %4 = vector.broadcast %cst : f32 to vector<16x128xf32>
    %5 = arith.mulf %3, %4 : vector<16x128xf32>
    %6 = math.absf %5 : vector<16x128xf32>
    %cst_2 = arith.constant 0.327591091 : f32
    %7 = vector.broadcast %cst_2 : f32 to vector<16x128xf32>
    %8 = arith.mulf %7, %6 : vector<16x128xf32>
    %cst_3 = arith.constant 1.000000e+00 : f32
    %9 = vector.broadcast %cst_3 : f32 to vector<16x128xf32>
    %10 = arith.addf %9, %8 : vector<16x128xf32>
    %cst_4 = arith.constant 1.000000e+00 : f32
    %11 = vector.broadcast %cst_4 : f32 to vector<16x128xf32>
    %12 = arith.divf %11, %10 : vector<16x128xf32>
    %cst_5 = arith.constant 1.06140542 : f32
    %13 = vector.broadcast %cst_5 : f32 to vector<16x128xf32>
    %14 = arith.mulf %12, %13 : vector<16x128xf32>
    %cst_6 = arith.constant -1.45315206 : f32
    %15 = vector.broadcast %cst_6 : f32 to vector<16x128xf32>
    %16 = arith.addf %15, %14 : vector<16x128xf32>
    %17 = arith.mulf %12, %16 : vector<16x128xf32>
    %cst_7 = arith.constant 1.42141378 : f32
    %18 = vector.broadcast %cst_7 : f32 to vector<16x128xf32>
    %19 = arith.addf %18, %17 : vector<16x128xf32>
    %20 = arith.mulf %12, %19 : vector<16x128xf32>
    %cst_8 = arith.constant -0.284496725 : f32
    %21 = vector.broadcast %cst_8 : f32 to vector<16x128xf32>
    %22 = arith.addf %21, %20 : vector<16x128xf32>
    %23 = arith.mulf %12, %22 : vector<16x128xf32>
    %cst_9 = arith.constant 0.254829586 : f32
    %24 = vector.broadcast %cst_9 : f32 to vector<16x128xf32>
    %25 = arith.addf %24, %23 : vector<16x128xf32>
    %26 = arith.mulf %12, %25 : vector<16x128xf32>
    %cst_10 = arith.constant 0.000000e+00 : f32
    %27 = vector.broadcast %cst_10 : f32 to vector<16x128xf32>
    %28 = arith.subf %27, %6 : vector<16x128xf32>
    %29 = arith.mulf %28, %6 : vector<16x128xf32>
    %30 = math.exp %29 : vector<16x128xf32>
    %31 = arith.mulf %26, %30 : vector<16x128xf32>
    %cst_11 = arith.constant 1.000000e+00 : f32
    %32 = vector.broadcast %cst_11 : f32 to vector<16x128xf32>
    %33 = arith.subf %32, %31 : vector<16x128xf32>
    %cst_12 = arith.constant 0.000000e+00 : f32
    %34 = vector.broadcast %cst_12 : f32 to vector<16x128xf32>
    %35 = arith.cmpf oge, %5, %34 : vector<16x128xf32>
    %cst_13 = arith.constant 0.000000e+00 : f32
    %36 = vector.broadcast %cst_13 : f32 to vector<16x128xf32>
    %37 = arith.subf %36, %33 : vector<16x128xf32>
    %38 = arith.select %35, %33, %37 : vector<16x128xi1>, vector<16x128xf32>
    %cst_14 = arith.constant 5.000000e-01 : f32
    %39 = vector.broadcast %cst_14 : f32 to vector<16x128xf32>
    %40 = arith.mulf %3, %39 : vector<16x128xf32>
    %cst_15 = arith.constant 1.000000e+00 : f32
    %41 = vector.broadcast %cst_15 : f32 to vector<16x128xf32>
    %42 = arith.addf %41, %38 : vector<16x128xf32>
    %43 = arith.mulf %40, %42 : vector<16x128xf32>
    %44 = arith.truncf %43 : vector<16x128xf32> to vector<16x128xbf16>
    %c0_16 = arith.constant 0 : index
    %c0_17 = arith.constant 0 : index
    %45 = vector.load %arg8[%c0_16, %c0_17] : memref<16x32xf32, #tpu.memory_space<vmem>>, vector<16x32xf32>
    %c0_18 = arith.constant 0 : index
    %c0_19 = arith.constant 0 : index
    %46 = vector.load %arg4[%c0_18, %c0_19] : memref<128x32xbf16, #tpu.memory_space<vmem>>, vector<128x32xbf16>
    %cst_20 = arith.constant dense<0.000000e+00> : vector<16x32xf32>
    %47 = tpu.matmul %44, %46, %cst_20 {dimension_numbers = #tpu.dot_dimension_numbers<[1], [0], [0], [1], [0, 0, 1, 1], [], []>} : vector<16x128xbf16>, vector<128x32xbf16>, vector<16x32xf32> -> vector<16x32xf32>
    %48 = arith.addf %45, %47 : vector<16x32xf32>
    %c0_21 = arith.constant 0 : index
    %c0_22 = arith.constant 0 : index
    %49 = vector.load %arg8[%c0_21, %c0_22] : memref<16x32xf32, #tpu.memory_space<vmem>>, vector<16x32xf32>
    tpu.vector_store %arg8[%c0_21, %c0_22], %48 {strides = array<i32>} : memref<16x32xf32, #tpu.memory_space<vmem>>, vector<16x32xf32>,
    %c0_i32_23 = arith.constant 0 : i32
    %50 = arith.cmpi eq, %arg2, %c0_i32_23 : i32
    %51 = arith.extui %50 : i1 to i32
    %c0_i32_24 = arith.constant 0 : i32
    %52 = arith.cmpi ne, %51, %c0_i32_24 : i32
    scf.if %52 {
      %c0_25 = arith.constant 0 : index
      %c0_26 = arith.constant 0 : index
      %53 = vector.load %arg8[%c0_25, %c0_26] : memref<16x32xf32, #tpu.memory_space<vmem>>, vector<16x32xf32>
      %c0_27 = arith.constant 0 : index
      %c0_28 = arith.constant 0 : index
      %54 = vector.load %arg5[%c0_27, %c0_28] : memref<1x32xf32, #tpu.memory_space<vmem>>, vector<1x32xf32>
      %55 = vector.broadcast %54 : vector<1x32xf32> to vector<16x32xf32>
      %56 = arith.addf %53, %55 : vector<16x32xf32>
      %c0_29 = arith.constant 0 : index
      %c0_30 = arith.constant 0 : index
      %57 = vector.load %arg6[%c0_29, %c0_30] : memref<16x32xf32, #tpu.memory_space<vmem>>, vector<16x32xf32>
      %58 = arith.addf %56, %57 : vector<16x32xf32>
      %c0_31 = arith.constant 0 : index
      %c0_32 = arith.constant 0 : index
      %59 = vector.load %arg7[%c0_31, %c0_32] : memref<16x32xf32, #tpu.memory_space<vmem>>, vector<16x32xf32>
      tpu.vector_store %arg7[%c0_31, %c0_32], %58 {strides = array<i32>} : memref<16x32xf32, #tpu.memory_space<vmem>>, vector<16x32xf32>,
    } else {
    }
    return
  }
  func.func @transform_0(%arg0: i32, %arg1: i32, %arg2: i32) -> (i32, i32) {
    %c0_i32 = arith.constant 0 : i32
    return %arg0, %arg2 : i32, i32
  }
  func.func @transform_1(%arg0: i32, %arg1: i32, %arg2: i32) -> (i32, i32) {
    %c0_i32 = arith.constant 0 : i32
    return %arg2, %arg1 : i32, i32
  }
  func.func @transform_2(%arg0: i32, %arg1: i32, %arg2: i32) -> (i32, i32) {
    %c0_i32 = arith.constant 0 : i32
    %c0_i32_0 = arith.constant 0 : i32
    return %c0_i32, %arg1 : i32, i32
  }
  func.func @transform_3(%arg0: i32, %arg1: i32, %arg2: i32) -> (i32, i32) {
    %c0_i32 = arith.constant 0 : i32
    return %arg0, %arg1 : i32, i32
  }
  func.func @transform_4(%arg0: i32, %arg1: i32, %arg2: i32) -> (i32, i32) {
    %c0_i32 = arith.constant 0 : i32
    return %arg0, %arg1 : i32, i32
  }
}

module attributes {stable_mosaic.version = 11 : i64} {
  func.func @_linear_kernel(%arg0: i32, %arg1: i32, %arg2: i32, %arg3: memref<16x32xf32, #tpu.memory_space<vmem>>, %arg4: memref<32x48xbf16, #tpu.memory_space<vmem>>, %arg5: memref<1x48xf32, #tpu.memory_space<vmem>>, %arg6: memref<16x48xf32, #tpu.memory_space<vmem>>, %arg7: memref<16x48xf32, #tpu.memory_space<vmem>>) attributes {dimension_semantics = [#tpu.dimension_semantics<parallel>, #tpu.dimension_semantics<parallel>, #tpu.dimension_semantics<arbitrary>], iteration_bounds = array<i64: 1, 1, 1>, scalar_prefetch = 0 : i64, scratch_operands = 1 : i64, tpu.core_type = #tpu.core_type<tc>, window_params = [{transform_indices = @transform_0, window_bounds = array<i64: 16, 32>}, {transform_indices = @transform_1, window_bounds = array<i64: 32, 48>}, {transform_indices = @transform_2, window_bounds = array<i64: 1, 48>}, {transform_indices = @transform_3, window_bounds = array<i64: 16, 48>}]} {
    %c0_i32 = arith.constant 0 : i32
    %0 = arith.cmpi eq, %arg2, %c0_i32 : i32
    %1 = arith.extui %0 : i1 to i32
    %c0_i32_0 = arith.constant 0 : i32
    %2 = arith.cmpi ne, %1, %c0_i32_0 : i32
    scf.if %2 {
      %cst_10 = arith.constant 0.000000e+00 : f32
      %13 = vector.broadcast %cst_10 : f32 to vector<16x48xf32>
      %c0_11 = arith.constant 0 : index
      %c0_12 = arith.constant 0 : index
      %14 = vector.load %arg7[%c0_11, %c0_12] : memref<16x48xf32, #tpu.memory_space<vmem>>, vector<16x48xf32>
      tpu.vector_store %arg7[%c0_11, %c0_12], %13 {strides = array<i32>} : memref<16x48xf32, #tpu.memory_space<vmem>>, vector<16x48xf32>,
    } else {
    }
    %c0 = arith.constant 0 : index
    %c0_1 = arith.constant 0 : index
    %3 = vector.load %arg3[%c0, %c0_1] : memref<16x32xf32, #tpu.memory_space<vmem>>, vector<16x32xf32>
    %4 = arith.truncf %3 : vector<16x32xf32> to vector<16x32xbf16>
    %c0_2 = arith.constant 0 : index
    %c0_3 = arith.constant 0 : index
    %5 = vector.load %arg7[%c0_2, %c0_3] : memref<16x48xf32, #tpu.memory_space<vmem>>, vector<16x48xf32>
    %c0_4 = arith.constant 0 : index
    %c0_5 = arith.constant 0 : index
    %6 = vector.load %arg4[%c0_4, %c0_5] : memref<32x48xbf16, #tpu.memory_space<vmem>>, vector<32x48xbf16>
    %cst = arith.constant dense<0.000000e+00> : vector<16x48xf32>
    %7 = tpu.matmul %4, %6, %cst {dimension_numbers = #tpu.dot_dimension_numbers<[1], [0], [0], [1], [0, 0, 1, 1], [], []>} : vector<16x32xbf16>, vector<32x48xbf16>, vector<16x48xf32> -> vector<16x48xf32>
    %8 = arith.addf %5, %7 : vector<16x48xf32>
    %c0_6 = arith.constant 0 : index
    %c0_7 = arith.constant 0 : index
    %9 = vector.load %arg7[%c0_6, %c0_7] : memref<16x48xf32, #tpu.memory_space<vmem>>, vector<16x48xf32>
    tpu.vector_store %arg7[%c0_6, %c0_7], %8 {strides = array<i32>} : memref<16x48xf32, #tpu.memory_space<vmem>>, vector<16x48xf32>,
    %c0_i32_8 = arith.constant 0 : i32
    %10 = arith.cmpi eq, %arg2, %c0_i32_8 : i32
    %11 = arith.extui %10 : i1 to i32
    %c0_i32_9 = arith.constant 0 : i32
    %12 = arith.cmpi ne, %11, %c0_i32_9 : i32
    scf.if %12 {
      %c0_10 = arith.constant 0 : index
      %c0_11 = arith.constant 0 : index
      %13 = vector.load %arg7[%c0_10, %c0_11] : memref<16x48xf32, #tpu.memory_space<vmem>>, vector<16x48xf32>
      %c0_12 = arith.constant 0 : index
      %c0_13 = arith.constant 0 : index
      %14 = vector.load %arg5[%c0_12, %c0_13] : memref<1x48xf32, #tpu.memory_space<vmem>>, vector<1x48xf32>
      %15 = vector.broadcast %14 : vector<1x48xf32> to vector<16x48xf32>
      %16 = arith.addf %13, %15 : vector<16x48xf32>
      %c0_14 = arith.constant 0 : index
      %c0_15 = arith.constant 0 : index
      %17 = vector.load %arg6[%c0_14, %c0_15] : memref<16x48xf32, #tpu.memory_space<vmem>>, vector<16x48xf32>
      tpu.vector_store %arg6[%c0_14, %c0_15], %16 {strides = array<i32>} : memref<16x48xf32, #tpu.memory_space<vmem>>, vector<16x48xf32>,
    } else {
    }
    return
  }
  func.func @transform_0(%arg0: i32, %arg1: i32, %arg2: i32) -> (i32, i32) {
    %c0_i32 = arith.constant 0 : i32
    return %arg0, %arg2 : i32, i32
  }
  func.func @transform_1(%arg0: i32, %arg1: i32, %arg2: i32) -> (i32, i32) {
    %c0_i32 = arith.constant 0 : i32
    return %arg2, %arg1 : i32, i32
  }
  func.func @transform_2(%arg0: i32, %arg1: i32, %arg2: i32) -> (i32, i32) {
    %c0_i32 = arith.constant 0 : i32
    %c0_i32_0 = arith.constant 0 : i32
    return %c0_i32, %arg1 : i32, i32
  }
  func.func @transform_3(%arg0: i32, %arg1: i32, %arg2: i32) -> (i32, i32) {
    %c0_i32 = arith.constant 0 : i32
    return %arg0, %arg1 : i32, i32
  }
}

module attributes {stable_mosaic.version = 11 : i64} {
  func.func @_layer_norm_kernel(%arg0: i32, %arg1: memref<16x48xf32, #tpu.memory_space<vmem>>, %arg2: memref<1x48xf32, #tpu.memory_space<vmem>>, %arg3: memref<1x48xf32, #tpu.memory_space<vmem>>, %arg4: memref<16x48xf32, #tpu.memory_space<vmem>>) attributes {dimension_semantics = [#tpu.dimension_semantics<parallel>], iteration_bounds = array<i64: 1>, scalar_prefetch = 0 : i64, scratch_operands = 0 : i64, tpu.core_type = #tpu.core_type<tc>, window_params = [{transform_indices = @transform_0, window_bounds = array<i64: 16, 48>}, {pipeline_mode = #tpu.pipeline_mode<synchronous>, transform_indices = @transform_1, window_bounds = array<i64: 1, 48>}, {pipeline_mode = #tpu.pipeline_mode<synchronous>, transform_indices = @transform_2, window_bounds = array<i64: 1, 48>}, {transform_indices = @transform_3, window_bounds = array<i64: 16, 48>}]} {
    %c0 = arith.constant 0 : index
    %c0_0 = arith.constant 0 : index
    %0 = vector.load %arg1[%c0, %c0_0] : memref<16x48xf32, #tpu.memory_space<vmem>>, vector<16x48xf32>
    %cst = arith.constant dense<0.000000e+00> : vector<16xf32>
    %1 = vector.multi_reduction <add>, %0, %cst [1] : vector<16x48xf32> to vector<16xf32>
    %2 = vector.shape_cast %1 : vector<16xf32> to vector<16x1xf32>
    %cst_1 = arith.constant 4.800000e+01 : f32
    %3 = vector.broadcast %cst_1 : f32 to vector<16x1xf32>
    %4 = arith.divf %2, %3 : vector<16x1xf32>
    %5 = vector.broadcast %4 : vector<16x1xf32> to vector<16x48xf32>
    %6 = arith.subf %0, %5 : vector<16x48xf32>
    %7 = arith.mulf %6, %6 : vector<16x48xf32>
    %cst_2 = arith.constant dense<0.000000e+00> : vector<16xf32>
    %8 = vector.multi_reduction <add>, %7, %cst_2 [1] : vector<16x48xf32> to vector<16xf32>
    %9 = vector.shape_cast %8 : vector<16xf32> to vector<16x1xf32>
    %cst_3 = arith.constant 4.800000e+01 : f32
    %10 = vector.broadcast %cst_3 : f32 to vector<16x1xf32>
    %11 = arith.divf %9, %10 : vector<16x1xf32>
    %12 = vector.broadcast %4 : vector<16x1xf32> to vector<16x48xf32>
    %13 = arith.subf %0, %12 : vector<16x48xf32>
    %cst_4 = arith.constant 9.99999974E-6 : f32
    %14 = vector.broadcast %cst_4 : f32 to vector<16x1xf32>
    %15 = arith.addf %11, %14 : vector<16x1xf32>
    %16 = math.rsqrt %15 : vector<16x1xf32>
    %17 = vector.broadcast %16 : vector<16x1xf32> to vector<16x48xf32>
    %18 = arith.mulf %13, %17 : vector<16x48xf32>
    %c0_5 = arith.constant 0 : index
    %c0_6 = arith.constant 0 : index
    %19 = vector.load %arg2[%c0_5, %c0_6] : memref<1x48xf32, #tpu.memory_space<vmem>>, vector<1x48xf32>
    %20 = vector.broadcast %19 : vector<1x48xf32> to vector<16x48xf32>
    %21 = arith.mulf %18, %20 : vector<16x48xf32>
    %c0_7 = arith.constant 0 : index
    %c0_8 = arith.constant 0 : index
    %22 = vector.load %arg3[%c0_7, %c0_8] : memref<1x48xf32, #tpu.memory_space<vmem>>, vector<1x48xf32>
    %23 = vector.broadcast %22 : vector<1x48xf32> to vector<16x48xf32>
    %24 = arith.addf %21, %23 : vector<16x48xf32>
    %c0_9 = arith.constant 0 : index
    %c0_10 = arith.constant 0 : index
    %25 = vector.load %arg4[%c0_9, %c0_10] : memref<16x48xf32, #tpu.memory_space<vmem>>, vector<16x48xf32>
    tpu.vector_store %arg4[%c0_9, %c0_10], %24 {strides = array<i32>} : memref<16x48xf32, #tpu.memory_space<vmem>>, vector<16x48xf32>,
    return
  }
  func.func @transform_0(%arg0: i32) -> (i32, i32) {
    %c0_i32 = arith.constant 0 : i32
    %c0_i32_0 = arith.constant 0 : i32
    return %arg0, %c0_i32 : i32, i32
  }
  func.func @transform_1(%arg0: i32) -> (i32, i32) {
    %c0_i32 = arith.constant 0 : i32
    %c0_i32_0 = arith.constant 0 : i32
    %c0_i32_1 = arith.constant 0 : i32
    return %c0_i32, %c0_i32_0 : i32, i32
  }
  func.func @transform_2(%arg0: i32) -> (i32, i32) {
    %c0_i32 = arith.constant 0 : i32
    %c0_i32_0 = arith.constant 0 : i32
    %c0_i32_1 = arith.constant 0 : i32
    return %c0_i32, %c0_i32_0 : i32, i32
  }
  func.func @transform_3(%arg0: i32) -> (i32, i32) {
    %c0_i32 = arith.constant 0 : i32
    %c0_i32_0 = arith.constant 0 : i32
    return %arg0, %c0_i32 : i32, i32
  }
}

</mosaic_0001>

<bundles_post_ra>
// kernel: _lambda_.28
= control target key start
LH: loop header
LB: loop body
LE: loop exit
PB: predicated region body
PF: predicated region fallthrough
CT: control target
= control target key end

     0   :  { %vm29_vm0 = vcmask 261120   ;;  %v182_v5 = vmov 32.0   ;;  %vm95_vm6 = vcmask 257024   ;;  %vm145_vm9 = vcmask 519168   ;;  %s242_s0 = inlined_call_operand.vmem [shape: bf16[16,32], index: 0, kind: input, shape index: {}]   ;;  %s243_s1 = inlined_call_operand.vmem [shape: f32[1,32], index: 1, kind: input, shape index: {}]   ;;  %s244_s2 = inlined_call_operand.vmem [shape: f32[1,32], index: 2, kind: input, shape index: {}]   ;;  %s245_s4 = inlined_call_operand.vmem [shape: f32[1,64], index: 4, kind: input, shape index: {}]   ;;  %s246_s3 = inlined_call_operand.vmem [shape: bf16[32,64], index: 3, kind: input, shape index: {}]   ;;  %s247_s5 = inlined_call_operand.vmem [shape: bf16[16,64], index: 5, kind: output, shape index: {}]  }
   0x1   :  { %v169_v0 = vld [vmem:[%s242_s0] sm:$0xff]   ;;  %176 = vrcp.f32 %v182_v5  ;;  %v167_v25 = vld [vmem:[%s246_s3 + $0x8] sm:$0xff] }
   0x2   :  { %v170_v1 = vunpack.c.l.bf16 %v169_v0  ;;  %v171_v3 = vunpack.c.h.bf16 %v169_v0  ;;  %135 = vmatpush.bf16.msra.mxu0 %v167_v25  ;;  %v166_v28 = vld [vmem:[%s246_s3] sm:$0xff] }
   0x3   :  { %v173_v38 = vld [vmem:[%s243_s1] ss:$0 sm:$0xff] }
   0x4   :  { %v30_v2 = vsel %vm29_vm0, %v170_v1, 0.0  ;;  %v33_v4 = vsel %vm29_vm0, %v171_v3, 0.0  ;;  %v174_v41 = vld [vmem:[%s244_s2] ss:$0 sm:$0xff] }
   0x5   :  { %31 = vadd.xlane.f32.xlu0 %v30_v2  ;;  %v175_v55 = vld [vmem:[%s245_s4] ss:$0 sm:$0xff] }
   0x6   :  { %136 = vmatpush.bf16.msra.mxu0 %v166_v28 }
   0x7   :  { %v177_v6 = vpop.eup %176 }
   0x8   :  { %v37_v7 = vmul.f32 32.0, %v177_v6  ;;  %vm41_vm1 = vweird.f32 %v177_v6 }
   0xa   :  { %v38_v8 = vsub.f32 1.0, %v37_v7 }
   0xc   :  { %v39_v9 = vmul.f32 %v177_v6, %v38_v8 }
   0xd   :  { %34 = vadd.xlane.f32.xlu0 %v33_v4 }
   0xe   :  { %v40_v10 = vadd.f32 %v177_v6, %v39_v9 }
  0x10   :  { %v42_v11 = vsel %vm41_vm1, %v177_v6, %v40_v10 }
  0x78   :  { %v32_v12 = vpop.xlane.xlu0 %31 }
  0x79   :  { %v43_v13 = vmul.f32 %v42_v11, %v32_v12 }
  0x7b   :  { %v45_v14 = vsub.f32 %v170_v1, %v43_v13 }
  0x7d   :  { %v47_v15 = vmul.f32 %v45_v14, %v45_v14 }
  0x7f   :  { %v49_v16 = vsel %vm29_vm0, %v47_v15, 0.0 }
  0x80   :  { %50 = vadd.xlane.f32.xlu1 %v49_v16  ;;  %v35_v17 = vpop.xlane.xlu0 %34 }
  0x81   :  { %v44_v18 = vmul.f32 %v42_v11, %v35_v17 }
  0x83   :  { %v46_v19 = vsub.f32 %v171_v3, %v44_v18 }
  0x85   :  { %v48_v20 = vmul.f32 %v46_v19, %v46_v19 }
  0x87   :  { %v52_v21 = vsel %vm29_vm0, %v48_v20, 0.0 }
  0x88   :  { %53 = vadd.xlane.f32.xlu1 %v52_v21 }
  0xf3   :  { %v51_v22 = vpop.xlane.xlu1 %50 }
  0xf4   :  { %v55_v23 = vmul.f32 %v51_v22, %v42_v11 }
  0xf6   :  { %v57_v24 = vadd.f32 1e-12, %v55_v23 }
  0xf8   :  { %178 = vrsqrt.f32 %v57_v24  ;;  %vm65_vm3 = vweird.f32 %v57_v24 }
  0xfb   :  { %v54_v26 = vpop.xlane.xlu1 %53 }
  0xfc   :  { %v56_v27 = vmul.f32 %v54_v26, %v42_v11 }
  0xfe   :  { %v179_v29 = vpop.eup %178  ;;  %v58_v30 = vadd.f32 1e-12, %v56_v27 }
  0xff   :  { %v60_v31 = vmul.f32 %v179_v29, %v57_v24  ;;  %vm66_vm2 = vweird.f32 %v179_v29 }
 0x100   :  { %180 = vrsqrt.f32 %v58_v30  ;;  %vm67_vm4 = vmor %vm65_vm3, %vm66_vm2  ;;  %vm75_vm7 = vweird.f32 %v58_v30 }
 0x101   :  { %v61_v32 = vmul.f32 %v179_v29, %v60_v31 }
 0x103   :  { %v62_v33 = vmul.f32 0.5, %v61_v32 }
 0x105   :  { %v63_v34 = vsub.f32 1.5, %v62_v33 }
 0x106   :  { %v181_v35 = vpop.eup %180 }
 0x107   :  { %v64_v36 = vmul.f32 %v179_v29, %v63_v34  ;;  %v70_v37 = vmul.f32 %v181_v35, %v58_v30  ;;  %vm76_vm5 = vweird.f32 %v181_v35 }
 0x108   :  { %vm77_vm8 = vmor %vm75_vm7, %vm76_vm5 }
 0x109   :  { %v68_v39 = vsel %vm67_vm4, %v179_v29, %v64_v36  ;;  %v71_v40 = vmul.f32 %v181_v35, %v70_v37 }
 0x10a   :  { %v79_v42 = vmul.f32 %v68_v39, %v45_v14 }
 0x10b   :  { %v72_v43 = vmul.f32 0.5, %v71_v40 }
 0x10c   :  { %v85_v44 = vmul.f32 %v173_v38, %v79_v42 }
 0x10d   :  { %v73_v45 = vsub.f32 1.5, %v72_v43 }
 0x10e   :  { %v91_v46 = vadd.f32 %v174_v41, %v85_v44 }
 0x10f   :  { %v74_v47 = vmul.f32 %v181_v35, %v73_v45 }
 0x110   :  { %v93_v48 = vpack.c.bf16 %v91_v46, %v91_v46 }
 0x111   :  { %v78_v49 = vsel %vm77_vm8, %v181_v35, %v74_v47 }
 0x112   :  { %96 = vst.msk [vmem:[#allocation2] sm:$0xf] %vm95_vm6, %v93_v48  ;;  %v80_v50 = vmul.f32 %v78_v49, %v46_v19 }
 0x114   :  { %v86_v51 = vmul.f32 %v173_v38, %v80_v50 }
 0x116   :  { %v92_v52 = vadd.f32 %v174_v41, %v86_v51 }
 0x118   :  { %v94_v53 = vpack.c.bf16 %v92_v52, %v92_v52 }
 0x11a   :  { %97 = vst.msk [vmem:[#allocation2 + $0x4] sm:$0xf] %vm95_vm6, %v94_v53 }
 0x121   :  { %v165_v54 = vld [vmem:[#allocation2] sm:$0xff] }
 0x122   :  { %164 = vmatmul.msk.bf16.vlgmr.msra.gmra.mxu0 %vm29_vm0, %v165_v54 }
 0x19f   :  { %v138_v56 = vpop.f32.mrf.mxu0 }
 0x1a0   :  { %v139_v57 = vadd.f32 %v175_v55, %v138_v56 }
 0x1a2   :  { %v143_v58 = vpack.c.bf16 %v139_v57, %v139_v57 }
 0x1a4   :  { %146 = vst.msk [vmem:[%s247_s5] sm:$0xf] %vm145_vm9, %v143_v58 }
 0x1a7   :  { %v140_v59 = vpop.f32.mrf.mxu0 }
 0x1a8   :  { %v141_v60 = vadd.f32 %v175_v55, %v140_v59 }
 0x1aa   :  { %v144_v61 = vpack.c.bf16 %v141_v60, %v141_v60 }
 0x1ac   :  { %147 = vst.msk [vmem:[%s247_s5 + $0x4] sm:$0xf] %vm145_vm9, %v144_v61 }

// kernel: _lambda_.26
= control target key start
LH: loop header
LB: loop body
LE: loop exit
PB: predicated region body
PF: predicated region fallthrough
CT: control target
= control target key end

     0   :  { %s959_s30 = smov 0   ;;  %s961_s10 = smov 0   ;;  %s1051_s0 = inlined_call_operand.vmem [shape: bf16[2,4,8,8], index: 0, kind: input, shape index: {}]   ;;  %s1052_s1 = inlined_call_operand.vmem [shape: bf16[2,4,8,8], index: 1, kind: input, shape index: {}]   ;;  %s1053_s2 = inlined_call_operand.vmem [shape: bf16[2,4,8,8], index: 2, kind: input, shape index: {}]   ;;  %s1054_s3 = inlined_call_operand.vmem [shape: f32[2,1,8], index: 3, kind: input, shape index: {}]   ;;  %s1055_s4 = inlined_call_operand.vmem [shape: f32[8,8], index: 4, kind: input, shape index: {}, may-alias: {4,6}]   ;;  %s1056_s5 = inlined_call_operand.vmem [shape: f32[8,8], index: 5, kind: input, shape index: {}, may-alias: {5,7}]   ;;  %s1057_s6 = inlined_call_operand.vmem [shape: f32[8,8], index: 6, kind: input, shape index: {}, may-alias: {4,6}]   ;;  %s1058_s7 = inlined_call_operand.vmem [shape: f32[8,8], index: 7, kind: input, shape index: {}, may-alias: {5,7}]   ;;  %s1059_s8 = inlined_call_operand.vmem [shape: f32[8,8], index: 8, kind: input, shape index: {}]   ;;  %s1060_s9 = inlined_call_operand.vmem [shape: bf16[2,4,8,8], index: 9, kind: output, shape index: {}]  }
   0x1   :  { %s963_s11 = smov 0   ;;  %s965_s12 = smov 0  }
   0x2   :  { %s967_s13 = smov 0  }
   0x3 LB: > { %s34_s14 = sadd.s32 1, %s899_s11  ;;  %s38_s15 = sadd.s32 1, %s903_s12  ;;  %s907_s13 = sphi %s967_s13, %s19_s13   ;;  %s903_s12 = sphi %s965_s12, %s1064_s12   ;;  %s899_s11 = sphi %s963_s11, %s1063_s11   ;;  %s895_s10 = sphi %s961_s10, %s1062_s10   ;;  %s891_s30 = sphi %s959_s30, %s1061_s30  }
   0x4   : > { %p36_p0 = scmp.ge.s32.totalorder %s34_s14, 4  ;;  %p809_p1 = scmp.ge.s32.totalorder %s907_s13, 1 }
   0x5   : > { %p376_p2 = scmp.lt.s32.totalorder %s907_s13, 9 }
   0x6   : > { %s1066_s14 = smov (%p36_p0, %s34_s14), 0  ;;  %s1068_s15 = smov (!%p36_p0, %s38_s15), %s903_s12 }
   0x7   : > { %p377_p3 = pnand %p809_p1, %p376_p2  ;;  %p40_p4 = scmp.ge.s32.totalorder %s1068_s15, 2 }
   0x8   : > { %p451_p5 = scmp.lt.s32.totalorder (!%p377_p3), %s895_s10, 1  ;;  %p453_p6 = scmp.lt.s32.totalorder (!%p377_p3), %s891_s30, 3 }
   0x9   : > { %s1070_s15 = smov (%p40_p4, %s1068_s15), 0  ;;  %380 = sbr.rel (%p377_p3) target bundleno = 566 (0x236), region = 56 }
   0xe   : > { %v506_v0 = vld [vmem:[%s1059_s8] sm:$0xff]  ;;  %s1072_s10 = smov (!%p451_p5, %s895_s10), 1  ;;  %s1074_s30 = smov (!%p453_p6, %s891_s30), 3  ;;  %vm509_vm0 = vcmask 64512   ;;  %vm603_vm1 = vcmask 1043456   ;;  %vm623_vm2 = vcmask 60416  }
   0xf   : > { %556 = vmatpush.msra.mxu1 %v506_v0  ;;  %528 = vmatpush.msra.mxu0 %v506_v0  ;;  %s810_s18 = sshll.u32 %s1072_s10, 2  ;;  %s480_s29 = scalar_lea.vmem %s1054_s3, %s1072_s10  ;;  %v536_v6 = vld [vmem:[%s1057_s6] sm:$0xff] }
  0x10   : > { %s459_s19 = sadd.s32 %s810_s18, %s1074_s30  ;;  %v561_v7 = vld [vmem:[%s1058_s7] sm:$0xff] }
  0x11   : > { %s995_s20 = sshll.u32 %s459_s19, 2  ;;  %v507_v10 = vld [vmem:[%s1055_s4] sm:$0xff] }
  0x12   : > { %s469_s23 = scalar_lea.vmem %s1052_s1, %s995_s20  ;;  %s461_s26 = scalar_lea.vmem %s1051_s0, %s995_s20  ;;  %v533_v11 = vld [vmem:[%s1056_s5] sm:$0xff] }
  0x13   : > { %v504_v1 = vld [vmem:[%s469_s23] sm:$0xf]  ;;  %s477_s25 = scalar_lea.vmem %s1053_s2, %s995_s20  ;;  %s499_s28 = scalar_lea.vmem %s1060_s9, %s995_s20 }
  0x14   : > { %v501_v2 = vld [vmem:[%s461_s26] sm:$0xf]  ;;  %v505_v3 = vunpack.c.l.bf16 %v504_v1 }
  0x15   : > { %v502_v4 = vunpack.c.l.bf16 %v501_v2  ;;  %v864_v21 = vld [vmem:[%s480_s29] ss:$0 sm:$0xff] }
  0x16   : > { %819 = vmatmul.msk.f32.vlgmr.msra.gmra.mxu1 %vm509_vm0, %v505_v3  ;;  %v537_v8 = vmul.f32 %v536_v6, %v505_v3  ;;  %v599_v26 = vld [vmem:[%s477_s25] sm:$0xf] }
  0x17   : > { %v503_v5 = vmul.f32 0.35355338, %v502_v4  ;;  %v605_v27 = vsel %vm603_vm1, %v599_v26, 0 }
  0x18   : > { %614 = vmatpush.bf16.msra.mxu3 %v605_v27 }
  0x19   : > { %818 = vmatmul.msk.f32.vlgmr.msra.gmra.mxu0 %vm509_vm0, %v503_v5  ;;  %v508_v14 = vmul.f32 %v507_v10, %v503_v5 }
  0x93   : > { %v558_v9 = vpop.f32.mrf.mxu1 }
  0x94   : > { %v562_v12 = vmul.f32 %v561_v7, %v558_v9 }
  0x96   : > { %v530_v13 = vpop.f32.mrf.mxu0  ;;  %v563_v16 = vadd.f32 %v562_v12, %v537_v8 }
  0x97   : > { %v534_v15 = vmul.f32 %v533_v11, %v530_v13 }
  0x98   : > { %v565_v17 = vpack.c.bf16 %v563_v16, %v563_v16 }
  0x99   : > { %v535_v18 = vadd.f32 %v534_v15, %v508_v14 }
  0x9a   : > { %v574_v19 = vsel %vm509_vm0, %v565_v17, 0 }
  0x9b   : > { %583 = vmatpush.bf16.xpose.msra.mxu2 %v574_v19  ;;  %v564_v20 = vpack.c.bf16 %v535_v18, %v535_v18 }
  0xa2   : > { %820 = vmatmul.msk.bf16.vlgmr.msra.gmra.mxu2 %vm509_vm0, %v564_v20 }
 0x125   : > { %v585_v22 = vpop.f32.mrf.mxu2 }
 0x126   : > { %v586_v23 = vadd.f32 %v864_v21, %v585_v22 }
 0x128   : > { %v589_v24 = vsel %vm509_vm0, %v586_v23, -inf }
 0x129   : > { %590 = vmax.xlane.f32.xlu0 %v589_v24 }
 0x12d   : > { %v587_v25 = vpop.f32.mrf.mxu2 }
 0x19c   : > { %v591_v28 = vpop.xlane.xlu0 %590 }
 0x19d   : > { %v592_v29 = vsub.f32 %v586_v23, %v591_v28 }
 0x19f   : > { %v593_v30 = vmul.f32 1.442695, %v592_v29 }
 0x1a1   : > { %865 = vpow2.f32 %v593_v30 }
 0x1a7   : > { %v866_v31 = vpop.eup %865 }
 0x1a8   : > { %v595_v32 = vsel %vm509_vm0, %v866_v31, 0.0  ;;  %v598_v33 = vpack.c.bf16 %v866_v31, %v866_v31 }
 0x1a9   : > { %596 = vadd.xlane.f32.xlu0 %v595_v32 }
 0x1aa   : > { %821 = vmatmul.msk.bf16.vlgmr.msra.gmra.mxu3 %vm509_vm0, %v598_v33 }
 0x21c   : > { %v597_v34 = vpop.xlane.xlu0 %596 }
 0x21d   : > { %867 = vrcp.f32 %v597_v34 }
 0x223   : > { %v868_v35 = vpop.eup %867 }
 0x22d   : > { %v616_v36 = vpop.f32.mrf.mxu3 }
 0x22e   : > { %v621_v37 = vmul.f32 %v868_v35, %v616_v36 }
 0x230   : > { %v622_v38 = vpack.c.bf16 %v621_v37, %v621_v37 }
 0x232   : > { %624 = vst.msk [vmem:[%s499_s28] sm:$0xf] %vm623_vm2, %v622_v38 }
 0x235   : > { %v618_v39 = vpop.f32.mrf.mxu3 }
 0x236 PF: > { %s19_s13 = sadd.s32 1, %s907_s13   ;;  %s1061_s30 = smov %s899_s11 }
 0x237   : > { %p16_p7 = scmp.ge.s32.totalorder %s19_s13, 10   ;;  %s1062_s10 = smov %s903_s12 }
 0x238   : > { %s1063_s11 = smov %s1066_s14  ;;  %s1064_s12 = smov %s1070_s15 }
 0x239   :  { %18 = sbr.rel (!%p16_p7) target bundleno = 3 (0x3), region = 101 }

// kernel: _lambda_.25
= control target key start
LH: loop header
LB: loop body
LE: loop exit
PB: predicated region body
PF: predicated region fallthrough
CT: control target
= control target key end

     0   :  { %s906_s24 = smov 0   ;;  %s908_s25 = smov 0   ;;  %s1016_s0 = inlined_call_operand.vmem [shape: bf16[2,8,32], index: 0, kind: input, shape index: {}]   ;;  %s1017_s1 = inlined_call_operand.vmem [shape: f32[1,32], index: 1, kind: input, shape index: {}]   ;;  %s1018_s2 = inlined_call_operand.vmem [shape: f32[1,32], index: 2, kind: input, shape index: {}]   ;;  %s1019_s3 = inlined_call_operand.vmem [shape: bf16[4,32,24], index: 3, kind: input, shape index: {}]   ;;  %s1020_s4 = inlined_call_operand.vmem [shape: f32[4,1,24], index: 4, kind: input, shape index: {}]   ;;  %s1021_s5 = inlined_call_operand.vmem [shape: bf16[2,4,8,8], index: 5, kind: output, shape index: {0}]   ;;  %s1022_s6 = inlined_call_operand.vmem [shape: bf16[2,4,8,8], index: 6, kind: output, shape index: {1}]   ;;  %s1023_s7 = inlined_call_operand.vmem [shape: bf16[2,4,8,8], index: 7, kind: output, shape index: {2}]  }
   0x1   :  { %1024 = sst [smem:[#allocation3_spill]] %s1016_s0  ;;  %s910_s26 = smov 0  }
   0x2   :  { %s912_s27 = smov 0   ;;  %s914_s28 = smov 0  }
   0x3 LB: > { %s30_s29 = sadd.s32 1, %s853_s26  ;;  %s37_s30 = sadd.s32 1, %s857_s27  ;;  %s861_s28 = sphi %s914_s28, %s18_s28   ;;  %s857_s27 = sphi %s912_s27, %s1029_s27   ;;  %s853_s26 = sphi %s910_s26, %s1028_s26   ;;  %s849_s25 = sphi %s908_s25, %s1027_s25   ;;  %s845_s24 = sphi %s906_s24, %s1026_s24  }
   0x4   : > { %p31_p0 = scmp.ge.s32.totalorder %s30_s29, 4  ;;  %p748_p1 = scmp.ge.s32.totalorder %s861_s28, 1 }
   0x5   : > { %p295_p2 = scmp.lt.s32.totalorder %s861_s28, 9 }
   0x6   : > { %s1031_s29 = smov (%p31_p0, %s30_s29), 0  ;;  %s1033_s30 = smov (!%p31_p0, %s37_s30), %s857_s27 }
   0x7   : > { %p296_p3 = pnand %p748_p1, %p295_p2  ;;  %p39_p4 = scmp.ge.s32.totalorder %s1033_s30, 2 }
   0x8   : > { %p365_p5 = scmp.lt.s32.totalorder (!%p296_p3), %s849_s25, 1  ;;  %p372_p6 = scmp.lt.s32.totalorder (!%p296_p3), %s845_s24, 3 }
   0x9   : > { %s1035_s30 = smov (%p39_p4, %s1033_s30), 0  ;;  %299 = sbr.rel (%p296_p3) target bundleno = 560 (0x230), region = 40 }
   0xa   : > { %s1025_s0 = sld [smem:[#allocation3_spill]] (!%p296_p3)  ;;  %p758_p7 = scmp.ne.s32.totalorder (!%p296_p3), %s845_s24, 0 }
   0xe   : > { %s1037_s25 = smov (!%p365_p5, %s849_s25), 1 }
   0xf   : > { %s940_s8 = scalar_select %p372_p6, %s845_s24, 3 }
  0x10   : > { %s749_s9 = sshll.u32 %s1037_s25, 2 }
  0x11   : > { %s371_s12 = scalar_lea.vmem %s1025_s0, %s749_s9  ;;  %s770_s13 = sshll.u32 %s940_s8, 4 }
  0x12   : > { %s949_s16 = scalar_lea.vmem %s1019_s3, %s770_s13  ;;  %s379_s19 = scalar_lea.vmem %s1020_s4, %s940_s8 }
  0x13   : > { %s388_s20 = sadd.s32 %s749_s9, %s940_s8  ;;  %417 = sbr.rel (%p758_p7) target bundleno = 298 (0x12a), region = 44 }
  0x14   : > { %s956_s21 = sshll.u32 %s388_s20, 2 }
  0x15   : > { %s390_s25 = scalar_lea.vmem %s1021_s5, %s956_s21  ;;  %s401_s14 = scalar_lea.vmem %s1022_s6, %s956_s21 }
  0x16   : > { %s412_s0 = scalar_lea.vmem %s1023_s7, %s956_s21 }
  0x18   : > { %v418_v0 = vld [vmem:[%s371_s12] sm:$0xf]  ;;  %vm420_vm0 = vcmask 261120   ;;  %v863_v3 = vmov 32.0   ;;  %vm461_vm5 = vcmask 257024  }
  0x19   : > { %v419_v1 = vunpack.c.l.bf16 %v418_v0  ;;  %818 = vrcp.f32 %v863_v3  ;;  %v816_v24 = vld [vmem:[%s1017_s1] ss:$0 sm:$0xff] }
  0x1a   : > { %v817_v26 = vld [vmem:[%s1018_s2] ss:$0 sm:$0xff] }
  0x1b   : > { %v421_v2 = vsel %vm420_vm0, %v419_v1, 0.0 }
  0x1c   : > { %422 = vadd.xlane.f32.xlu0 %v421_v2 }
  0x1f   : > { %v819_v4 = vpop.eup %818 }
  0x20   : > { %v425_v5 = vmul.f32 32.0, %v819_v4  ;;  %vm429_vm1 = vweird.f32 %v819_v4 }
  0x22   : > { %v426_v6 = vsub.f32 1.0, %v425_v5 }
  0x24   : > { %v427_v7 = vmul.f32 %v819_v4, %v426_v6 }
  0x26   : > { %v428_v8 = vadd.f32 %v819_v4, %v427_v7 }
  0x28   : > { %v430_v9 = vsel %vm429_vm1, %v819_v4, %v428_v8 }
  0x8f   : > { %v423_v10 = vpop.xlane.xlu0 %422 }
  0x90   : > { %v431_v11 = vmul.f32 %v430_v9, %v423_v10 }
  0x92   : > { %v432_v12 = vsub.f32 %v419_v1, %v431_v11 }
  0x94   : > { %v433_v13 = vmul.f32 %v432_v12, %v432_v12 }
  0x96   : > { %v434_v14 = vsel %vm420_vm0, %v433_v13, 0.0 }
  0x97   : > { %435 = vadd.xlane.f32.xlu0 %v434_v14 }
 0x10a   : > { %v436_v15 = vpop.xlane.xlu0 %435 }
 0x10b   : > { %v437_v16 = vmul.f32 %v436_v15, %v430_v9 }
 0x10d   : > { %v438_v17 = vadd.f32 1e-12, %v437_v16 }
 0x10f   : > { %820 = vrsqrt.f32 %v438_v17  ;;  %vm445_vm3 = vweird.f32 %v438_v17 }
 0x115   : > { %v821_v18 = vpop.eup %820 }
 0x116   : > { %v440_v19 = vmul.f32 %v821_v18, %v438_v17  ;;  %vm446_vm2 = vweird.f32 %v821_v18 }
 0x117   : > { %vm447_vm4 = vmor %vm445_vm3, %vm446_vm2 }
 0x118   : > { %v441_v20 = vmul.f32 %v821_v18, %v440_v19 }
 0x11a   : > { %v442_v21 = vmul.f32 0.5, %v441_v20 }
 0x11c   : > { %v443_v22 = vsub.f32 1.5, %v442_v21 }
 0x11e   : > { %v444_v23 = vmul.f32 %v821_v18, %v443_v22 }
 0x120   : > { %v448_v25 = vsel %vm447_vm4, %v821_v18, %v444_v23 }
 0x121   : > { %v449_v27 = vmul.f32 %v448_v25, %v432_v12 }
 0x123   : > { %v454_v28 = vmul.f32 %v816_v24, %v449_v27 }
 0x125   : > { %v459_v29 = vadd.f32 %v817_v26, %v454_v28 }
 0x127   : > { %v460_v30 = vpack.c.bf16 %v459_v29, %v459_v29 }
 0x129   : > { %462 = vst.msk [vmem:[#allocation2] sm:$0xf] %vm461_vm5, %v460_v30 }
 0x12a PF: > { %v772_v31 = vld [vmem:[%s949_s16 + $0x8] sm:$0xff]  ;;  %v771_v32 = vld [vmem:[%s949_s16] sm:$0xff]  ;;  %vm484_vm6 = vcmask 261120   ;;  %vm502_vm7 = vcmask 60416   ;;  %s864_s22 = smov 120   ;;  %s865_s16 = smov 112  }
 0x12b   : > { %494 = vmatpush.bf16.msra.mxu0 %v772_v31  ;;  %v822_v34 = vld [vmem:[%s379_s19] ss:$0 sm:$0xff] }
 0x12f   : > { %495 = vmatpush.bf16.msra.mxu0 %v771_v32 }
 0x130   : > { %v463_v33 = vld [vmem:[#allocation2] sm:$0xf] }
 0x132   : > { %767 = vmatmul.msk.bf16.vlgmr.msra.gmra.mxu0 %vm484_vm6, %v463_v33 }
 0x1af   : > { %v497_v35 = vpop.f32.mrf.mxu0 }
 0x1b0   : > { %v498_v36 = vadd.f32 %v822_v34, %v497_v35 }
 0x1b2   : > { %v501_v37 = vpack.c.bf16 %v498_v36, %v498_v36 }
 0x1b4   : > { %505 = vrot.lane.b32.xlu0 %v501_v37, %s864_s22  ;;  %503 = vst.msk [vmem:[%s390_s25] sm:$0xf] %vm502_vm7, %v501_v37 }
 0x1b7   : > { %v499_v38 = vpop.f32.mrf.mxu0 }
 0x1bc   : > { %509 = vrot.lane.b32.xlu0 %v501_v37, %s865_s16 }
 0x226   : > { %v506_v39 = vpop.permute.xlu0 %505 }
 0x227   : > { %508 = vst.msk [vmem:[%s401_s14] sm:$0xf] %vm502_vm7, %v506_v39 }
 0x22e   : > { %v510_v40 = vpop.permute.xlu0 %509 }
 0x22f   : > { %512 = vst.msk [vmem:[%s412_s0] sm:$0xf] %vm502_vm7, %v510_v40 }
 0x230 PF: > { %s18_s28 = sadd.s32 1, %s861_s28   ;;  %s1026_s24 = smov %s853_s26 }
 0x231   : > { %p15_p8 = scmp.ge.s32.totalorder %s18_s28, 10   ;;  %s1027_s25 = smov %s857_s27 }
 0x232   : > { %s1028_s26 = smov %s1031_s29  ;;  %s1029_s27 = smov %s1035_s30 }
 0x233   :  { %17 = sbr.rel (!%p15_p8) target bundleno = 3 (0x3), region = 104 }

// kernel: _lambda_.27
= control target key start
LH: loop header
LB: loop body
LE: loop exit
PB: predicated region body
PF: predicated region fallthrough
CT: control target
= control target key end

     0   :  { %s604_s15 = smov 0   ;;  %s606_s16 = smov 0   ;;  %s675_s0 = inlined_call_operand.vmem [shape: bf16[2,4,8,8], index: 0, kind: input, shape index: {}]   ;;  %s676_s1 = inlined_call_operand.vmem [shape: bf16[4,8,32], index: 1, kind: input, shape index: {}]   ;;  %s677_s2 = inlined_call_operand.vmem [shape: f32[1,1,32], index: 2, kind: input, shape index: {}]   ;;  %s678_s3 = inlined_call_operand.vmem [shape: bf16[2,8,32], index: 3, kind: input, shape index: {}]   ;;  %s679_s4 = inlined_call_operand.vmem [shape: bf16[2,8,32], index: 4, kind: output, shape index: {}]  }
   0x1   :  { %s608_s17 = smov 0   ;;  %s610_s18 = smov 0  }
   0x2   :  { %s612_s19 = smov 0  }
   0x3 LB: > { %s26_s20 = sadd.s32 1, %s568_s17  ;;  %s33_s21 = sadd.s32 1, %s572_s18  ;;  %s576_s19 = sphi %s612_s19, %s14_s19   ;;  %s572_s18 = sphi %s610_s18, %s683_s18   ;;  %s568_s17 = sphi %s608_s17, %s682_s17   ;;  %s564_s16 = sphi %s606_s16, %s681_s16   ;;  %s560_s15 = sphi %s604_s15, %s680_s15  }
   0x4   : > { %p27_p0 = scmp.ge.s32.totalorder %s26_s20, 4  ;;  %p485_p1 = scmp.ge.s32.totalorder %s576_s19, 1 }
   0x5   : > { %p224_p2 = scmp.lt.s32.totalorder %s576_s19, 9 }
   0x6   : > { %s685_s20 = smov (%p27_p0, %s26_s20), 0  ;;  %s687_s21 = smov (!%p27_p0, %s33_s21), %s572_s18 }
   0x7   : > { %p225_p3 = pnand %p485_p1, %p224_p2  ;;  %p35_p4 = scmp.ge.s32.totalorder %s687_s21, 2 }
   0x8   : > { %p272_p5 = scmp.lt.s32.totalorder (!%p225_p3), %s564_s16, 1  ;;  %p274_p6 = scmp.lt.s32.totalorder (!%p225_p3), %s560_s15, 3 }
   0x9   : > { %s689_s21 = smov (%p35_p4, %s687_s21), 0  ;;  %228 = sbr.rel (%p225_p3) target bundleno = 172 (0xac), region = 36 }
   0xa   : > { %p491_p7 = scmp.ne.s32.totalorder (!%p225_p3), %s560_s15, 0 }
   0xe   : > { %s691_s16 = smov (!%p272_p5, %s564_s16), 1 }
   0xf   : > { %s275_s22 = scalar_select %p274_p6, %s560_s15, 3 }
  0x10   : > { %s638_s23 = sshll.u32 %s691_s16, 2  ;;  %308 = sbr.rel (%p491_p7) target bundleno = 23 (0x17), region = 40 }
  0x11   : > { %s277_s24 = sadd.s32 %s638_s23, %s275_s22  ;;  %s488_s25 = sshll.u32 %s275_s22, 2 }
  0x12   : > { %s487_s26 = sshll.u32 %s277_s24, 2  ;;  %s286_s29 = scalar_lea.vmem %s676_s1, %s488_s25 }
  0x13   : > { %s279_s6 = scalar_lea.vmem %s675_s0, %s487_s26  ;;  %s296_s9 = scalar_lea.vmem %s678_s3, %s638_s23 }
  0x14   : > { %s303_s12 = scalar_lea.vmem %s679_s4, %s638_s23 }
  0x15   : > { %vm309_vm0 = vcmask 261120   ;;  %v578_v0 = vmov 0.0  }
  0x16   : > { %310 = vst.msk [vmem:[#allocation2] sm:$0xff] %vm309_vm0, %v578_v0 }
  0x17 PF: > { %v313_v1 = vld [vmem:[%s286_s29] sm:$0xf]  ;;  %vm318_vm1 = vcmask 1043456   ;;  %vm314_vm2 = vcmask 64512   ;;  %vm336_vm3 = vcmask 261120   ;;  %p493_p8 = scmp.ne.s32.totalorder %s560_s15, 3 }
  0x18   : > { %v320_v2 = vsel %vm318_vm1, %v313_v1, 0  ;;  %v312_v3 = vld [vmem:[%s279_s6] sm:$0xf] }
  0x19   : > { %329 = vmatpush.bf16.msra.mxu0 %v320_v2 }
  0x1c   : > { %492 = vmatmul.msk.bf16.vlgmr.msra.gmra.mxu0 %vm314_vm2, %v312_v3 }
  0x1d   : > { %v311_v4 = vld [vmem:[#allocation2] sm:$0xff] }
  0x99   : > { %v331_v5 = vpop.f32.mrf.mxu0 }
  0x9a   : > { %v335_v6 = vadd.f32 %v331_v5, %v311_v4 }
  0x9c   : > { %337 = vst.msk [vmem:[#allocation2] sm:$0xff] %vm336_vm3, %v335_v6 }
  0x9d   : > { %341 = sbr.rel (%p493_p8) target bundleno = 172 (0xac), region = 44 }
  0xa1   : > { %v333_v7 = vpop.f32.mrf.mxu0 }
  0xa2   : > { %v537_v9 = vld [vmem:[%s677_s2] ss:$0 sm:$0xff]  ;;  %vm352_vm4 = vcmask 257024  }
  0xa3   : > { %v342_v8 = vld [vmem:[#allocation2] sm:$0xff] }
  0xa4   : > { %v348_v10 = vld [vmem:[%s296_s9] sm:$0xf]  ;;  %v347_v11 = vadd.f32 %v537_v9, %v342_v8 }
  0xa5   : > { %v349_v12 = vunpack.c.l.bf16 %v348_v10 }
  0xa7   : > { %v350_v13 = vadd.f32 %v349_v12, %v347_v11 }
  0xa9   : > { %v351_v14 = vpack.c.bf16 %v350_v13, %v350_v13 }
  0xab   : > { %353 = vst.msk [vmem:[%s303_s12] sm:$0xf] %vm352_vm4, %v351_v14 }
  0xac PF: > { %s14_s19 = sadd.s32 1, %s576_s19   ;;  %s680_s15 = smov %s568_s17 }
  0xad   : > { %p11_p9 = scmp.ge.s32.totalorder %s14_s19, 10   ;;  %s681_s16 = smov %s572_s18 }
  0xae   : > { %s682_s17 = smov %s685_s20  ;;  %s683_s18 = smov %s689_s21 }
  0xaf   :  { %13 = sbr.rel (!%p11_p9) target bundleno = 3 (0x3), region = 83 }

// kernel: _lambda_.35
= control target key start
LH: loop header
LB: loop body
LE: loop exit
PB: predicated region body
PF: predicated region fallthrough
CT: control target
= control target key end

     0   :  { %vm18_vm0 = vcmask 261120   ;;  %v101_v5 = vmov 32.0   ;;  %s143_s0 = inlined_call_operand.vmem [shape: bf16[16,32], index: 0, kind: input, shape index: {}]   ;;  %s144_s1 = inlined_call_operand.vmem [shape: f32[1,32], index: 1, kind: input, shape index: {}]   ;;  %s145_s2 = inlined_call_operand.vmem [shape: f32[1,32], index: 2, kind: input, shape index: {}]   ;;  %s146_s3 = inlined_call_operand.vmem [shape: f32[16,32], index: 3, kind: output, shape index: {}]  }
   0x1   :  { %v89_v0 = vld [vmem:[%s143_s0] sm:$0xff]   ;;  %95 = vrcp.f32 %v101_v5 }
   0x2   :  { %v90_v1 = vunpack.c.l.bf16 %v89_v0  ;;  %v91_v3 = vunpack.c.h.bf16 %v89_v0  ;;  %v93_v36 = vld [vmem:[%s144_s1] ss:$0 sm:$0xff] }
   0x3   :  { %v94_v39 = vld [vmem:[%s145_s2] ss:$0 sm:$0xff] }
   0x4   :  { %v19_v2 = vsel %vm18_vm0, %v90_v1, 0.0  ;;  %v22_v4 = vsel %vm18_vm0, %v91_v3, 0.0 }
   0x5   :  { %20 = vadd.xlane.f32.xlu0 %v19_v2 }
   0x7   :  { %v96_v6 = vpop.eup %95 }
   0x8   :  { %v26_v7 = vmul.f32 32.0, %v96_v6  ;;  %vm30_vm1 = vweird.f32 %v96_v6 }
   0xa   :  { %v27_v8 = vsub.f32 1.0, %v26_v7 }
   0xc   :  { %v28_v9 = vmul.f32 %v96_v6, %v27_v8 }
   0xd   :  { %23 = vadd.xlane.f32.xlu0 %v22_v4 }
   0xe   :  { %v29_v10 = vadd.f32 %v96_v6, %v28_v9 }
  0x10   :  { %v31_v11 = vsel %vm30_vm1, %v96_v6, %v29_v10 }
  0x78   :  { %v21_v12 = vpop.xlane.xlu0 %20 }
  0x79   :  { %v32_v13 = vmul.f32 %v31_v11, %v21_v12 }
  0x7b   :  { %v34_v14 = vsub.f32 %v90_v1, %v32_v13 }
  0x7d   :  { %v36_v15 = vmul.f32 %v34_v14, %v34_v14 }
  0x7f   :  { %v38_v16 = vsel %vm18_vm0, %v36_v15, 0.0 }
  0x80   :  { %39 = vadd.xlane.f32.xlu1 %v38_v16  ;;  %v24_v17 = vpop.xlane.xlu0 %23 }
  0x81   :  { %v33_v18 = vmul.f32 %v31_v11, %v24_v17 }
  0x83   :  { %v35_v19 = vsub.f32 %v91_v3, %v33_v18 }
  0x85   :  { %v37_v20 = vmul.f32 %v35_v19, %v35_v19 }
  0x87   :  { %v41_v21 = vsel %vm18_vm0, %v37_v20, 0.0 }
  0x88   :  { %42 = vadd.xlane.f32.xlu1 %v41_v21 }
  0xf3   :  { %v40_v22 = vpop.xlane.xlu1 %39 }
  0xf4   :  { %v44_v23 = vmul.f32 %v40_v22, %v31_v11 }
  0xf6   :  { %v46_v24 = vadd.f32 1e-12, %v44_v23 }
  0xf8   :  { %97 = vrsqrt.f32 %v46_v24  ;;  %vm54_vm3 = vweird.f32 %v46_v24 }
  0xfb   :  { %v43_v25 = vpop.xlane.xlu1 %42 }
  0xfc   :  { %v45_v26 = vmul.f32 %v43_v25, %v31_v11 }
  0xfe   :  { %v98_v27 = vpop.eup %97  ;;  %v47_v28 = vadd.f32 1e-12, %v45_v26 }
  0xff   :  { %v49_v29 = vmul.f32 %v98_v27, %v46_v24  ;;  %vm55_vm2 = vweird.f32 %v98_v27 }
 0x100   :  { %99 = vrsqrt.f32 %v47_v28  ;;  %vm56_vm4 = vmor %vm54_vm3, %vm55_vm2  ;;  %vm64_vm6 = vweird.f32 %v47_v28 }
 0x101   :  { %v50_v30 = vmul.f32 %v98_v27, %v49_v29 }
 0x103   :  { %v51_v31 = vmul.f32 0.5, %v50_v30 }
 0x105   :  { %v52_v32 = vsub.f32 1.5, %v51_v31 }
 0x106   :  { %v100_v33 = vpop.eup %99 }
 0x107   :  { %v53_v34 = vmul.f32 %v98_v27, %v52_v32  ;;  %v59_v35 = vmul.f32 %v100_v33, %v47_v28  ;;  %vm65_vm5 = vweird.f32 %v100_v33 }
 0x108   :  { %vm66_vm7 = vmor %vm64_vm6, %vm65_vm5 }
 0x109   :  { %v57_v37 = vsel %vm56_vm4, %v98_v27, %v53_v34  ;;  %v60_v38 = vmul.f32 %v100_v33, %v59_v35 }
 0x10a   :  { %v68_v40 = vmul.f32 %v57_v37, %v34_v14 }
 0x10b   :  { %v61_v41 = vmul.f32 0.5, %v60_v38 }
 0x10c   :  { %v74_v42 = vmul.f32 %v93_v36, %v68_v40 }
 0x10d   :  { %v62_v43 = vsub.f32 1.5, %v61_v41 }
 0x10e   :  { %v80_v44 = vadd.f32 %v94_v39, %v74_v42 }
 0x10f   :  { %v63_v45 = vmul.f32 %v100_v33, %v62_v43 }
 0x110   :  { %82 = vst.msk [vmem:[%s146_s3] sm:$0xff] %vm18_vm0, %v80_v44 }
 0x111   :  { %v67_v46 = vsel %vm66_vm7, %v100_v33, %v63_v45 }
 0x112   :  { %v69_v47 = vmul.f32 %v67_v46, %v35_v19 }
 0x114   :  { %v75_v48 = vmul.f32 %v93_v36, %v69_v47 }
 0x116   :  { %v81_v49 = vadd.f32 %v94_v39, %v75_v48 }
 0x118   :  { %83 = vst.msk [vmem:[%s146_s3 + $0x8] sm:$0xff] %vm18_vm0, %v81_v49 }

// kernel: _lambda_.29
= control target key start
LH: loop header
LB: loop body
LE: loop exit
PB: predicated region body
PF: predicated region fallthrough
CT: control target
= control target key end

     0   :  { %vm22_vm8 = vcmask 261120   ;;  %v232_v40 = vmov 0.0   ;;  %vm144_vm11 = vcmask 523264   ;;  %vm186_vm12 = vcmask 257024   ;;  %s309_s1 = inlined_call_operand.vmem [shape: bf16[64,32], index: 1, kind: input, shape index: {}]   ;;  %s310_s0 = inlined_call_operand.vmem [shape: bf16[16,64], index: 0, kind: input, shape index: {}]   ;;  %s311_s2 = inlined_call_operand.vmem [shape: f32[1,32], index: 2, kind: input, shape index: {}]   ;;  %s312_s3 = inlined_call_operand.vmem [shape: bf16[16,32], index: 3, kind: input, shape index: {}]   ;;  %s313_s4 = inlined_call_operand.vmem [shape: bf16[16,32], index: 4, kind: output, shape index: {}]  }
   0x1   :  { %v213_v0 = vld [vmem:[%s309_s1 + $0x18] sm:$0xff]  ;;  %v264_v1 = vld [vmem:[%s310_s0] sm:$0xff]   ;;  %v212_v2 = vld [vmem:[%s309_s1 + $0x10] sm:$0xff]  ;;  %23 = vst.msk [vmem:[#allocation2] sm:$0xff] %vm22_vm8, %v232_v40 }
   0x2   :  { %152 = vmatpush.bf16.msra.mxu0 %v213_v0  ;;  %v216_v3 = vunpack.c.l.bf16 %v264_v1  ;;  %v217_v4 = vunpack.c.h.bf16 %v264_v1  ;;  %v211_v7 = vld [vmem:[%s309_s1 + $0x8] sm:$0xff]  ;;  %v210_v12 = vld [vmem:[%s309_s1] sm:$0xff]  ;;  %24 = vst.msk [vmem:[#allocation2 + $0x8] sm:$0xff] %vm22_vm8, %v232_v40 }
   0x3   :  { %v223_v1 = vld [vmem:[%s311_s2] ss:$0 sm:$0xff] }
   0x4   :  { %v273_v5 = vmul.f32 0.70710677, %v216_v3  ;;  %v277_v6 = vmul.f32 0.70710677, %v217_v4 }
   0x6   :  { %153 = vmatpush.bf16.msra.mxu0 %v212_v2  ;;  %v31_v8 = vand.u32 2147483647, %v273_v5  ;;  %v32_v9 = vand.u32 2147483647, %v277_v6  ;;  %vm97_vm9 = vcmp.ge.f32.partialorder %v273_v5, 0.0  ;;  %vm98_vm10 = vcmp.ge.f32.partialorder %v277_v6, 0.0 }
   0x8   :  { %v33_v10 = vmul.f32 0.3275911, %v31_v8  ;;  %v34_v11 = vmul.f32 0.3275911, %v32_v9  ;;  %v85_v31 = vsub.f32 0.0, %v31_v8  ;;  %v86_v33 = vsub.f32 0.0, %v32_v9 }
   0x9   :  { %v110_v5 = vld [vmem:[#allocation2] sm:$0xff] }
   0xa   :  { %154 = vmatpush.bf16.msra.mxu0 %v211_v7  ;;  %v35_v13 = vadd.f32 1.0, %v33_v10  ;;  %v36_v14 = vadd.f32 1.0, %v34_v11  ;;  %v87_v39 = vmul.f32 %v85_v31, %v31_v8  ;;  %v88_v42 = vmul.f32 %v86_v33, %v32_v9 }
   0xb   :  { %v103_v9 = vmul.f32 0.5, %v216_v3  ;;  %v104_v11 = vmul.f32 0.5, %v217_v4  ;;  %v219_v3 = vld [vmem:[%s312_s3] sm:$0xff]  }
   0xc   :  { %224 = vrcp.f32 %v35_v13  ;;  %vm42_vm0 = vweird.f32 %v35_v13  ;;  %v48_v18 = vand.u32 2147483648, %v35_v13  ;;  %v46_v21 = vand.u32 2147483647, %v35_v13 }
   0xd   :  { %226 = vrcp.f32 %v36_v14  ;;  %v63_v22 = vand.u32 2147483648, %v36_v14  ;;  %vm57_vm2 = vweird.f32 %v36_v14  ;;  %v61_v24 = vand.u32 2147483647, %v36_v14 }
   0xe   :  { %155 = vmatpush.bf16.msra.mxu0 %v210_v12  ;;  %v49_v26 = vor.u32 1.1754944e-38, %v48_v18  ;;  %vm47_vm5 = vcmp.eq.f32.partialorder %v46_v21, 8.507059e+37  ;;  %v89_v46 = vmul.f32 1.442695, %v87_v39  ;;  %v91_v48 = vmul.f32 1.442695, %v88_v42 }
   0xf   :  { %v64_v29 = vor.u32 1.1754944e-38, %v63_v22  ;;  %vm62_vm7 = vcmp.eq.f32.partialorder %v61_v24, 8.507059e+37 }
  0x10   :  { %228 = vpow2.f32 %v89_v46 }
  0x11   :  { %230 = vpow2.f32 %v91_v48 }
  0x12   :  { %v225_v15 = vpop.eup %224 }
  0x13   :  { %v227_v16 = vpop.eup %226  ;;  %v38_v17 = vmul.f32 %v225_v15, %v35_v13  ;;  %vm43_vm1 = vweird.f32 %v225_v15 }
  0x14   :  { %v53_v19 = vmul.f32 %v227_v16, %v36_v14  ;;  %vm58_vm3 = vweird.f32 %v227_v16  ;;  %vm44_vm4 = vmor %vm42_vm0, %vm43_vm1 }
  0x15   :  { %v39_v20 = vsub.f32 1.0, %v38_v17  ;;  %vm59_vm6 = vmor %vm57_vm2, %vm58_vm3 }
  0x16   :  { %v54_v23 = vsub.f32 1.0, %v53_v19  ;;  %v229_v57 = vpop.eup %228  ;;  %v111_v19 = vld [vmem:[#allocation2 + $0x8] sm:$0xff] }
  0x17   :  { %v40_v25 = vmul.f32 %v225_v15, %v39_v20  ;;  %v231_v59 = vpop.eup %230  ;;  %v220_v20 = vunpack.c.l.bf16 %v219_v3 }
  0x18   :  { %v55_v27 = vmul.f32 %v227_v16, %v54_v23 }
  0x19   :  { %v41_v28 = vadd.f32 %v225_v15, %v40_v25 }
  0x1a   :  { %v56_v30 = vadd.f32 %v227_v16, %v55_v27 }
  0x1b   :  { %v45_v32 = vsel %vm44_vm4, %v225_v15, %v41_v28 }
  0x1c   :  { %v50_v34 = vsel %vm47_vm5, %v49_v26, %v45_v32  ;;  %v60_v35 = vsel %vm59_vm6, %v227_v16, %v56_v30  ;;  %v221_v26 = vunpack.c.h.bf16 %v219_v3 }
  0x1d   :  { %v65_v36 = vsel %vm62_vm7, %v64_v29, %v60_v35  ;;  %v67_v37 = vmul.f32 1.0614054, %v50_v34 }
  0x1e   :  { %v68_v38 = vmul.f32 1.0614054, %v65_v36 }
  0x1f   :  { %v69_v41 = vadd.f32 -1.4531521, %v67_v37 }
  0x20   :  { %v70_v43 = vadd.f32 -1.4531521, %v68_v38 }
  0x21   :  { %v71_v44 = vmul.f32 %v69_v41, %v50_v34 }
  0x22   :  { %v72_v45 = vmul.f32 %v70_v43, %v65_v36 }
  0x23   :  { %v73_v47 = vadd.f32 1.4214138, %v71_v44 }
  0x24   :  { %v74_v49 = vadd.f32 1.4214138, %v72_v45 }
  0x25   :  { %v75_v50 = vmul.f32 %v73_v47, %v50_v34 }
  0x26   :  { %v76_v51 = vmul.f32 %v74_v49, %v65_v36 }
  0x27   :  { %v77_v52 = vadd.f32 -0.28449672, %v75_v50 }
  0x28   :  { %v78_v53 = vadd.f32 -0.28449672, %v76_v51 }
  0x29   :  { %v79_v54 = vmul.f32 %v77_v52, %v50_v34 }
  0x2a   :  { %v80_v55 = vmul.f32 %v78_v53, %v65_v36 }
  0x2b   :  { %v81_v56 = vadd.f32 0.2548296, %v79_v54 }
  0x2c   :  { %v82_v58 = vadd.f32 0.2548296, %v80_v55 }
  0x2d   :  { %v83_v60 = vmul.f32 %v81_v56, %v50_v34 }
  0x2e   :  { %v84_v61 = vmul.f32 %v82_v58, %v65_v36 }
  0x2f   :  { %v93_v62 = vmul.f32 %v229_v57, %v83_v60 }
  0x30   :  { %v94_v63 = vmul.f32 %v231_v59, %v84_v61 }
  0x31   :  { %v95_v0 = vsub.f32 1.0, %v93_v62 }
  0x32   :  { %v96_v2 = vsub.f32 1.0, %v94_v63 }
  0x33   :  { %v99_v7 = vsub.f32 0.0, %v95_v0 }
  0x34   :  { %v100_v8 = vsub.f32 0.0, %v96_v2 }
  0x35   :  { %v101_v10 = vsel %vm97_vm9, %v95_v0, %v99_v7 }
  0x36   :  { %v102_v12 = vsel %vm98_vm10, %v96_v2, %v100_v8  ;;  %v105_v13 = vadd.f32 1.0, %v101_v10 }
  0x37   :  { %v106_v14 = vadd.f32 1.0, %v102_v12 }
  0x38   :  { %v107_v15 = vmul.f32 %v105_v13, %v103_v9 }
  0x39   :  { %v108_v16 = vmul.f32 %v106_v14, %v104_v11 }
  0x3b   :  { %v109_v17 = vpack.c.bf16 %v108_v16, %v107_v15 }
  0x3d   :  { %209 = vmatmul.msk.bf16.vlgmr.msra.gmra.mxu0 %vm144_vm11, %v109_v17 }
  0xba   :  { %v157_v18 = vpop.f32.mrf.mxu0 }
  0xbb   :  { %v162_v6 = vadd.f32 %v157_v18, %v110_v5 }
  0xbd   :  { %165 = vst.msk [vmem:[#allocation2] sm:$0xff] %vm22_vm8, %v162_v6 }
  0xc2   :  { %v159_v4 = vpop.f32.mrf.mxu0 }
  0xc3   :  { %v163_v21 = vadd.f32 %v159_v4, %v111_v19 }
  0xc4   :  { %v170_v22 = vld [vmem:[#allocation2] sm:$0xff] }
  0xc5   :  { %v176_v23 = vadd.f32 %v223_v1, %v170_v22  ;;  %166 = vst.msk [vmem:[#allocation2 + $0x8] sm:$0xff] %vm22_vm8, %v163_v21 }
  0xc7   :  { %v182_v24 = vadd.f32 %v220_v20, %v176_v23 }
  0xc9   :  { %v184_v25 = vpack.c.bf16 %v182_v24, %v182_v24 }
  0xcb   :  { %187 = vst.msk [vmem:[%s313_s4] sm:$0xf] %vm186_vm12, %v184_v25 }
  0xcc   :  { %v171_v27 = vld [vmem:[#allocation2 + $0x8] sm:$0xff] }
  0xcd   :  { %v177_v28 = vadd.f32 %v223_v1, %v171_v27 }
  0xcf   :  { %v183_v29 = vadd.f32 %v221_v26, %v177_v28 }
  0xd1   :  { %v185_v30 = vpack.c.bf16 %v183_v29, %v183_v29 }
  0xd3   :  { %188 = vst.msk [vmem:[%s313_s4 + $0x4] sm:$0xf] %vm186_vm12, %v185_v30 }

// kernel: _lambda_.36
= control target key start
LH: loop header
LB: loop body
LE: loop exit
PB: predicated region body
PF: predicated region fallthrough
CT: control target
= control target key end

     0   :  { %vm27_vm0 = vcmask 261120   ;;  %v174_v4 = vmov 32.0   ;;  %vm93_vm6 = vcmask 257024   ;;  %vm141_vm9 = vcmask 785408   ;;  %s237_s0 = inlined_call_operand.vmem [shape: f32[16,32], index: 0, kind: input, shape index: {}]   ;;  %s238_s1 = inlined_call_operand.vmem [shape: f32[1,32], index: 1, kind: input, shape index: {}]   ;;  %s239_s2 = inlined_call_operand.vmem [shape: f32[1,32], index: 2, kind: input, shape index: {}]   ;;  %s240_s4 = inlined_call_operand.vmem [shape: f32[1,96], index: 4, kind: input, shape index: {}]   ;;  %s241_s3 = inlined_call_operand.vmem [shape: bf16[32,96], index: 3, kind: input, shape index: {}]   ;;  %s242_s5 = inlined_call_operand.vmem [shape: f32[16,96], index: 5, kind: output, shape index: {}]  }
   0x1   :  { %v25_v0 = vld [vmem:[%s237_s0] sm:$0xff]  ;;  %v26_v2 = vld [vmem:[%s237_s0 + $0x8] sm:$0xff]  ;;  %168 = vrcp.f32 %v174_v4 }
   0x2   :  { %v28_v1 = vsel %vm27_vm0, %v25_v0, 0.0  ;;  %v31_v3 = vsel %vm27_vm0, %v26_v2, 0.0  ;;  %v163_v24 = vld [vmem:[%s241_s3 + $0x8] sm:$0xff]  ;;  %v162_v27 = vld [vmem:[%s241_s3] sm:$0xff] }
   0x3   :  { %29 = vadd.xlane.f32.xlu0 %v28_v1  ;;  %133 = vmatpush.bf16.msra.mxu0 %v163_v24  ;;  %v165_v37 = vld [vmem:[%s238_s1] ss:$0 sm:$0xff] }
   0x4   :  { %v166_v40 = vld [vmem:[%s239_s2] ss:$0 sm:$0xff] }
   0x5   :  { %v167_v54 = vld [vmem:[%s240_s4] ss:$0 sm:$0xff] }
   0x7   :  { %v169_v5 = vpop.eup %168  ;;  %134 = vmatpush.bf16.msra.mxu0 %v162_v27 }
   0x8   :  { %v35_v6 = vmul.f32 32.0, %v169_v5  ;;  %vm39_vm1 = vweird.f32 %v169_v5 }
   0xa   :  { %v36_v7 = vsub.f32 1.0, %v35_v6 }
   0xb   :  { %32 = vadd.xlane.f32.xlu0 %v31_v3 }
   0xc   :  { %v37_v8 = vmul.f32 %v169_v5, %v36_v7 }
   0xe   :  { %v38_v9 = vadd.f32 %v169_v5, %v37_v8 }
  0x10   :  { %v40_v10 = vsel %vm39_vm1, %v169_v5, %v38_v9 }
  0x76   :  { %v30_v11 = vpop.xlane.xlu0 %29 }
  0x77   :  { %v41_v12 = vmul.f32 %v40_v10, %v30_v11 }
  0x79   :  { %v43_v13 = vsub.f32 %v25_v0, %v41_v12 }
  0x7b   :  { %v45_v14 = vmul.f32 %v43_v13, %v43_v13 }
  0x7d   :  { %v47_v15 = vsel %vm27_vm0, %v45_v14, 0.0 }
  0x7e   :  { %48 = vadd.xlane.f32.xlu1 %v47_v15  ;;  %v33_v16 = vpop.xlane.xlu0 %32 }
  0x7f   :  { %v42_v17 = vmul.f32 %v40_v10, %v33_v16 }
  0x81   :  { %v44_v18 = vsub.f32 %v26_v2, %v42_v17 }
  0x83   :  { %v46_v19 = vmul.f32 %v44_v18, %v44_v18 }
  0x85   :  { %v50_v20 = vsel %vm27_vm0, %v46_v19, 0.0 }
  0x86   :  { %51 = vadd.xlane.f32.xlu1 %v50_v20 }
  0xf1   :  { %v49_v21 = vpop.xlane.xlu1 %48 }
  0xf2   :  { %v53_v22 = vmul.f32 %v49_v21, %v40_v10 }
  0xf4   :  { %v55_v23 = vadd.f32 1e-05, %v53_v22 }
  0xf6   :  { %170 = vrsqrt.f32 %v55_v23  ;;  %vm63_vm3 = vweird.f32 %v55_v23 }
  0xf9   :  { %v52_v25 = vpop.xlane.xlu1 %51 }
  0xfa   :  { %v54_v26 = vmul.f32 %v52_v25, %v40_v10 }
  0xfc   :  { %v171_v28 = vpop.eup %170  ;;  %v56_v29 = vadd.f32 1e-05, %v54_v26 }
  0xfd   :  { %v58_v30 = vmul.f32 %v171_v28, %v55_v23  ;;  %vm64_vm2 = vweird.f32 %v171_v28 }
  0xfe   :  { %172 = vrsqrt.f32 %v56_v29  ;;  %vm65_vm4 = vmor %vm63_vm3, %vm64_vm2  ;;  %vm73_vm7 = vweird.f32 %v56_v29 }
  0xff   :  { %v59_v31 = vmul.f32 %v171_v28, %v58_v30 }
 0x101   :  { %v60_v32 = vmul.f32 0.5, %v59_v31 }
 0x103   :  { %v61_v33 = vsub.f32 1.5, %v60_v32 }
 0x104   :  { %v173_v34 = vpop.eup %172 }
 0x105   :  { %v62_v35 = vmul.f32 %v171_v28, %v61_v33  ;;  %v68_v36 = vmul.f32 %v173_v34, %v56_v29  ;;  %vm74_vm5 = vweird.f32 %v173_v34 }
 0x106   :  { %vm75_vm8 = vmor %vm73_vm7, %vm74_vm5 }
 0x107   :  { %v66_v38 = vsel %vm65_vm4, %v171_v28, %v62_v35  ;;  %v69_v39 = vmul.f32 %v173_v34, %v68_v36 }
 0x108   :  { %v77_v41 = vmul.f32 %v66_v38, %v43_v13 }
 0x109   :  { %v70_v42 = vmul.f32 0.5, %v69_v39 }
 0x10a   :  { %v83_v43 = vmul.f32 %v165_v37, %v77_v41 }
 0x10b   :  { %v71_v44 = vsub.f32 1.5, %v70_v42 }
 0x10c   :  { %v89_v45 = vadd.f32 %v166_v40, %v83_v43 }
 0x10d   :  { %v72_v46 = vmul.f32 %v173_v34, %v71_v44 }
 0x10e   :  { %v91_v47 = vpack.c.bf16 %v89_v45, %v89_v45 }
 0x10f   :  { %v76_v48 = vsel %vm75_vm8, %v173_v34, %v72_v46 }
 0x110   :  { %94 = vst.msk [vmem:[#allocation2] sm:$0xf] %vm93_vm6, %v91_v47  ;;  %v78_v49 = vmul.f32 %v76_v48, %v44_v18 }
 0x112   :  { %v84_v50 = vmul.f32 %v165_v37, %v78_v49 }
 0x114   :  { %v90_v51 = vadd.f32 %v166_v40, %v84_v50 }
 0x116   :  { %v92_v52 = vpack.c.bf16 %v90_v51, %v90_v51 }
 0x118   :  { %95 = vst.msk [vmem:[#allocation2 + $0x4] sm:$0xf] %vm93_vm6, %v92_v52 }
 0x11f   :  { %v161_v53 = vld [vmem:[#allocation2] sm:$0xff] }
 0x120   :  { %160 = vmatmul.msk.bf16.vlgmr.msra.gmra.mxu0 %vm27_vm0, %v161_v53 }
 0x19d   :  { %v136_v55 = vpop.f32.mrf.mxu0 }
 0x19e   :  { %v137_v56 = vadd.f32 %v167_v54, %v136_v55 }
 0x1a0   :  { %142 = vst.msk [vmem:[%s242_s5] sm:$0xff] %vm141_vm9, %v137_v56 }
 0x1a5   :  { %v138_v57 = vpop.f32.mrf.mxu0 }
 0x1a6   :  { %v139_v58 = vadd.f32 %v167_v54, %v138_v57 }
 0x1a8   :  { %143 = vst.msk [vmem:[%s242_s5 + $0x8] sm:$0xff] %vm141_vm9, %v139_v58 }

// kernel: _lambda_.37
= control target key start
LH: loop header
LB: loop body
LE: loop exit
PB: predicated region body
PF: predicated region fallthrough
CT: control target
= control target key end

     0   :  { %vm27_vm0 = vcmask 261120   ;;  %v174_v4 = vmov 32.0   ;;  %vm93_vm6 = vcmask 257024   ;;  %vm141_vm9 = vcmask 523264   ;;  %s237_s0 = inlined_call_operand.vmem [shape: f32[16,32], index: 0, kind: input, shape index: {}]   ;;  %s238_s1 = inlined_call_operand.vmem [shape: f32[1,32], index: 1, kind: input, shape index: {}]   ;;  %s239_s2 = inlined_call_operand.vmem [shape: f32[1,32], index: 2, kind: input, shape index: {}]   ;;  %s240_s4 = inlined_call_operand.vmem [shape: f32[1,64], index: 4, kind: input, shape index: {}]   ;;  %s241_s3 = inlined_call_operand.vmem [shape: bf16[32,64], index: 3, kind: input, shape index: {}]   ;;  %s242_s5 = inlined_call_operand.vmem [shape: f32[16,64], index: 5, kind: output, shape index: {}]  }
   0x1   :  { %v25_v0 = vld [vmem:[%s237_s0] sm:$0xff]  ;;  %v26_v2 = vld [vmem:[%s237_s0 + $0x8] sm:$0xff]  ;;  %168 = vrcp.f32 %v174_v4 }
   0x2   :  { %v28_v1 = vsel %vm27_vm0, %v25_v0, 0.0  ;;  %v31_v3 = vsel %vm27_vm0, %v26_v2, 0.0  ;;  %v163_v24 = vld [vmem:[%s241_s3 + $0x8] sm:$0xff]  ;;  %v162_v27 = vld [vmem:[%s241_s3] sm:$0xff] }
   0x3   :  { %29 = vadd.xlane.f32.xlu0 %v28_v1  ;;  %133 = vmatpush.bf16.msra.mxu0 %v163_v24  ;;  %v165_v37 = vld [vmem:[%s238_s1] ss:$0 sm:$0xff] }
   0x4   :  { %v166_v40 = vld [vmem:[%s239_s2] ss:$0 sm:$0xff] }
   0x5   :  { %v167_v54 = vld [vmem:[%s240_s4] ss:$0 sm:$0xff] }
   0x7   :  { %v169_v5 = vpop.eup %168  ;;  %134 = vmatpush.bf16.msra.mxu0 %v162_v27 }
   0x8   :  { %v35_v6 = vmul.f32 32.0, %v169_v5  ;;  %vm39_vm1 = vweird.f32 %v169_v5 }
   0xa   :  { %v36_v7 = vsub.f32 1.0, %v35_v6 }
   0xb   :  { %32 = vadd.xlane.f32.xlu0 %v31_v3 }
   0xc   :  { %v37_v8 = vmul.f32 %v169_v5, %v36_v7 }
   0xe   :  { %v38_v9 = vadd.f32 %v169_v5, %v37_v8 }
  0x10   :  { %v40_v10 = vsel %vm39_vm1, %v169_v5, %v38_v9 }
  0x76   :  { %v30_v11 = vpop.xlane.xlu0 %29 }
  0x77   :  { %v41_v12 = vmul.f32 %v40_v10, %v30_v11 }
  0x79   :  { %v43_v13 = vsub.f32 %v25_v0, %v41_v12 }
  0x7b   :  { %v45_v14 = vmul.f32 %v43_v13, %v43_v13 }
  0x7d   :  { %v47_v15 = vsel %vm27_vm0, %v45_v14, 0.0 }
  0x7e   :  { %48 = vadd.xlane.f32.xlu1 %v47_v15  ;;  %v33_v16 = vpop.xlane.xlu0 %32 }
  0x7f   :  { %v42_v17 = vmul.f32 %v40_v10, %v33_v16 }
  0x81   :  { %v44_v18 = vsub.f32 %v26_v2, %v42_v17 }
  0x83   :  { %v46_v19 = vmul.f32 %v44_v18, %v44_v18 }
  0x85   :  { %v50_v20 = vsel %vm27_vm0, %v46_v19, 0.0 }
  0x86   :  { %51 = vadd.xlane.f32.xlu1 %v50_v20 }
  0xf1   :  { %v49_v21 = vpop.xlane.xlu1 %48 }
  0xf2   :  { %v53_v22 = vmul.f32 %v49_v21, %v40_v10 }
  0xf4   :  { %v55_v23 = vadd.f32 1e-05, %v53_v22 }
  0xf6   :  { %170 = vrsqrt.f32 %v55_v23  ;;  %vm63_vm3 = vweird.f32 %v55_v23 }
  0xf9   :  { %v52_v25 = vpop.xlane.xlu1 %51 }
  0xfa   :  { %v54_v26 = vmul.f32 %v52_v25, %v40_v10 }
  0xfc   :  { %v171_v28 = vpop.eup %170  ;;  %v56_v29 = vadd.f32 1e-05, %v54_v26 }
  0xfd   :  { %v58_v30 = vmul.f32 %v171_v28, %v55_v23  ;;  %vm64_vm2 = vweird.f32 %v171_v28 }
  0xfe   :  { %172 = vrsqrt.f32 %v56_v29  ;;  %vm65_vm4 = vmor %vm63_vm3, %vm64_vm2  ;;  %vm73_vm7 = vweird.f32 %v56_v29 }
  0xff   :  { %v59_v31 = vmul.f32 %v171_v28, %v58_v30 }
 0x101   :  { %v60_v32 = vmul.f32 0.5, %v59_v31 }
 0x103   :  { %v61_v33 = vsub.f32 1.5, %v60_v32 }
 0x104   :  { %v173_v34 = vpop.eup %172 }
 0x105   :  { %v62_v35 = vmul.f32 %v171_v28, %v61_v33  ;;  %v68_v36 = vmul.f32 %v173_v34, %v56_v29  ;;  %vm74_vm5 = vweird.f32 %v173_v34 }
 0x106   :  { %vm75_vm8 = vmor %vm73_vm7, %vm74_vm5 }
 0x107   :  { %v66_v38 = vsel %vm65_vm4, %v171_v28, %v62_v35  ;;  %v69_v39 = vmul.f32 %v173_v34, %v68_v36 }
 0x108   :  { %v77_v41 = vmul.f32 %v66_v38, %v43_v13 }
 0x109   :  { %v70_v42 = vmul.f32 0.5, %v69_v39 }
 0x10a   :  { %v83_v43 = vmul.f32 %v165_v37, %v77_v41 }
 0x10b   :  { %v71_v44 = vsub.f32 1.5, %v70_v42 }
 0x10c   :  { %v89_v45 = vadd.f32 %v166_v40, %v83_v43 }
 0x10d   :  { %v72_v46 = vmul.f32 %v173_v34, %v71_v44 }
 0x10e   :  { %v91_v47 = vpack.c.bf16 %v89_v45, %v89_v45 }
 0x10f   :  { %v76_v48 = vsel %vm75_vm8, %v173_v34, %v72_v46 }
 0x110   :  { %94 = vst.msk [vmem:[#allocation2] sm:$0xf] %vm93_vm6, %v91_v47  ;;  %v78_v49 = vmul.f32 %v76_v48, %v44_v18 }
 0x112   :  { %v84_v50 = vmul.f32 %v165_v37, %v78_v49 }
 0x114   :  { %v90_v51 = vadd.f32 %v166_v40, %v84_v50 }
 0x116   :  { %v92_v52 = vpack.c.bf16 %v90_v51, %v90_v51 }
 0x118   :  { %95 = vst.msk [vmem:[#allocation2 + $0x4] sm:$0xf] %vm93_vm6, %v92_v52 }
 0x11f   :  { %v161_v53 = vld [vmem:[#allocation2] sm:$0xff] }
 0x120   :  { %160 = vmatmul.msk.bf16.vlgmr.msra.gmra.mxu0 %vm27_vm0, %v161_v53 }
 0x19d   :  { %v136_v55 = vpop.f32.mrf.mxu0 }
 0x19e   :  { %v137_v56 = vadd.f32 %v167_v54, %v136_v55 }
 0x1a0   :  { %142 = vst.msk [vmem:[%s242_s5] sm:$0xff] %vm141_vm9, %v137_v56 }
 0x1a5   :  { %v138_v57 = vpop.f32.mrf.mxu0 }
 0x1a6   :  { %v139_v58 = vadd.f32 %v167_v54, %v138_v57 }
 0x1a8   :  { %143 = vst.msk [vmem:[%s242_s5 + $0x8] sm:$0xff] %vm141_vm9, %v139_v58 }

// kernel: _lambda_.39
= control target key start
LH: loop header
LB: loop body
LE: loop exit
PB: predicated region body
PF: predicated region fallthrough
CT: control target
= control target key end

     0   :  { %vm22_vm0 = vcmask 261120   ;;  %v102_v1 = vmov 0.0   ;;  %s162_s1 = inlined_call_operand.vmem [shape: bf16[32,32], index: 1, kind: input, shape index: {}]   ;;  %s163_s0 = inlined_call_operand.vmem [shape: f32[16,32], index: 0, kind: input, shape index: {}]   ;;  %s164_s2 = inlined_call_operand.vmem [shape: f32[1,32], index: 2, kind: input, shape index: {}]   ;;  %s165_s3 = inlined_call_operand.vmem [shape: f32[16,32], index: 3, kind: input, shape index: {}]   ;;  %s166_s4 = inlined_call_operand.vmem [shape: f32[16,32], index: 4, kind: output, shape index: {}]  }
   0x1   :  { %v99_v0 = vld [vmem:[%s162_s1 + $0x8] sm:$0xff]  ;;  %23 = vst.msk [vmem:[#allocation2] sm:$0xff] %vm22_vm0, %v102_v1  ;;  %v98_v2 = vld [vmem:[%s162_s1] sm:$0xff] }
   0x2   :  { %24 = vst.msk [vmem:[#allocation2 + $0x8] sm:$0xff] %vm22_vm0, %v102_v1  ;;  %56 = vmatpush.bf16.msra.mxu0 %v99_v0  ;;  %v25_v3 = vld [vmem:[%s163_s0] sm:$0xff]  ;;  %v26_v4 = vld [vmem:[%s163_s0 + $0x8] sm:$0xff] }
   0x3   :  { %v27_v5 = vpack.c.bf16 %v26_v4, %v25_v3  ;;  %v101_v10 = vld [vmem:[%s164_s2] ss:$0 sm:$0xff]  ;;  %v80_v18 = vld [vmem:[%s165_s3 + $0x8] sm:$0xff] }
   0x4   :  { %v79_v14 = vld [vmem:[%s165_s3] sm:$0xff] }
   0x6   :  { %57 = vmatpush.bf16.msra.mxu0 %v98_v2 }
   0x8   :  { %v28_v6 = vld [vmem:[#allocation2] sm:$0xff] }
   0x9   :  { %97 = vmatmul.msk.bf16.vlgmr.msra.gmra.mxu0 %vm22_vm0, %v27_v5  ;;  %v29_v9 = vld [vmem:[#allocation2 + $0x8] sm:$0xff] }
  0x86   :  { %v59_v7 = vpop.f32.mrf.mxu0 }
  0x87   :  { %v64_v8 = vadd.f32 %v59_v7, %v28_v6 }
  0x89   :  { %66 = vst.msk [vmem:[#allocation2] sm:$0xff] %vm22_vm0, %v64_v8 }
  0x8e   :  { %v61_v11 = vpop.f32.mrf.mxu0 }
  0x8f   :  { %v65_v12 = vadd.f32 %v61_v11, %v29_v9 }
  0x90   :  { %v71_v13 = vld [vmem:[#allocation2] sm:$0xff] }
  0x91   :  { %v77_v15 = vadd.f32 %v101_v10, %v71_v13  ;;  %67 = vst.msk [vmem:[#allocation2 + $0x8] sm:$0xff] %vm22_vm0, %v65_v12 }
  0x93   :  { %v81_v16 = vadd.f32 %v79_v14, %v77_v15 }
  0x95   :  { %83 = vst.msk [vmem:[%s166_s4] sm:$0xff] %vm22_vm0, %v81_v16 }
  0x98   :  { %v72_v17 = vld [vmem:[#allocation2 + $0x8] sm:$0xff] }
  0x99   :  { %v78_v19 = vadd.f32 %v101_v10, %v72_v17 }
  0x9b   :  { %v82_v20 = vadd.f32 %v80_v18, %v78_v19 }
  0x9d   :  { %84 = vst.msk [vmem:[%s166_s4 + $0x8] sm:$0xff] %vm22_vm0, %v82_v20 }

// kernel: _lambda_.40
= control target key start
LH: loop header
LB: loop body
LE: loop exit
PB: predicated region body
PF: predicated region fallthrough
CT: control target
= control target key end

     0   :  { %vm27_vm0 = vcmask 261120   ;;  %v173_v4 = vmov 32.0   ;;  %vm93_vm6 = vcmask 257024   ;;  %s236_s0 = inlined_call_operand.vmem [shape: f32[16,32], index: 0, kind: input, shape index: {}]   ;;  %s237_s1 = inlined_call_operand.vmem [shape: f32[1,32], index: 1, kind: input, shape index: {}]   ;;  %s238_s2 = inlined_call_operand.vmem [shape: f32[1,32], index: 2, kind: input, shape index: {}]   ;;  %s239_s4 = inlined_call_operand.vmem [shape: f32[1,128], index: 4, kind: input, shape index: {}]   ;;  %s240_s3 = inlined_call_operand.vmem [shape: bf16[32,128], index: 3, kind: input, shape index: {}]   ;;  %s241_s5 = inlined_call_operand.vmem [shape: f32[16,128], index: 5, kind: output, shape index: {}]  }
   0x1   :  { %v25_v0 = vld [vmem:[%s236_s0] sm:$0xff]  ;;  %v26_v2 = vld [vmem:[%s236_s0 + $0x8] sm:$0xff]  ;;  %167 = vrcp.f32 %v173_v4 }
   0x2   :  { %v28_v1 = vsel %vm27_vm0, %v25_v0, 0.0  ;;  %v31_v3 = vsel %vm27_vm0, %v26_v2, 0.0  ;;  %v162_v24 = vld [vmem:[%s240_s3 + $0x8] sm:$0xff]  ;;  %v161_v27 = vld [vmem:[%s240_s3] sm:$0xff] }
   0x3   :  { %29 = vadd.xlane.f32.xlu0 %v28_v1  ;;  %133 = vmatpush.bf16.msra.mxu0 %v162_v24  ;;  %v164_v37 = vld [vmem:[%s237_s1] ss:$0 sm:$0xff] }
   0x4   :  { %v165_v40 = vld [vmem:[%s238_s2] ss:$0 sm:$0xff] }
   0x5   :  { %v166_v54 = vld [vmem:[%s239_s4] ss:$0 sm:$0xff] }
   0x7   :  { %v168_v5 = vpop.eup %167  ;;  %134 = vmatpush.bf16.msra.mxu0 %v161_v27 }
   0x8   :  { %v35_v6 = vmul.f32 32.0, %v168_v5  ;;  %vm39_vm1 = vweird.f32 %v168_v5 }
   0xa   :  { %v36_v7 = vsub.f32 1.0, %v35_v6 }
   0xb   :  { %32 = vadd.xlane.f32.xlu0 %v31_v3 }
   0xc   :  { %v37_v8 = vmul.f32 %v168_v5, %v36_v7 }
   0xe   :  { %v38_v9 = vadd.f32 %v168_v5, %v37_v8 }
  0x10   :  { %v40_v10 = vsel %vm39_vm1, %v168_v5, %v38_v9 }
  0x76   :  { %v30_v11 = vpop.xlane.xlu0 %29 }
  0x77   :  { %v41_v12 = vmul.f32 %v40_v10, %v30_v11 }
  0x79   :  { %v43_v13 = vsub.f32 %v25_v0, %v41_v12 }
  0x7b   :  { %v45_v14 = vmul.f32 %v43_v13, %v43_v13 }
  0x7d   :  { %v47_v15 = vsel %vm27_vm0, %v45_v14, 0.0 }
  0x7e   :  { %48 = vadd.xlane.f32.xlu1 %v47_v15  ;;  %v33_v16 = vpop.xlane.xlu0 %32 }
  0x7f   :  { %v42_v17 = vmul.f32 %v40_v10, %v33_v16 }
  0x81   :  { %v44_v18 = vsub.f32 %v26_v2, %v42_v17 }
  0x83   :  { %v46_v19 = vmul.f32 %v44_v18, %v44_v18 }
  0x85   :  { %v50_v20 = vsel %vm27_vm0, %v46_v19, 0.0 }
  0x86   :  { %51 = vadd.xlane.f32.xlu1 %v50_v20 }
  0xf1   :  { %v49_v21 = vpop.xlane.xlu1 %48 }
  0xf2   :  { %v53_v22 = vmul.f32 %v49_v21, %v40_v10 }
  0xf4   :  { %v55_v23 = vadd.f32 1e-05, %v53_v22 }
  0xf6   :  { %169 = vrsqrt.f32 %v55_v23  ;;  %vm63_vm3 = vweird.f32 %v55_v23 }
  0xf9   :  { %v52_v25 = vpop.xlane.xlu1 %51 }
  0xfa   :  { %v54_v26 = vmul.f32 %v52_v25, %v40_v10 }
  0xfc   :  { %v170_v28 = vpop.eup %169  ;;  %v56_v29 = vadd.f32 1e-05, %v54_v26 }
  0xfd   :  { %v58_v30 = vmul.f32 %v170_v28, %v55_v23  ;;  %vm64_vm2 = vweird.f32 %v170_v28 }
  0xfe   :  { %171 = vrsqrt.f32 %v56_v29  ;;  %vm65_vm4 = vmor %vm63_vm3, %vm64_vm2  ;;  %vm73_vm7 = vweird.f32 %v56_v29 }
  0xff   :  { %v59_v31 = vmul.f32 %v170_v28, %v58_v30 }
 0x101   :  { %v60_v32 = vmul.f32 0.5, %v59_v31 }
 0x103   :  { %v61_v33 = vsub.f32 1.5, %v60_v32 }
 0x104   :  { %v172_v34 = vpop.eup %171 }
 0x105   :  { %v62_v35 = vmul.f32 %v170_v28, %v61_v33  ;;  %v68_v36 = vmul.f32 %v172_v34, %v56_v29  ;;  %vm74_vm5 = vweird.f32 %v172_v34 }
 0x106   :  { %vm75_vm8 = vmor %vm73_vm7, %vm74_vm5 }
 0x107   :  { %v66_v38 = vsel %vm65_vm4, %v170_v28, %v62_v35  ;;  %v69_v39 = vmul.f32 %v172_v34, %v68_v36 }
 0x108   :  { %v77_v41 = vmul.f32 %v66_v38, %v43_v13 }
 0x109   :  { %v70_v42 = vmul.f32 0.5, %v69_v39 }
 0x10a   :  { %v83_v43 = vmul.f32 %v164_v37, %v77_v41 }
 0x10b   :  { %v71_v44 = vsub.f32 1.5, %v70_v42 }
 0x10c   :  { %v89_v45 = vadd.f32 %v165_v40, %v83_v43 }
 0x10d   :  { %v72_v46 = vmul.f32 %v172_v34, %v71_v44 }
 0x10e   :  { %v91_v47 = vpack.c.bf16 %v89_v45, %v89_v45 }
 0x10f   :  { %v76_v48 = vsel %vm75_vm8, %v172_v34, %v72_v46 }
 0x110   :  { %94 = vst.msk [vmem:[#allocation2] sm:$0xf] %vm93_vm6, %v91_v47  ;;  %v78_v49 = vmul.f32 %v76_v48, %v44_v18 }
 0x112   :  { %v84_v50 = vmul.f32 %v164_v37, %v78_v49 }
 0x114   :  { %v90_v51 = vadd.f32 %v165_v40, %v84_v50 }
 0x116   :  { %v92_v52 = vpack.c.bf16 %v90_v51, %v90_v51 }
 0x118   :  { %95 = vst.msk [vmem:[#allocation2 + $0x4] sm:$0xf] %vm93_vm6, %v92_v52 }
 0x11f   :  { %v160_v53 = vld [vmem:[#allocation2] sm:$0xff] }
 0x120   :  { %159 = vmatmul.msk.bf16.vlgmr.msra.gmra.mxu0 %vm27_vm0, %v160_v53 }
 0x19d   :  { %v136_v55 = vpop.f32.mrf.mxu0 }
 0x19e   :  { %v137_v56 = vadd.f32 %v166_v54, %v136_v55 }
 0x1a0   :  { %141 = vst [vmem:[%s241_s5] sm:$0xff] %v137_v56 }
 0x1a5   :  { %v138_v57 = vpop.f32.mrf.mxu0 }
 0x1a6   :  { %v139_v58 = vadd.f32 %v166_v54, %v138_v57 }
 0x1a8   :  { %142 = vst [vmem:[%s241_s5 + $0x8] sm:$0xff] %v139_v58 }

// kernel: _lambda_.38
= control target key start
LH: loop header
LB: loop body
LE: loop exit
PB: predicated region body
PF: predicated region fallthrough
CT: control target
= control target key end

     0   :  { %s480_s12 = smov 0   ;;  %s525_s0 = inlined_call_operand.vmem [shape: f32[2,8,32], index: 0, kind: input, shape index: {}]   ;;  %s526_s1 = inlined_call_operand.vmem [shape: f32[2,16,64], index: 1, kind: input, shape index: {}]   ;;  %s527_s2 = inlined_call_operand.vmem [shape: f32[2,1,16], index: 2, kind: input, shape index: {}]   ;;  %s528_s3 = inlined_call_operand.vmem [shape: f32[2,8,32], index: 3, kind: output, shape index: {}]  }
   0x1 LB: > { %s410_s13 = sadd.s32 4294967295, %s453_s12   ;;  %p414_p0 = scmp.ge.s32.totalorder %s453_s12, 1  ;;  %s453_s12 = sphi %s480_s12, %s13_s12  }
   0x2   : > { %p154_p1 = scmp.lt.s32.totalorder %s453_s12, 3 }
   0x4   : > { %p155_p2 = pnand %p414_p0, %p154_p1 }
   0x5   : > { %p184_p3 = scmp.lt.s32.totalorder (!%p155_p2), %s410_s13, 1  ;;  %s455_s22 = smov (!%p155_p2), 112  }
   0x6   : > { %158 = sbr.rel (%p155_p2) target bundleno = 773 (0x305), region = 32  ;;  %s456_s23 = smov (!%p155_p2), 96  }
   0x7   : > { %s458_s27 = smov (!%p155_p2), 80   ;;  %s459_s28 = smov (!%p155_p2), 16  }
   0xb   : > { %s530_s13 = smov (!%p184_p3, %s410_s13), 1  ;;  %vm208_vm0 = vcmask 130048   ;;  %v457_v17 = vmov 0   ;;  %vm334_vm3 = vcmask 261120  }
   0xc   : > { %s425_s14 = sshll.u32 %s530_s13, 4  ;;  %s415_s15 = sshll.u32 %s530_s13, 3 }
   0xd   : > { %s192_s18 = scalar_lea.vmem %s526_s1, %s425_s14  ;;  %s187_s21 = scalar_lea.vmem %s525_s0, %s415_s15 }
   0xe   : > { %v202_v0 = vld [vmem:[%s192_s18] sm:$0xff]  ;;  %v203_v1 = vld [vmem:[%s192_s18 + $0x8] sm:$0xff]  ;;  %s195_s26 = scalar_lea.vmem %s527_s2, %s530_s13  ;;  %s199_s4 = scalar_lea.vmem %s528_s3, %s415_s15 }
   0xf   : > { %v201_v2 = vld [vmem:[%s187_s21] sm:$0xff]  ;;  %v207_v3 = vpack.c.bf16 %v203_v1, %v202_v0 }
  0x10   : > { %v205_v4 = vmul.f32 0.25, %v201_v2  ;;  %v204_v16 = vld [vmem:[%s195_s26] sm:$0x1] }
  0x11   : > { %272 = vrot.lane.b32.xlu0 %v207_v3, %s455_s22  ;;  %v213_v6 = vsel %vm208_vm0, %v207_v3, 0  ;;  %vm232_vm1 = vcmp.gt.f32.partialorder %v204_v16, 0.5 }
  0x12   : > { %v206_v5 = vpack.c.bf16 %v205_v4, %v205_v4  ;;  %222 = vmatpush.bf16.xpose.msra.mxu0 %v213_v6  ;;  %v233_v18 = vsel %vm232_vm1, 1, %v457_v17 }
  0x13   : > { %v234_v19 = vperm.slane %v233_v18, 0 }
  0x15   : > { %vm235_vm2 = vcmp.eq.s32.totalorder %v234_v19, 1 }
  0x19   : > { %270 = vrot.lane.b32.xlu0 %v206_v5, %s455_s22  ;;  %419 = vmatmul.msk.bf16.vlgmr.msra.gmra.mxu0 %vm208_vm0, %v206_v5 }
  0x83   : > { %v273_v7 = vpop.permute.xlu0 %272 }
  0x84   : > { %v278_v8 = vsel %vm208_vm0, %v273_v7, 0 }
  0x85   : > { %287 = vmatpush.bf16.xpose.msra.mxu2 %v278_v8 }
  0x8b   : > { %v271_v9 = vpop.permute.xlu0 %270 }
  0x8c   : > { %421 = vmatmul.msk.bf16.vlgmr.msra.gmra.mxu2 %vm208_vm0, %v271_v9 }
  0x96   : > { %v224_v10 = vpop.f32.mrf.mxu0 }
  0x97   : > { %v228_v14 = vsel %vm208_vm0, %v224_v10, -inf }
  0x9e   : > { %v226_v11 = vpop.f32.mrf.mxu0 }
 0x10f   : > { %v289_v12 = vpop.f32.mrf.mxu2 }
 0x110   : > { %v293_v13 = vsel %vm208_vm0, %v289_v12, -inf }
 0x111   : > { %294 = vmax.xlane.f32.xlu1 %v293_v13 }
 0x117   : > { %v291_v15 = vpop.f32.mrf.mxu2 }
 0x119   : > { %229 = vmax.xlane.f32.xlu1 %v228_v14 }
 0x132   : > { %245 = vrot.lane.b32.xlu1 %v207_v3, %s456_s23 }
 0x184   : > { %v295_v20 = vpop.xlane.xlu1 %294 }
 0x185   : > { %v296_v21 = vsub.f32 %v289_v12, %v295_v20 }
 0x187   : > { %v297_v22 = vsel %vm235_vm2, %v296_v21, -10000.0 }
 0x188   : > { %v298_v23 = vsel %vm208_vm0, %v297_v22, -inf }
 0x189   : > { %299 = vmax.xlane.f32.xlu2 %v298_v23 }
 0x18c   : > { %v230_v24 = vpop.xlane.xlu1 %229 }
 0x18d   : > { %v231_v25 = vsub.f32 %v224_v10, %v230_v24 }
 0x18f   : > { %v236_v26 = vsel %vm235_vm2, %v231_v25, -10000.0 }
 0x190   : > { %v237_v27 = vsel %vm208_vm0, %v236_v26, -inf }
 0x191   : > { %238 = vmax.xlane.f32.xlu0 %v237_v27 }
 0x1a1   : > { %305 = vrot.lane.b32.xlu2 %v207_v3, %s458_s27 }
 0x1a4   : > { %v246_v28 = vpop.permute.xlu1 %245 }
 0x1a5   : > { %258 = vmatpush.bf16.msra.mxu1 %v246_v28 }
 0x1fc   : > { %v300_v29 = vpop.xlane.xlu2 %299 }
 0x1fd   : > { %v301_v30 = vsub.f32 %v297_v22, %v300_v29 }
 0x1ff   : > { %v302_v31 = vmul.f32 1.442695, %v301_v30 }
 0x201   : > { %439 = vpow2.f32 %v302_v31 }
 0x204   : > { %v239_v32 = vpop.xlane.xlu0 %238  ;;  %v306_v33 = vpop.permute.xlu2 %305 }
 0x205   : > { %v240_v34 = vsub.f32 %v236_v26, %v239_v32  ;;  %318 = vmatpush.bf16.msra.mxu3 %v306_v33 }
 0x207   : > { %v440_v35 = vpop.eup %439  ;;  %v241_v36 = vmul.f32 1.442695, %v240_v34 }
 0x208   : > { %v324_v37 = vsel %vm208_vm0, %v440_v35, 0.0  ;;  %v304_v38 = vpack.c.bf16 %v440_v35, %v440_v35 }
 0x209   : > { %441 = vpow2.f32 %v241_v36  ;;  %325 = vadd.xlane.f32.xlu2 %v324_v37 }
 0x20a   : > { %422 = vmatmul.msk.bf16.vlgmr.msra.gmra.mxu3 %vm208_vm0, %v304_v38 }
 0x20f   : > { %v442_v39 = vpop.eup %441 }
 0x210   : > { %v264_v40 = vsel %vm208_vm0, %v442_v39, 0.0  ;;  %v243_v41 = vpack.c.bf16 %v442_v39, %v442_v39 }
 0x211   : > { %265 = vadd.xlane.f32.xlu1 %v264_v40 }
 0x212   : > { %420 = vmatmul.msk.bf16.vlgmr.msra.gmra.mxu1 %vm208_vm0, %v243_v41 }
 0x27c   : > { %v326_v42 = vpop.xlane.xlu2 %325 }
 0x27d   : > { %443 = vrcp.f32 %v326_v42 }
 0x283   : > { %v444_v43 = vpop.eup %443 }
 0x284   : > { %v266_v49 = vpop.xlane.xlu1 %265 }
 0x285   : > { %445 = vrcp.f32 %v266_v49 }
 0x28b   : > { %v446_v50 = vpop.eup %445 }
 0x28d   : > { %v320_v44 = vpop.f32.mrf.mxu3 }
 0x28e   : > { %v328_v45 = vmul.f32 %v444_v43, %v320_v44 }
 0x28f   : > { %v260_v46 = vpop.f32.mrf.mxu1 }
 0x290   : > { %330 = vrot.lane.b32.xlu0 %v328_v45, %s459_s28  ;;  %v268_v51 = vmul.f32 %v446_v50, %v260_v46 }
 0x295   : > { %v322_v47 = vpop.f32.mrf.mxu3 }
 0x297   : > { %v262_v48 = vpop.f32.mrf.mxu1 }
 0x302   : > { %v331_v52 = vpop.permute.xlu0 %330 }
 0x303   : > { %v333_v53 = vsel %vm208_vm0, %v268_v51, %v331_v52 }
 0x304   : > { %335 = vst.msk [vmem:[%s199_s4] sm:$0xff] %vm334_vm3, %v333_v53 }
 0x305 PF: > { %s13_s12 = sadd.s32 1, %s453_s12  }
 0x306   : > { %p10_p4 = scmp.ge.s32.totalorder %s13_s12, 4  }
 0x308   :  { %12 = sbr.rel (!%p10_p4) target bundleno = 1 (0x1), region = 68 }

// kernel: _lambda_.48
= control target key start
LH: loop header
LB: loop body
LE: loop exit
PB: predicated region body
PF: predicated region fallthrough
CT: control target
= control target key end

     0   :  { %vm19_vm0 = vcmask 392192   ;;  %v96_v1 = vmov 0.0   ;;  %vm43_vm1 = vcmask 261120   ;;  %s144_s1 = inlined_call_operand.vmem [shape: bf16[32,48], index: 1, kind: input, shape index: {}]   ;;  %s145_s0 = inlined_call_operand.vmem [shape: f32[16,32], index: 0, kind: input, shape index: {}]   ;;  %s146_s2 = inlined_call_operand.vmem [shape: f32[1,48], index: 2, kind: input, shape index: {}]   ;;  %s147_s3 = inlined_call_operand.vmem [shape: f32[16,48], index: 3, kind: output, shape index: {}]  }
   0x1   :  { %v93_v0 = vld [vmem:[%s144_s1 + $0x8] sm:$0xff]  ;;  %20 = vst.msk [vmem:[#allocation2] sm:$0xff] %vm19_vm0, %v96_v1  ;;  %v92_v2 = vld [vmem:[%s144_s1] sm:$0xff] }
   0x2   :  { %21 = vst.msk [vmem:[#allocation2 + $0x8] sm:$0xff] %vm19_vm0, %v96_v1  ;;  %53 = vmatpush.bf16.msra.mxu0 %v93_v0  ;;  %v22_v3 = vld [vmem:[%s145_s0] sm:$0xff]  ;;  %v23_v4 = vld [vmem:[%s145_s0 + $0x8] sm:$0xff] }
   0x3   :  { %v24_v5 = vpack.c.bf16 %v23_v4, %v22_v3  ;;  %v95_v10 = vld [vmem:[%s146_s2] ss:$0 sm:$0xff] }
   0x6   :  { %54 = vmatpush.bf16.msra.mxu0 %v92_v2 }
   0x8   :  { %v25_v6 = vld [vmem:[#allocation2] sm:$0xff] }
   0x9   :  { %91 = vmatmul.msk.bf16.vlgmr.msra.gmra.mxu0 %vm43_vm1, %v24_v5  ;;  %v26_v9 = vld [vmem:[#allocation2 + $0x8] sm:$0xff] }
  0x86   :  { %v56_v7 = vpop.f32.mrf.mxu0 }
  0x87   :  { %v61_v8 = vadd.f32 %v56_v7, %v25_v6 }
  0x89   :  { %64 = vst.msk [vmem:[#allocation2] sm:$0xff] %vm19_vm0, %v61_v8 }
  0x8e   :  { %v58_v11 = vpop.f32.mrf.mxu0 }
  0x8f   :  { %v62_v12 = vadd.f32 %v58_v11, %v26_v9 }
  0x90   :  { %v69_v13 = vld [vmem:[#allocation2] sm:$0xff] }
  0x91   :  { %v75_v14 = vadd.f32 %v95_v10, %v69_v13  ;;  %65 = vst.msk [vmem:[#allocation2 + $0x8] sm:$0xff] %vm19_vm0, %v62_v12 }
  0x93   :  { %77 = vst.msk [vmem:[%s147_s3] sm:$0xff] %vm19_vm0, %v75_v14 }
  0x98   :  { %v70_v15 = vld [vmem:[#allocation2 + $0x8] sm:$0xff] }
  0x99   :  { %v76_v16 = vadd.f32 %v95_v10, %v70_v15 }
  0x9b   :  { %78 = vst.msk [vmem:[%s147_s3 + $0x8] sm:$0xff] %vm19_vm0, %v76_v16 }

// kernel: _lambda_.41
= control target key start
LH: loop header
LB: loop body
LE: loop exit
PB: predicated region body
PF: predicated region fallthrough
CT: control target
= control target key end

     0   :  { %vm21_vm8 = vcmask 261120   ;;  %v263_v43 = vmov 0.0   ;;  %s356_s1 = inlined_call_operand.vmem [shape: bf16[128,32], index: 1, kind: input, shape index: {}]   ;;  %s357_s0 = inlined_call_operand.vmem [shape: f32[16,128], index: 0, kind: input, shape index: {}]   ;;  %s358_s2 = inlined_call_operand.vmem [shape: f32[1,32], index: 2, kind: input, shape index: {}]   ;;  %s359_s3 = inlined_call_operand.vmem [shape: f32[16,32], index: 3, kind: input, shape index: {}]   ;;  %s360_s4 = inlined_call_operand.vmem [shape: f32[16,32], index: 4, kind: output, shape index: {}]  }
   0x1   :  { %v252_v0 = vld [vmem:[%s356_s1 + $0x38] sm:$0xff]  ;;  %v251_v1 = vld [vmem:[%s356_s1 + $0x30] sm:$0xff]  ;;  %v298_v2 = vld [vmem:[%s357_s0] sm:$0xff]  ;;  %22 = vst.msk [vmem:[#allocation2] sm:$0xff] %vm21_vm8, %v263_v43 }
   0x2   :  { %173 = vmatpush.bf16.msra.mxu0 %v252_v0  ;;  %v303_v3 = vld [vmem:[%s357_s0 + $0x8] sm:$0xff]  ;;  %v306_v4 = vmul.f32 0.70710677, %v298_v2  ;;  %v249_v12 = vld [vmem:[%s356_s1 + $0x20] sm:$0xff]  ;;  %v248_v14 = vld [vmem:[%s356_s1 + $0x18] sm:$0xff]  ;;  %23 = vst.msk [vmem:[#allocation2 + $0x8] sm:$0xff] %vm21_vm8, %v263_v43 }
   0x3   :  { %v309_v5 = vmul.f32 0.70710677, %v303_v3  ;;  %v250_v7 = vld [vmem:[%s356_s1 + $0x28] sm:$0xff]  ;;  %v247_v17 = vld [vmem:[%s356_s1 + $0x10] sm:$0xff]  ;;  %v245_v34 = vld [vmem:[%s356_s1] sm:$0xff] }
   0x4   :  { %v28_v6 = vand.u32 2147483647, %v306_v4  ;;  %v246_v26 = vld [vmem:[%s356_s1 + $0x8] sm:$0xff]  ;;  %vm94_vm9 = vcmp.ge.f32.partialorder %v306_v4, 0.0 }
   0x5   :  { %v29_v8 = vand.u32 2147483647, %v309_v5  ;;  %vm95_vm10 = vcmp.ge.f32.partialorder %v309_v5, 0.0 }
   0x6   :  { %174 = vmatpush.bf16.msra.mxu0 %v251_v1  ;;  %v30_v9 = vmul.f32 0.3275911, %v28_v6  ;;  %v82_v33 = vsub.f32 0.0, %v28_v6 }
   0x7   :  { %v31_v10 = vmul.f32 0.3275911, %v29_v8  ;;  %v83_v36 = vsub.f32 0.0, %v29_v8 }
   0x8   :  { %v32_v11 = vadd.f32 1.0, %v30_v9  ;;  %v84_v42 = vmul.f32 %v82_v33, %v28_v6 }
   0x9   :  { %v33_v13 = vadd.f32 1.0, %v31_v10  ;;  %v85_v45 = vmul.f32 %v83_v36, %v29_v8  ;;  %v108_v4 = vld [vmem:[#allocation2 + $0x8] sm:$0xff] }
   0xa   :  { %175 = vmatpush.bf16.msra.mxu0 %v250_v7  ;;  %255 = vrcp.f32 %v32_v11  ;;  %vm39_vm0 = vweird.f32 %v32_v11  ;;  %v45_v19 = vand.u32 2147483648, %v32_v11  ;;  %v43_v22 = vand.u32 2147483647, %v32_v11 }
   0xb   :  { %257 = vrcp.f32 %v33_v13  ;;  %v60_v23 = vand.u32 2147483648, %v33_v13  ;;  %vm54_vm2 = vweird.f32 %v33_v13  ;;  %v58_v25 = vand.u32 2147483647, %v33_v13 }
   0xc   :  { %v46_v28 = vor.u32 1.1754944e-38, %v45_v19  ;;  %vm44_vm5 = vcmp.eq.f32.partialorder %v43_v22, 8.507059e+37  ;;  %v86_v49 = vmul.f32 1.442695, %v84_v42  ;;  %v88_v51 = vmul.f32 1.442695, %v85_v45 }
   0xd   :  { %v61_v31 = vor.u32 1.1754944e-38, %v60_v23  ;;  %vm59_vm7 = vcmp.eq.f32.partialorder %v58_v25, 8.507059e+37 }
   0xe   :  { %176 = vmatpush.bf16.msra.mxu0 %v249_v12  ;;  %259 = vpow2.f32 %v86_v49 }
   0xf   :  { %261 = vpow2.f32 %v88_v51 }
  0x10   :  { %v256_v15 = vpop.eup %255 }
  0x11   :  { %v258_v16 = vpop.eup %257  ;;  %v35_v18 = vmul.f32 %v256_v15, %v32_v11  ;;  %vm40_vm1 = vweird.f32 %v256_v15  ;;  %v100_v11 = vmul.f32 0.5, %v298_v2  ;;  %v254_v2 = vld [vmem:[%s358_s2] ss:$0 sm:$0xff] }
  0x12   :  { %177 = vmatpush.bf16.msra.mxu0 %v248_v14  ;;  %v50_v20 = vmul.f32 %v258_v16, %v33_v13  ;;  %vm55_vm3 = vweird.f32 %v258_v16  ;;  %vm41_vm4 = vmor %vm39_vm0, %vm40_vm1  ;;  %v101_v13 = vmul.f32 0.5, %v303_v3 }
  0x13   :  { %v36_v21 = vsub.f32 1.0, %v35_v18  ;;  %vm56_vm6 = vmor %vm54_vm2, %vm55_vm3 }
  0x14   :  { %v51_v24 = vsub.f32 1.0, %v50_v20  ;;  %v260_v60 = vpop.eup %259  ;;  %v107_v20 = vld [vmem:[#allocation2] sm:$0xff] }
  0x15   :  { %v37_v27 = vmul.f32 %v256_v15, %v36_v21  ;;  %v262_v62 = vpop.eup %261 }
  0x16   :  { %178 = vmatpush.bf16.msra.mxu0 %v247_v17  ;;  %v52_v29 = vmul.f32 %v258_v16, %v51_v24  ;;  %v203_v24 = vld [vmem:[%s359_s3] sm:$0xff] }
  0x17   :  { %v38_v30 = vadd.f32 %v256_v15, %v37_v27  ;;  %v204_v27 = vld [vmem:[%s359_s3 + $0x8] sm:$0xff] }
  0x18   :  { %v53_v32 = vadd.f32 %v258_v16, %v52_v29 }
  0x19   :  { %v42_v35 = vsel %vm41_vm4, %v256_v15, %v38_v30 }
  0x1a   :  { %179 = vmatpush.bf16.msra.mxu0 %v246_v26  ;;  %v47_v37 = vsel %vm44_vm5, %v46_v28, %v42_v35  ;;  %v57_v38 = vsel %vm56_vm6, %v258_v16, %v53_v32 }
  0x1b   :  { %v62_v39 = vsel %vm59_vm7, %v61_v31, %v57_v38  ;;  %v64_v40 = vmul.f32 1.0614054, %v47_v37 }
  0x1c   :  { %v65_v41 = vmul.f32 1.0614054, %v62_v39 }
  0x1d   :  { %v66_v44 = vadd.f32 -1.4531521, %v64_v40 }
  0x1e   :  { %180 = vmatpush.bf16.msra.mxu0 %v245_v34  ;;  %v67_v46 = vadd.f32 -1.4531521, %v65_v41 }
  0x1f   :  { %v68_v47 = vmul.f32 %v66_v44, %v47_v37 }
  0x20   :  { %v69_v48 = vmul.f32 %v67_v46, %v62_v39 }
  0x21   :  { %v70_v50 = vadd.f32 1.4214138, %v68_v47 }
  0x22   :  { %v71_v52 = vadd.f32 1.4214138, %v69_v48 }
  0x23   :  { %v72_v53 = vmul.f32 %v70_v50, %v47_v37 }
  0x24   :  { %v73_v54 = vmul.f32 %v71_v52, %v62_v39 }
  0x25   :  { %v74_v55 = vadd.f32 -0.28449672, %v72_v53 }
  0x26   :  { %v75_v56 = vadd.f32 -0.28449672, %v73_v54 }
  0x27   :  { %v76_v57 = vmul.f32 %v74_v55, %v47_v37 }
  0x28   :  { %v77_v58 = vmul.f32 %v75_v56, %v62_v39 }
  0x29   :  { %v78_v59 = vadd.f32 0.2548296, %v76_v57 }
  0x2a   :  { %v79_v61 = vadd.f32 0.2548296, %v77_v58 }
  0x2b   :  { %v80_v63 = vmul.f32 %v78_v59, %v47_v37 }
  0x2c   :  { %v81_v0 = vmul.f32 %v79_v61, %v62_v39 }
  0x2d   :  { %v90_v1 = vmul.f32 %v260_v60, %v80_v63 }
  0x2e   :  { %v91_v6 = vmul.f32 %v262_v62, %v81_v0 }
  0x2f   :  { %v92_v7 = vsub.f32 1.0, %v90_v1 }
  0x30   :  { %v93_v8 = vsub.f32 1.0, %v91_v6 }
  0x31   :  { %v96_v9 = vsub.f32 0.0, %v92_v7 }
  0x32   :  { %v97_v10 = vsub.f32 0.0, %v93_v8 }
  0x33   :  { %v98_v12 = vsel %vm94_vm9, %v92_v7, %v96_v9 }
  0x34   :  { %v99_v14 = vsel %vm95_vm10, %v93_v8, %v97_v10  ;;  %v102_v15 = vadd.f32 1.0, %v98_v12 }
  0x35   :  { %v103_v16 = vadd.f32 1.0, %v99_v14 }
  0x36   :  { %v104_v17 = vmul.f32 %v102_v15, %v100_v11 }
  0x37   :  { %v105_v18 = vmul.f32 %v103_v16, %v101_v13 }
  0x39   :  { %v106_v19 = vpack.c.bf16 %v105_v18, %v104_v17 }
  0x3b   :  { %181 = vmatmul.bf16.vlgmr.msra.gmra.mxu0 %v106_v19 }
  0xb8   :  { %v182_v21 = vpop.f32.mrf.mxu0 }
  0xb9   :  { %v187_v22 = vadd.f32 %v182_v21, %v107_v20 }
  0xbb   :  { %190 = vst.msk [vmem:[#allocation2] sm:$0xff] %vm21_vm8, %v187_v22 }
  0xc0   :  { %v184_v5 = vpop.f32.mrf.mxu0 }
  0xc1   :  { %v188_v23 = vadd.f32 %v184_v5, %v108_v4 }
  0xc2   :  { %v195_v3 = vld [vmem:[#allocation2] sm:$0xff] }
  0xc3   :  { %v201_v25 = vadd.f32 %v254_v2, %v195_v3  ;;  %191 = vst.msk [vmem:[#allocation2 + $0x8] sm:$0xff] %vm21_vm8, %v188_v23 }
  0xc5   :  { %v205_v26 = vadd.f32 %v203_v24, %v201_v25 }
  0xc7   :  { %207 = vst.msk [vmem:[%s360_s4] sm:$0xff] %vm21_vm8, %v205_v26 }
  0xca   :  { %v196_v28 = vld [vmem:[#allocation2 + $0x8] sm:$0xff] }
  0xcb   :  { %v202_v29 = vadd.f32 %v254_v2, %v196_v28 }
  0xcd   :  { %v206_v30 = vadd.f32 %v204_v27, %v202_v29 }
  0xcf   :  { %208 = vst.msk [vmem:[%s360_s4 + $0x8] sm:$0xff] %vm21_vm8, %v206_v30 }

// kernel: _lambda_.49
= control target key start
LH: loop header
LB: loop body
LE: loop exit
PB: predicated region body
PF: predicated region fallthrough
CT: control target
= control target key end

     0   :  { %vm17_vm0 = vcmask 392192   ;;  %s184_s0 = inlined_call_operand.vmem [shape: f32[16,48], index: 0, kind: input, shape index: {}]   ;;  %s185_s1 = inlined_call_operand.vmem [shape: f32[1,48], index: 1, kind: input, shape index: {}]   ;;  %s186_s2 = inlined_call_operand.vmem [shape: f32[1,48], index: 2, kind: input, shape index: {}]   ;;  %s187_s3 = inlined_call_operand.hbm [shape: f32[16,48], index: 3, kind: output, shape index: {}]  }
   0x1   :  { %v15_v0 = vld [vmem:[%s184_s0] sm:$0xff] }
   0x2   :  { %v18_v1 = vsel %vm17_vm0, %v15_v0, 0.0 }
   0x3   :  { %8 = vsyncpa [#allocation3], 0  ;;  %19 = vadd.xlane.f32.xlu0 %v18_v1  ;;  %v16_v2 = vld [vmem:[%s184_s0 + $0x8] sm:$0xff]  ;;  %v139_v4 = vmov 48.0   ;;  %v105_v35 = vld [vmem:[%s185_s1] ss:$0 sm:$0xff] }
   0x4   :  { %v21_v3 = vsel %vm17_vm0, %v16_v2, 0.0  ;;  %107 = vrcp.f32 %v139_v4  ;;  %v106_v39 = vld [vmem:[%s186_s2] ss:$0 sm:$0xff]  ;;  %s140_s1 = smov [#allocation2]   ;;  %s89_s22 = sshll.u32 %s187_s3, 4  ;;  %s90_s22 = int_to_ptr.hbm [resolvable:$true] %s89_s22 }
   0x5   :  { %s87_s19 = sshll.u32 %s140_s1, 4  ;;  %s141_s2 = smov 128   ;;  %s88_s19 = int_to_ptr.vmem [resolvable:$true] %s87_s19 }
   0x6   :  { %s142_s23 = smov 8  }
   0xa   :  { %v108_v5 = vpop.eup %107 }
   0xb   :  { %22 = vadd.xlane.f32.xlu0 %v21_v3  ;;  %v25_v6 = vmul.f32 48.0, %v108_v5  ;;  %vm29_vm1 = vweird.f32 %v108_v5 }
   0xd   :  { %v26_v7 = vsub.f32 1.0, %v25_v6 }
   0xf   :  { %v27_v8 = vmul.f32 %v108_v5, %v26_v7 }
  0x11   :  { %v28_v9 = vadd.f32 %v108_v5, %v27_v8 }
  0x13   :  { %v30_v10 = vsel %vm29_vm1, %v108_v5, %v28_v9 }
  0x76   :  { %v20_v11 = vpop.xlane.xlu0 %19 }
  0x77   :  { %v31_v12 = vmul.f32 %v30_v10, %v20_v11 }
  0x79   :  { %v33_v13 = vsub.f32 %v15_v0, %v31_v12 }
  0x7b   :  { %v35_v14 = vmul.f32 %v33_v13, %v33_v13 }
  0x7d   :  { %v37_v15 = vsel %vm17_vm0, %v35_v14, 0.0 }
  0x7e   :  { %38 = vadd.xlane.f32.xlu1 %v37_v15  ;;  %v23_v16 = vpop.xlane.xlu0 %22 }
  0x7f   :  { %v32_v17 = vmul.f32 %v30_v10, %v23_v16 }
  0x81   :  { %v34_v18 = vsub.f32 %v16_v2, %v32_v17 }
  0x83   :  { %v36_v19 = vmul.f32 %v34_v18, %v34_v18 }
  0x85   :  { %v40_v20 = vsel %vm17_vm0, %v36_v19, 0.0 }
  0x86   :  { %41 = vadd.xlane.f32.xlu1 %v40_v20 }
  0xf1   :  { %v39_v21 = vpop.xlane.xlu1 %38 }
  0xf2   :  { %v43_v22 = vmul.f32 %v39_v21, %v30_v10 }
  0xf4   :  { %v45_v23 = vadd.f32 1e-05, %v43_v22 }
  0xf6   :  { %109 = vrsqrt.f32 %v45_v23  ;;  %vm53_vm3 = vweird.f32 %v45_v23 }
  0xf9   :  { %v42_v24 = vpop.xlane.xlu1 %41 }
  0xfa   :  { %v44_v25 = vmul.f32 %v42_v24, %v30_v10 }
  0xfc   :  { %v110_v26 = vpop.eup %109  ;;  %v46_v27 = vadd.f32 1e-05, %v44_v25 }
  0xfd   :  { %v48_v28 = vmul.f32 %v110_v26, %v45_v23  ;;  %vm54_vm2 = vweird.f32 %v110_v26 }
  0xfe   :  { %111 = vrsqrt.f32 %v46_v27  ;;  %vm55_vm4 = vmor %vm53_vm3, %vm54_vm2  ;;  %vm63_vm6 = vweird.f32 %v46_v27 }
  0xff   :  { %v49_v29 = vmul.f32 %v110_v26, %v48_v28 }
 0x101   :  { %v50_v30 = vmul.f32 0.5, %v49_v29 }
 0x103   :  { %v51_v31 = vsub.f32 1.5, %v50_v30 }
 0x104   :  { %v112_v32 = vpop.eup %111 }
 0x105   :  { %v52_v33 = vmul.f32 %v110_v26, %v51_v31  ;;  %v58_v34 = vmul.f32 %v112_v32, %v46_v27  ;;  %vm64_vm5 = vweird.f32 %v112_v32 }
 0x106   :  { %vm65_vm7 = vmor %vm63_vm6, %vm64_vm5 }
 0x107   :  { %v56_v36 = vsel %vm55_vm4, %v110_v26, %v52_v33  ;;  %v59_v37 = vmul.f32 %v112_v32, %v58_v34 }
 0x108   :  { %v67_v38 = vmul.f32 %v56_v36, %v33_v13 }
 0x109   :  { %v60_v40 = vmul.f32 0.5, %v59_v37 }
 0x10a   :  { %v73_v41 = vmul.f32 %v105_v35, %v67_v38 }
 0x10b   :  { %v61_v42 = vsub.f32 1.5, %v60_v40 }
 0x10c   :  { %v79_v43 = vadd.f32 %v106_v39, %v73_v41 }
 0x10d   :  { %v62_v44 = vmul.f32 %v112_v32, %v61_v42 }
 0x10e   :  { %81 = vst.msk [vmem:[#allocation2] sm:$0xff] %vm17_vm0, %v79_v43 }
 0x10f   :  { %v66_v45 = vsel %vm65_vm7, %v112_v32, %v62_v44 }
 0x110   :  { %v68_v46 = vmul.f32 %v66_v45, %v34_v18 }
 0x112   :  { %v74_v47 = vmul.f32 %v105_v35, %v68_v46 }
 0x114   :  { %v80_v48 = vadd.f32 %v106_v39, %v74_v47 }
 0x116   :  { %82 = vst.msk [vmem:[#allocation2 + $0x8] sm:$0xff] %vm17_vm0, %v80_v48 }
 0x117   :  { %95 = dma.vmem_to_hbm [thread:$0]  %s88_s19, 256, %s90_s22, [#allocation3], %s141_s2, %s141_s2, %s142_s23  }
 0x118   :  { %137 = dma.done.wait [#allocation3], 256  }
 0x119   :  { %138 = vsyncadd [#allocation3], 4294967040 }
 0x11a   :  { %100 = vsyncpa [#allocation3], 1 }

</bundles_post_ra>
